<compile_context>
chip_gen: v6e
topology: v6e:2x2x1
jax: 0.10.0
libtpu: 0.0.40
codegen_flags: <defaults>
</compile_context>

<pallas_src>
import math
import functools

import jax
import jax.numpy as jnp
from jax.experimental import pallas as pl
from jax.experimental.pallas import tpu as pltpu

COMPUTE_DTYPE = jnp.bfloat16   # MXU operand dtype; accumulation is always f32
LN_EPS = 1e-5                  # PyTorch nn.LayerNorm default eps


def _pick_row_tile(M):
    """Largest row tile (<=512) that divides M (bigger tiles -> closer to HBM
    roofline for the mem-bound LN/FFN kernels)."""
    for t in (512, 256, 128, 64, 32, 16, 8):
        if M % t == 0:
            return t
    return M


def _pick_seq_tile(S):
    for t in (256, 128, 64, 32, 16, 8):
        if S % t == 0:
            return t
    return S


def _pick_ff_tile(d_ff):
    """d_ff reduction-tile so W1/W2 chunks (not the whole FFN) sit in VMEM."""
    if d_ff <= 1024:
        return d_ff
    for t in (1024, 512, 256, 128):
        if d_ff % t == 0:
            return t
    return d_ff


def _layernorm_rows(x, g, b):
    mu = jnp.mean(x, axis=-1, keepdims=True)
    c = x - mu
    var = jnp.mean(c * c, axis=-1, keepdims=True)
    return c * jax.lax.rsqrt(var + LN_EPS) * g + b


def _split_heads(m, heads, dk):
    # (S, D) -> (H, S, dk) via static lane slices + one major-axis stack; the
    # per-head score/context matmuls then become ONE batched dot_general each.
    return jnp.stack([m[:, h * dk:(h + 1) * dk] for h in range(heads)], axis=0)


# -----------------------------------------------------------------------------
# Kernels
# -----------------------------------------------------------------------------
def _ln_ffn_kernel(x_ref, g_ref, b_ref, w1_ref, b1_ref, w2_ref, b2_ref,
                   *rest, final_norm):
    """Fused: y = x + W2 @ relu(W1 @ LN(x) + b1) + b2  (dropout = identity),
    with d_ff tiled along grid axis 1 (f32 accumulator scratch) and an optional
    fused trailing LayerNorm (Encoder.norm / Decoder.norm)."""
    if final_norm:
        fg_ref, fb_ref, o_ref, acc_ref = rest
    else:
        o_ref, acc_ref = rest

    f = pl.program_id(1)
    nf = pl.num_programs(1)

    x = x_ref[...].astype(jnp.float32)                      # (tm, D) residual
    xn = _layernorm_rows(x, g_ref[...], b_ref[...])
    cdt = w1_ref.dtype
    h = jnp.dot(xn.astype(cdt), w1_ref[...],
                preferred_element_type=jnp.float32) + b1_ref[...]
    h = jnp.maximum(h, 0.0)
    part = jnp.dot(h.astype(cdt), w2_ref[...],
                   preferred_element_type=jnp.float32)

    @pl.when(f == 0)
    def _():
        acc_ref[...] = jnp.zeros_like(acc_ref)

    acc_ref[...] += part

    @pl.when(f == nf - 1)
    def _():
        y = x + acc_ref[...] + b2_ref[...]
        if final_norm:
            y = _layernorm_rows(y, fg_ref[...], fb_ref[...])
        o_ref[...] = y.astype(o_ref.dtype)


def _mha_block_kernel(x_ref, kv_ref, m_ref, g_ref, b_ref,
                      wq_ref, bq_ref, wk_ref, bk_ref, wv_ref, bv_ref,
                      wo_ref, bo_ref, o_ref, *, heads, ln_kv, causal):
    """Fused attention sub-layer for one (batch, query-tile) grid cell:
       out = x + Wo @ MHA(LN(x), kv', kv', mask),  kv' = LN(kv) if self-attn
       (cross-attention uses raw encoder memory).  Heads are batched into a
       single dot_general pair; mask is an additive bias computed once."""
    x = x_ref[0].astype(jnp.float32)                        # (tq, D) residual
    kv = kv_ref[0].astype(jnp.float32)                      # (Sk, D)
    tq, D = x.shape
    Sk = kv.shape[0]
    dk = D // heads

    g = g_ref[...]
    b = b_ref[...]
    q_in = _layernorm_rows(x, g, b)
    kv_in = _layernorm_rows(kv, g, b) if ln_kv else kv

    cdt = wq_ref.dtype                                      # bf16 MXU operands
    q = jnp.dot(q_in.astype(cdt), wq_ref[...],
                preferred_element_type=jnp.float32) + bq_ref[...]
    k = jnp.dot(kv_in.astype(cdt), wk_ref[...],
                preferred_element_type=jnp.float32) + bk_ref[...]
    v = jnp.dot(kv_in.astype(cdt), wv_ref[...],
                preferred_element_type=jnp.float32) + bv_ref[...]

    # Additive mask bias, computed ONCE (hoisted out of all per-head math).
    pad = m_ref[0]                                          # (1, Sk) padding mask
    mbias = jnp.where(pad == 0.0, jnp.float32(-1e9), jnp.float32(0.0))
    mbias = jnp.broadcast_to(mbias, (tq, Sk))
    if causal:
        q0 = pl.program_id(1) * tq                          # global query offset
        row = jax.lax.broadcasted_iota(jnp.int32, (tq, Sk), 0) + q0
        col = jax.lax.broadcasted_iota(jnp.int32, (tq, Sk), 1)
        mbias = jnp.where(row >= col, mbias, jnp.float32(-1e9))

    # Heads batched: one score matmul + one context matmul for all heads.
    qh = _split_heads(q.astype(cdt), heads, dk)             # (H, tq, dk)
    kh = _split_heads(k.astype(cdt), heads, dk)             # (H, Sk, dk)
    vh = _split_heads(v.astype(cdt), heads, dk)             # (H, Sk, dk)

    scale = 1.0 / math.sqrt(float(dk))
    s = jnp.einsum('hqd,hkd->hqk', qh, kh,
                   preferred_element_type=jnp.float32)      # (H, tq, Sk)
    s = s * scale + mbias[None]
    s = s - jnp.max(s, axis=-1, keepdims=True)
    p = jnp.exp(s)
    p = p * pl.reciprocal(jnp.sum(p, axis=-1, keepdims=True), approx=True)
    ctx_h = jnp.einsum('hqk,hkd->hqd', p.astype(cdt), vh,
                       preferred_element_type=jnp.float32)  # (H, tq, dk)
    ctx = jnp.concatenate([ctx_h[h] for h in range(heads)], axis=-1)  # (tq, D)

    out = jnp.dot(ctx.astype(cdt), wo_ref[...],
                  preferred_element_type=jnp.float32) + bo_ref[...]
    o_ref[0] = (x + out).astype(o_ref.dtype)
    # TODO(synk): for long sequences add flash-style Sk tiling (online softmax
    # with m/l/acc scratch) so the (H, tq, Sk) score block never materializes
    # whole in VMEM (most important on v7x's 64 MiB VMEM).


# -----------------------------------------------------------------------------
# pallas_call wrappers
# -----------------------------------------------------------------------------
def ln_ffn_block(x, ffn_p, ln_g, ln_b, final_g=None, final_b=None):
    B, S, D = x.shape
    M = B * S
    d_ff = ffn_p["w1"].shape[1]
    tm = _pick_row_tile(M)
    tf = _pick_ff_tile(d_ff)
    nf = d_ff // tf
    final_norm = final_g is not None

    def const(shape):                                       # weight-resident block
        return pl.BlockSpec(shape, lambda i, f: (0, 0),
                            pipeline_mode=pl.Buffered(1))

    in_specs = [
        pl.BlockSpec((tm, D), lambda i, f: (i, 0)),         # residual rows
        const((1, D)),                                      # LN gamma
        const((1, D)),                                      # LN beta
        pl.BlockSpec((D, tf), lambda i, f: (0, f)),         # W1 chunk
        pl.BlockSpec((1, tf), lambda i, f: (0, f)),         # b1 chunk
        pl.BlockSpec((tf, D), lambda i, f: (f, 0)),         # W2 chunk
        const((1, D)),                                      # b2
    ]
    args = [x.reshape(M, D), ln_g, ln_b,
            ffn_p["w1"], ffn_p["b1"], ffn_p["w2"], ffn_p["b2"]]
    if final_norm:                                          # fused stack-final LN
        in_specs += [const((1, D)), const((1, D))]
        args += [final_g, final_b]

    y = pl.pallas_call(
        functools.partial(_ln_ffn_kernel, final_norm=final_norm),
        grid=(M // tm, nf),
        out_shape=jax.ShapeDtypeStruct((M, D), x.dtype),
        in_specs=in_specs,
        out_specs=pl.BlockSpec((tm, D), lambda i, f: (i, 0)),
        scratch_shapes=[pltpu.VMEM((tm, D), jnp.float32)],
        compiler_params=pltpu.CompilerParams(
            dimension_semantics=("parallel", "arbitrary")),
    )(*args)
    return y.reshape(B, S, D)


def attention_block(x, kv, pad_mask, attn_p, ln_g, ln_b, *, heads, ln_kv, causal):
    B, Sq, D = x.shape
    Sk = kv.shape[1]
    tq = _pick_seq_tile(Sq)
    kern = functools.partial(_mha_block_kernel, heads=heads, ln_kv=ln_kv,
                             causal=causal)

    def const(shape):                                       # weight-resident block
        return pl.BlockSpec(shape, lambda b, qi: (0, 0),
                            pipeline_mode=pl.Buffered(1))

    return pl.pallas_call(
        kern,
        grid=(B, Sq // tq),
        out_shape=jax.ShapeDtypeStruct((B, Sq, D), x.dtype),
        in_specs=[
            pl.BlockSpec((1, tq, D), lambda b, qi: (b, qi, 0)),  # residual / query
            pl.BlockSpec((1, Sk, D), lambda b, qi: (b, 0, 0)),   # key/value source
            pl.BlockSpec((1, 1, Sk), lambda b, qi: (b, 0, 0)),   # compact pad mask
            const((1, D)), const((1, D)),                        # LN gamma, beta
            const((D, D)), const((1, D)),                        # Wq, bq
            const((D, D)), const((1, D)),                        # Wk, bk
            const((D, D)), const((1, D)),                        # Wv, bv
            const((D, D)), const((1, D)),                        # Wo, bo
        ],
        out_specs=pl.BlockSpec((1, tq, D), lambda b, qi: (b, qi, 0)),
        compiler_params=pltpu.CompilerParams(
            dimension_semantics=("parallel", "parallel")),
    )(x, kv, pad_mask, ln_g, ln_b,
      attn_p["wq"], attn_p["bq"], attn_p["wk"], attn_p["bk"],
      attn_p["wv"], attn_p["bv"], attn_p["wo"], attn_p["bo"])


# -----------------------------------------------------------------------------
# Model glue
# -----------------------------------------------------------------------------
def encoder_layer(p, x, src_mask, heads, final_g=None, final_b=None):
    x = attention_block(x, x, src_mask, p["self_attn"], p["ln1_g"], p["ln1_b"],
                        heads=heads, ln_kv=True, causal=False)
    x = ln_ffn_block(x, p["ffn"], p["ln2_g"], p["ln2_b"], final_g, final_b)
    return x


def decoder_layer(p, x, memory, src_mask, tgt_pad_mask, heads,
                  final_g=None, final_b=None):
    x = attention_block(x, x, tgt_pad_mask, p["self_attn"], p["ln1_g"], p["ln1_b"],
                        heads=heads, ln_kv=True, causal=True)   # causal made in-kernel
    x = attention_block(x, memory, src_mask, p["src_attn"], p["ln2_g"], p["ln2_b"],
                        heads=heads, ln_kv=False, causal=False)  # memory used un-normed
    x = ln_ffn_block(x, p["ffn"], p["ln3_g"], p["ln3_b"], final_g, final_b)
    return x


def positional_encoding(S, D):
    pos = jnp.arange(S, dtype=jnp.float32)[:, None]
    div = jnp.exp(jnp.arange(0, D, 2, dtype=jnp.float32) * (-math.log(10000.0) / D))
    pe = jnp.zeros((S, D), jnp.float32)
    pe = pe.at[:, 0::2].set(jnp.sin(pos * div))
    pe = pe.at[:, 1::2].set(jnp.cos(pos * div))
    return pe


def embed(tokens, table, d_model):
    # Embedding gather + sinusoidal PE is XLA glue (not the hot path).
    x = jnp.take(table, tokens, axis=0) * math.sqrt(d_model)
    return x + positional_encoding(tokens.shape[1], d_model)[None]


@functools.partial(jax.jit, static_argnames=("heads", "n_layers"))
def transformer_forward(params, src, tgt, src_mask, tgt_pad_mask, *,
                        heads, n_layers):
    # --- encoding (clone() shares params across layers) ---
    x = embed(src, params["src_emb"], params["src_emb"].shape[1])
    for li in range(n_layers):
        last = li == n_layers - 1
        x = encoder_layer(params["enc_layer"], x, src_mask, heads,
                          params["enc_norm_g"] if last else None,
                          params["enc_norm_b"] if last else None)
    memory = x                                   # Encoder.norm fused into last FFN
    # --- decoding ---
    y = embed(tgt, params["tgt_emb"], params["tgt_emb"].shape[1])
    for li in range(n_layers):
        last = li == n_layers - 1
        y = decoder_layer(params["dec_layer"], y, memory, src_mask, tgt_pad_mask,
                          heads,
                          params["dec_norm_g"] if last else None,
                          params["dec_norm_b"] if last else None)
    return y                                     # Decoder.norm fused into last FFN
    # TODO(synk): Generator (log-softmax head) exists in __init__ but is never
    # invoked in Transformer.forward, so it is intentionally not applied here.


# -----------------------------------------------------------------------------
# Deterministic parameter construction (weights in bf16, biases/LN in f32)
# -----------------------------------------------------------------------------
def _attn_params(key, D):
    ks = jax.random.split(key, 4)
    w = lambda k: (0.02 * jax.random.normal(k, (D, D), jnp.float32)).astype(COMPUTE_DTYPE)
    zb = jnp.zeros((1, D), jnp.float32)
    return {"wq": w(ks[0]), "bq": zb, "wk": w(ks[1]), "bk": zb,
            "wv": w(ks[2]), "bv": zb, "wo": w(ks[3]), "bo": zb}


def _ffn_params(key, D, d_ff):
    k1, k2 = jax.random.split(key)
    return {
        "w1": (0.02 * jax.random.normal(k1, (D, d_ff), jnp.float32)).astype(COMPUTE_DTYPE),
        "b1": jnp.zeros((1, d_ff), jnp.float32),
        "w2": (0.02 * jax.random.normal(k2, (d_ff, D), jnp.float32)).astype(COMPUTE_DTYPE),
        "b2": jnp.zeros((1, D), jnp.float32),
    }


def init_params(key, vocab, D, d_ff):
    ks = jax.random.split(key, 8)
    ones = jnp.ones((1, D), jnp.float32)
    zeros = jnp.zeros((1, D), jnp.float32)
    return {
        "src_emb": 0.02 * jax.random.normal(ks[0], (vocab, D), jnp.float32),
        "tgt_emb": 0.02 * jax.random.normal(ks[1], (vocab, D), jnp.float32),
        "enc_layer": {
            "ln1_g": ones, "ln1_b": zeros, "ln2_g": ones, "ln2_b": zeros,
            "self_attn": _attn_params(ks[2], D),
            "ffn": _ffn_params(ks[3], D, d_ff),
        },
        "enc_norm_g": ones, "enc_norm_b": zeros,
        "dec_layer": {
            "ln1_g": ones, "ln1_b": zeros, "ln2_g": ones, "ln2_b": zeros,
            "ln3_g": ones, "ln3_b": zeros,
            "self_attn": _attn_params(ks[4], D),
            "src_attn": _attn_params(ks[5], D),
            "ffn": _ffn_params(ks[6], D, d_ff),
        },
        "dec_norm_g": ones, "dec_norm_b": zeros,
    }


# -----------------------------------------------------------------------------
if __name__ == "__main__":
    # D_MODEL=128 keeps every output store lane-dense (full 128-lane vst).
    B, S_SRC, S_TGT = 2, 8, 8
    D_MODEL, HEADS, D_FF, VOCAB, N_LAYERS = 128, 4, 512, 32, 2

    key = jax.random.PRNGKey(0)
    k_src, k_tgt, k_par = jax.random.split(key, 3)

    src = jax.random.randint(k_src, (B, S_SRC), 0, VOCAB, dtype=jnp.int32)
    tgt = jax.random.randint(k_tgt, (B, S_TGT), 0, VOCAB, dtype=jnp.int32)
    # Only compact padding masks are DMA'd; the causal part of tgt_mask is
    # generated in-kernel with broadcasted_iota (row >= col).
    src_mask = jnp.ones((B, 1, S_SRC), jnp.float32)
    tgt_pad_mask = jnp.ones((B, 1, S_TGT), jnp.float32)

    params = init_params(k_par, VOCAB, D_MODEL, D_FF)

    out = transformer_forward(params, src, tgt, src_mask, tgt_pad_mask,
                              heads=HEADS, n_layers=N_LAYERS)
    out = jax.block_until_ready(out)
    assert out.shape == (B, S_TGT, D_MODEL) and out.dtype == jnp.float32
    assert bool(jnp.all(jnp.isfinite(out)))
    print("KERNEL_OK")
</pallas_src>

<mosaic_0001>
module attributes {stable_mosaic.version = 11 : i64} {
  func.func @_ln_ffn_kernel(%arg0: i32, %arg1: i32, %arg2: memref<16x128xf32, #tpu.memory_space<vmem>>, %arg3: memref<1x128xf32, #tpu.memory_space<vmem>>, %arg4: memref<1x128xf32, #tpu.memory_space<vmem>>, %arg5: memref<128x512xbf16, #tpu.memory_space<vmem>>, %arg6: memref<1x512xf32, #tpu.memory_space<vmem>>, %arg7: memref<512x128xbf16, #tpu.memory_space<vmem>>, %arg8: memref<1x128xf32, #tpu.memory_space<vmem>>, %arg9: memref<16x128xf32, #tpu.memory_space<vmem>>, %arg10: memref<16x128xf32, #tpu.memory_space<vmem>>) attributes {dimension_semantics = [#tpu.dimension_semantics<parallel>, #tpu.dimension_semantics<arbitrary>], iteration_bounds = array<i64: 1, 1>, scalar_prefetch = 0 : i64, scratch_operands = 1 : i64, tpu.core_type = #tpu.core_type<tc>, window_params = [{transform_indices = @transform_0, window_bounds = array<i64: 16, 128>}, {pipeline_mode = #tpu.pipeline_mode<synchronous>, transform_indices = @transform_1, window_bounds = array<i64: 1, 128>}, {pipeline_mode = #tpu.pipeline_mode<synchronous>, transform_indices = @transform_2, window_bounds = array<i64: 1, 128>}, {transform_indices = @transform_3, window_bounds = array<i64: 128, 512>}, {transform_indices = @transform_4, window_bounds = array<i64: 1, 512>}, {transform_indices = @transform_5, window_bounds = array<i64: 512, 128>}, {pipeline_mode = #tpu.pipeline_mode<synchronous>, transform_indices = @transform_6, window_bounds = array<i64: 1, 128>}, {transform_indices = @transform_7, window_bounds = array<i64: 16, 128>}]} {
    %c0 = arith.constant 0 : index
    %c0_0 = arith.constant 0 : index
    %0 = vector.load %arg2[%c0, %c0_0] : memref<16x128xf32, #tpu.memory_space<vmem>>, vector<16x128xf32>
    %c0_1 = arith.constant 0 : index
    %c0_2 = arith.constant 0 : index
    %1 = vector.load %arg3[%c0_1, %c0_2] : memref<1x128xf32, #tpu.memory_space<vmem>>, vector<1x128xf32>
    %c0_3 = arith.constant 0 : index
    %c0_4 = arith.constant 0 : index
    %2 = vector.load %arg4[%c0_3, %c0_4] : memref<1x128xf32, #tpu.memory_space<vmem>>, vector<1x128xf32>
    %cst = arith.constant dense<0.000000e+00> : vector<16xf32>
    %3 = vector.multi_reduction <add>, %0, %cst [1] : vector<16x128xf32> to vector<16xf32>
    %4 = vector.shape_cast %3 : vector<16xf32> to vector<16x1xf32>
    %cst_5 = arith.constant 1.280000e+02 : f32
    %5 = vector.broadcast %cst_5 : f32 to vector<16x1xf32>
    %6 = arith.divf %4, %5 : vector<16x1xf32>
    %7 = vector.broadcast %6 : vector<16x1xf32> to vector<16x128xf32>
    %8 = arith.subf %0, %7 : vector<16x128xf32>
    %9 = arith.mulf %8, %8 : vector<16x128xf32>
    %cst_6 = arith.constant dense<0.000000e+00> : vector<16xf32>
    %10 = vector.multi_reduction <add>, %9, %cst_6 [1] : vector<16x128xf32> to vector<16xf32>
    %11 = vector.shape_cast %10 : vector<16xf32> to vector<16x1xf32>
    %cst_7 = arith.constant 1.280000e+02 : f32
    %12 = vector.broadcast %cst_7 : f32 to vector<16x1xf32>
    %13 = arith.divf %11, %12 : vector<16x1xf32>
    %cst_8 = arith.constant 9.99999974E-6 : f32
    %14 = vector.broadcast %cst_8 : f32 to vector<16x1xf32>
    %15 = arith.addf %13, %14 : vector<16x1xf32>
    %16 = math.rsqrt %15 : vector<16x1xf32>
    %17 = vector.broadcast %16 : vector<16x1xf32> to vector<16x128xf32>
    %18 = arith.mulf %8, %17 : vector<16x128xf32>
    %19 = vector.broadcast %1 : vector<1x128xf32> to vector<16x128xf32>
    %20 = arith.mulf %18, %19 : vector<16x128xf32>
    %21 = vector.broadcast %2 : vector<1x128xf32> to vector<16x128xf32>
    %22 = arith.addf %20, %21 : vector<16x128xf32>
    %23 = arith.truncf %22 : vector<16x128xf32> to vector<16x128xbf16>
    %c0_9 = arith.constant 0 : index
    %c0_10 = arith.constant 0 : index
    %24 = vector.load %arg5[%c0_9, %c0_10] : memref<128x512xbf16, #tpu.memory_space<vmem>>, vector<128x512xbf16>
    %cst_11 = arith.constant dense<0.000000e+00> : vector<16x512xf32>
    %25 = tpu.matmul %23, %24, %cst_11 {dimension_numbers = #tpu.dot_dimension_numbers<[1], [0], [0], [1], [0, 0, 1, 1], [], []>} : vector<16x128xbf16>, vector<128x512xbf16>, vector<16x512xf32> -> vector<16x512xf32>
    %c0_12 = arith.constant 0 : index
    %c0_13 = arith.constant 0 : index
    %26 = vector.load %arg6[%c0_12, %c0_13] : memref<1x512xf32, #tpu.memory_space<vmem>>, vector<1x512xf32>
    %27 = vector.broadcast %26 : vector<1x512xf32> to vector<16x512xf32>
    %28 = arith.addf %25, %27 : vector<16x512xf32>
    %cst_14 = arith.constant 0.000000e+00 : f32
    %29 = vector.broadcast %cst_14 : f32 to vector<16x512xf32>
    %30 = arith.maximumf %28, %29 : vector<16x512xf32>
    %31 = arith.truncf %30 : vector<16x512xf32> to vector<16x512xbf16>
    %c0_15 = arith.constant 0 : index
    %c0_16 = arith.constant 0 : index
    %32 = vector.load %arg7[%c0_15, %c0_16] : memref<512x128xbf16, #tpu.memory_space<vmem>>, vector<512x128xbf16>
    %cst_17 = arith.constant dense<0.000000e+00> : vector<16x128xf32>
    %33 = tpu.matmul %31, %32, %cst_17 {dimension_numbers = #tpu.dot_dimension_numbers<[1], [0], [0], [1], [0, 0, 1, 1], [], []>} : vector<16x512xbf16>, vector<512x128xbf16>, vector<16x128xf32> -> vector<16x128xf32>
    %c0_i32 = arith.constant 0 : i32
    %34 = arith.cmpi eq, %arg1, %c0_i32 : i32
    %35 = arith.extui %34 : i1 to i32
    %c0_i32_18 = arith.constant 0 : i32
    %36 = arith.cmpi ne, %35, %c0_i32_18 : i32
    scf.if %36 {
      %cst_25 = arith.constant 0.000000e+00 : f32
      %43 = vector.broadcast %cst_25 : f32 to vector<16x128xf32>
      %c0_26 = arith.constant 0 : index
      %c0_27 = arith.constant 0 : index
      %44 = vector.load %arg10[%c0_26, %c0_27] : memref<16x128xf32, #tpu.memory_space<vmem>>, vector<16x128xf32>
      tpu.vector_store %arg10[%c0_26, %c0_27], %43 {strides = array<i32>} : memref<16x128xf32, #tpu.memory_space<vmem>>, vector<16x128xf32>,
    } else {
    }
    %c0_19 = arith.constant 0 : index
    %c0_20 = arith.constant 0 : index
    %37 = vector.load %arg10[%c0_19, %c0_20] : memref<16x128xf32, #tpu.memory_space<vmem>>, vector<16x128xf32>
    %38 = arith.addf %37, %33 : vector<16x128xf32>
    %c0_21 = arith.constant 0 : index
    %c0_22 = arith.constant 0 : index
    %39 = vector.load %arg10[%c0_21, %c0_22] : memref<16x128xf32, #tpu.memory_space<vmem>>, vector<16x128xf32>
    tpu.vector_store %arg10[%c0_21, %c0_22], %38 {strides = array<i32>} : memref<16x128xf32, #tpu.memory_space<vmem>>, vector<16x128xf32>,
    %c0_i32_23 = arith.constant 0 : i32
    %40 = arith.cmpi eq, %arg1, %c0_i32_23 : i32
    %41 = arith.extui %40 : i1 to i32
    %c0_i32_24 = arith.constant 0 : i32
    %42 = arith.cmpi ne, %41, %c0_i32_24 : i32
    scf.if %42 {
      %c0_25 = arith.constant 0 : index
      %c0_26 = arith.constant 0 : index
      %43 = vector.load %arg10[%c0_25, %c0_26] : memref<16x128xf32, #tpu.memory_space<vmem>>, vector<16x128xf32>
      %44 = arith.addf %0, %43 : vector<16x128xf32>
      %c0_27 = arith.constant 0 : index
      %c0_28 = arith.constant 0 : index
      %45 = vector.load %arg8[%c0_27, %c0_28] : memref<1x128xf32, #tpu.memory_space<vmem>>, vector<1x128xf32>
      %46 = vector.broadcast %45 : vector<1x128xf32> to vector<16x128xf32>
      %47 = arith.addf %44, %46 : vector<16x128xf32>
      %c0_29 = arith.constant 0 : index
      %c0_30 = arith.constant 0 : index
      %48 = vector.load %arg9[%c0_29, %c0_30] : memref<16x128xf32, #tpu.memory_space<vmem>>, vector<16x128xf32>
      tpu.vector_store %arg9[%c0_29, %c0_30], %47 {strides = array<i32>} : memref<16x128xf32, #tpu.memory_space<vmem>>, vector<16x128xf32>,
    } else {
    }
    return
  }
  func.func @transform_0(%arg0: i32, %arg1: i32) -> (i32, i32) {
    %c0_i32 = arith.constant 0 : i32
    %c0_i32_0 = arith.constant 0 : i32
    return %arg0, %c0_i32 : i32, i32
  }
  func.func @transform_1(%arg0: i32, %arg1: i32) -> (i32, i32) {
    %c0_i32 = arith.constant 0 : i32
    %c0_i32_0 = arith.constant 0 : i32
    %c0_i32_1 = arith.constant 0 : i32
    return %c0_i32, %c0_i32_0 : i32, i32
  }
  func.func @transform_2(%arg0: i32, %arg1: i32) -> (i32, i32) {
    %c0_i32 = arith.constant 0 : i32
    %c0_i32_0 = arith.constant 0 : i32
    %c0_i32_1 = arith.constant 0 : i32
    return %c0_i32, %c0_i32_0 : i32, i32
  }
  func.func @transform_3(%arg0: i32, %arg1: i32) -> (i32, i32) {
    %c0_i32 = arith.constant 0 : i32
    %c0_i32_0 = arith.constant 0 : i32
    return %c0_i32, %arg1 : i32, i32
  }
  func.func @transform_4(%arg0: i32, %arg1: i32) -> (i32, i32) {
    %c0_i32 = arith.constant 0 : i32
    %c0_i32_0 = arith.constant 0 : i32
    return %c0_i32, %arg1 : i32, i32
  }
  func.func @transform_5(%arg0: i32, %arg1: i32) -> (i32, i32) {
    %c0_i32 = arith.constant 0 : i32
    %c0_i32_0 = arith.constant 0 : i32
    return %arg1, %c0_i32 : i32, i32
  }
  func.func @transform_6(%arg0: i32, %arg1: i32) -> (i32, i32) {
    %c0_i32 = arith.constant 0 : i32
    %c0_i32_0 = arith.constant 0 : i32
    %c0_i32_1 = arith.constant 0 : i32
    return %c0_i32, %c0_i32_0 : i32, i32
  }
  func.func @transform_7(%arg0: i32, %arg1: i32) -> (i32, i32) {
    %c0_i32 = arith.constant 0 : i32
    %c0_i32_0 = arith.constant 0 : i32
    return %arg0, %c0_i32 : i32, i32
  }
}

module attributes {stable_mosaic.version = 11 : i64} {
  func.func @_mha_block_kernel(%arg0: i32, %arg1: i32, %arg2: memref<1x8x128xf32, #tpu.memory_space<vmem>>, %arg3: memref<1x8x128xf32, #tpu.memory_space<vmem>>, %arg4: memref<1x1x8xf32, #tpu.memory_space<vmem>>, %arg5: memref<1x128xf32, #tpu.memory_space<vmem>>, %arg6: memref<1x128xf32, #tpu.memory_space<vmem>>, %arg7: memref<128x128xbf16, #tpu.memory_space<vmem>>, %arg8: memref<1x128xf32, #tpu.memory_space<vmem>>, %arg9: memref<128x128xbf16, #tpu.memory_space<vmem>>, %arg10: memref<1x128xf32, #tpu.memory_space<vmem>>, %arg11: memref<128x128xbf16, #tpu.memory_space<vmem>>, %arg12: memref<1x128xf32, #tpu.memory_space<vmem>>, %arg13: memref<128x128xbf16, #tpu.memory_space<vmem>>, %arg14: memref<1x128xf32, #tpu.memory_space<vmem>>, %arg15: memref<1x8x128xf32, #tpu.memory_space<vmem>>) attributes {dimension_semantics = [#tpu.dimension_semantics<parallel>, #tpu.dimension_semantics<parallel>], iteration_bounds = array<i64: 2, 1>, scalar_prefetch = 0 : i64, scratch_operands = 0 : i64, tpu.core_type = #tpu.core_type<tc>, window_params = [{transform_indices = @transform_0, window_bounds = array<i64: 1, 8, 128>}, {transform_indices = @transform_1, window_bounds = array<i64: 1, 8, 128>}, {transform_indices = @transform_2, window_bounds = array<i64: 1, 1, 8>}, {pipeline_mode = #tpu.pipeline_mode<synchronous>, transform_indices = @transform_3, window_bounds = array<i64: 1, 128>}, {pipeline_mode = #tpu.pipeline_mode<synchronous>, transform_indices = @transform_4, window_bounds = array<i64: 1, 128>}, {pipeline_mode = #tpu.pipeline_mode<synchronous>, transform_indices = @transform_5, window_bounds = array<i64: 128, 128>}, {pipeline_mode = #tpu.pipeline_mode<synchronous>, transform_indices = @transform_6, window_bounds = array<i64: 1, 128>}, {pipeline_mode = #tpu.pipeline_mode<synchronous>, transform_indices = @transform_7, window_bounds = array<i64: 128, 128>}, {pipeline_mode = #tpu.pipeline_mode<synchronous>, transform_indices = @transform_8, window_bounds = array<i64: 1, 128>}, {pipeline_mode = #tpu.pipeline_mode<synchronous>, transform_indices = @transform_9, window_bounds = array<i64: 128, 128>}, {pipeline_mode = #tpu.pipeline_mode<synchronous>, transform_indices = @transform_10, window_bounds = array<i64: 1, 128>}, {pipeline_mode = #tpu.pipeline_mode<synchronous>, transform_indices = @transform_11, window_bounds = array<i64: 128, 128>}, {pipeline_mode = #tpu.pipeline_mode<synchronous>, transform_indices = @transform_12, window_bounds = array<i64: 1, 128>}, {transform_indices = @transform_13, window_bounds = array<i64: 1, 8, 128>}]} {
    %c0 = arith.constant 0 : index
    %c0_0 = arith.constant 0 : index
    %c0_1 = arith.constant 0 : index
    %0 = vector.load %arg2[%c0, %c0_0, %c0_1] : memref<1x8x128xf32, #tpu.memory_space<vmem>>, vector<1x8x128xf32>
    %1 = vector.shape_cast %0 : vector<1x8x128xf32> to vector<8x128xf32>
    %c0_2 = arith.constant 0 : index
    %c0_3 = arith.constant 0 : index
    %c0_4 = arith.constant 0 : index
    %2 = vector.load %arg3[%c0_2, %c0_3, %c0_4] : memref<1x8x128xf32, #tpu.memory_space<vmem>>, vector<1x8x128xf32>
    %3 = vector.shape_cast %2 : vector<1x8x128xf32> to vector<8x128xf32>
    %c0_5 = arith.constant 0 : index
    %c0_6 = arith.constant 0 : index
    %4 = vector.load %arg5[%c0_5, %c0_6] : memref<1x128xf32, #tpu.memory_space<vmem>>, vector<1x128xf32>
    %c0_7 = arith.constant 0 : index
    %c0_8 = arith.constant 0 : index
    %5 = vector.load %arg6[%c0_7, %c0_8] : memref<1x128xf32, #tpu.memory_space<vmem>>, vector<1x128xf32>
    %cst = arith.constant dense<0.000000e+00> : vector<8xf32>
    %6 = vector.multi_reduction <add>, %1, %cst [1] : vector<8x128xf32> to vector<8xf32>
    %7 = vector.shape_cast %6 : vector<8xf32> to vector<8x1xf32>
    %cst_9 = arith.constant 1.280000e+02 : f32
    %8 = vector.broadcast %cst_9 : f32 to vector<8x1xf32>
    %9 = arith.divf %7, %8 : vector<8x1xf32>
    %10 = vector.broadcast %9 : vector<8x1xf32> to vector<8x128xf32>
    %11 = arith.subf %1, %10 : vector<8x128xf32>
    %12 = arith.mulf %11, %11 : vector<8x128xf32>
    %cst_10 = arith.constant dense<0.000000e+00> : vector<8xf32>
    %13 = vector.multi_reduction <add>, %12, %cst_10 [1] : vector<8x128xf32> to vector<8xf32>
    %14 = vector.shape_cast %13 : vector<8xf32> to vector<8x1xf32>
    %cst_11 = arith.constant 1.280000e+02 : f32
    %15 = vector.broadcast %cst_11 : f32 to vector<8x1xf32>
    %16 = arith.divf %14, %15 : vector<8x1xf32>
    %cst_12 = arith.constant 9.99999974E-6 : f32
    %17 = vector.broadcast %cst_12 : f32 to vector<8x1xf32>
    %18 = arith.addf %16, %17 : vector<8x1xf32>
    %19 = math.rsqrt %18 : vector<8x1xf32>
    %20 = vector.broadcast %19 : vector<8x1xf32> to vector<8x128xf32>
    %21 = arith.mulf %11, %20 : vector<8x128xf32>
    %22 = vector.broadcast %4 : vector<1x128xf32> to vector<8x128xf32>
    %23 = arith.mulf %21, %22 : vector<8x128xf32>
    %24 = vector.broadcast %5 : vector<1x128xf32> to vector<8x128xf32>
    %25 = arith.addf %23, %24 : vector<8x128xf32>
    %cst_13 = arith.constant dense<0.000000e+00> : vector<8xf32>
    %26 = vector.multi_reduction <add>, %3, %cst_13 [1] : vector<8x128xf32> to vector<8xf32>
    %27 = vector.shape_cast %26 : vector<8xf32> to vector<8x1xf32>
    %cst_14 = arith.constant 1.280000e+02 : f32
    %28 = vector.broadcast %cst_14 : f32 to vector<8x1xf32>
    %29 = arith.divf %27, %28 : vector<8x1xf32>
    %30 = vector.broadcast %29 : vector<8x1xf32> to vector<8x128xf32>
    %31 = arith.subf %3, %30 : vector<8x128xf32>
    %32 = arith.mulf %31, %31 : vector<8x128xf32>
    %cst_15 = arith.constant dense<0.000000e+00> : vector<8xf32>
    %33 = vector.multi_reduction <add>, %32, %cst_15 [1] : vector<8x128xf32> to vector<8xf32>
    %34 = vector.shape_cast %33 : vector<8xf32> to vector<8x1xf32>
    %cst_16 = arith.constant 1.280000e+02 : f32
    %35 = vector.broadcast %cst_16 : f32 to vector<8x1xf32>
    %36 = arith.divf %34, %35 : vector<8x1xf32>
    %cst_17 = arith.constant 9.99999974E-6 : f32
    %37 = vector.broadcast %cst_17 : f32 to vector<8x1xf32>
    %38 = arith.addf %36, %37 : vector<8x1xf32>
    %39 = math.rsqrt %38 : vector<8x1xf32>
    %40 = vector.broadcast %39 : vector<8x1xf32> to vector<8x128xf32>
    %41 = arith.mulf %31, %40 : vector<8x128xf32>
    %42 = vector.broadcast %4 : vector<1x128xf32> to vector<8x128xf32>
    %43 = arith.mulf %41, %42 : vector<8x128xf32>
    %44 = vector.broadcast %5 : vector<1x128xf32> to vector<8x128xf32>
    %45 = arith.addf %43, %44 : vector<8x128xf32>
    %46 = arith.truncf %25 : vector<8x128xf32> to vector<8x128xbf16>
    %c0_18 = arith.constant 0 : index
    %c0_19 = arith.constant 0 : index
    %47 = vector.load %arg7[%c0_18, %c0_19] : memref<128x128xbf16, #tpu.memory_space<vmem>>, vector<128x128xbf16>
    %cst_20 = arith.constant dense<0.000000e+00> : vector<8x128xf32>
    %48 = tpu.matmul %46, %47, %cst_20 {dimension_numbers = #tpu.dot_dimension_numbers<[1], [0], [0], [1], [0, 0, 1, 1], [], []>} : vector<8x128xbf16>, vector<128x128xbf16>, vector<8x128xf32> -> vector<8x128xf32>
    %c0_21 = arith.constant 0 : index
    %c0_22 = arith.constant 0 : index
    %49 = vector.load %arg8[%c0_21, %c0_22] : memref<1x128xf32, #tpu.memory_space<vmem>>, vector<1x128xf32>
    %50 = vector.broadcast %49 : vector<1x128xf32> to vector<8x128xf32>
    %51 = arith.addf %48, %50 : vector<8x128xf32>
    %52 = arith.truncf %45 : vector<8x128xf32> to vector<8x128xbf16>
    %c0_23 = arith.constant 0 : index
    %c0_24 = arith.constant 0 : index
    %53 = vector.load %arg9[%c0_23, %c0_24] : memref<128x128xbf16, #tpu.memory_space<vmem>>, vector<128x128xbf16>
    %cst_25 = arith.constant dense<0.000000e+00> : vector<8x128xf32>
    %54 = tpu.matmul %52, %53, %cst_25 {dimension_numbers = #tpu.dot_dimension_numbers<[1], [0], [0], [1], [0, 0, 1, 1], [], []>} : vector<8x128xbf16>, vector<128x128xbf16>, vector<8x128xf32> -> vector<8x128xf32>
    %c0_26 = arith.constant 0 : index
    %c0_27 = arith.constant 0 : index
    %55 = vector.load %arg10[%c0_26, %c0_27] : memref<1x128xf32, #tpu.memory_space<vmem>>, vector<1x128xf32>
    %56 = vector.broadcast %55 : vector<1x128xf32> to vector<8x128xf32>
    %57 = arith.addf %54, %56 : vector<8x128xf32>
    %58 = arith.truncf %45 : vector<8x128xf32> to vector<8x128xbf16>
    %c0_28 = arith.constant 0 : index
    %c0_29 = arith.constant 0 : index
    %59 = vector.load %arg11[%c0_28, %c0_29] : memref<128x128xbf16, #tpu.memory_space<vmem>>, vector<128x128xbf16>
    %cst_30 = arith.constant dense<0.000000e+00> : vector<8x128xf32>
    %60 = tpu.matmul %58, %59, %cst_30 {dimension_numbers = #tpu.dot_dimension_numbers<[1], [0], [0], [1], [0, 0, 1, 1], [], []>} : vector<8x128xbf16>, vector<128x128xbf16>, vector<8x128xf32> -> vector<8x128xf32>
    %c0_31 = arith.constant 0 : index
    %c0_32 = arith.constant 0 : index
    %61 = vector.load %arg12[%c0_31, %c0_32] : memref<1x128xf32, #tpu.memory_space<vmem>>, vector<1x128xf32>
    %62 = vector.broadcast %61 : vector<1x128xf32> to vector<8x128xf32>
    %63 = arith.addf %60, %62 : vector<8x128xf32>
    %c0_33 = arith.constant 0 : index
    %c0_34 = arith.constant 0 : index
    %c0_35 = arith.constant 0 : index
    %64 = vector.load %arg4[%c0_33, %c0_34, %c0_35] : memref<1x1x8xf32, #tpu.memory_space<vmem>>, vector<1x1x8xf32>
    %65 = vector.shape_cast %64 : vector<1x1x8xf32> to vector<1x8xf32>
    %cst_36 = arith.constant 0.000000e+00 : f32
    %66 = vector.broadcast %cst_36 : f32 to vector<1x8xf32>
    %67 = arith.cmpf oeq, %65, %66 : vector<1x8xf32>
    %cst_37 = arith.constant -1.000000e+09 : f32
    %cst_38 = arith.constant 0.000000e+00 : f32
    %68 = vector.broadcast %cst_37 : f32 to vector<1x8xf32>
    %69 = vector.broadcast %cst_38 : f32 to vector<1x8xf32>
    %70 = arith.select %67, %68, %69 : vector<1x8xi1>, vector<1x8xf32>
    %71 = vector.shape_cast %70 : vector<1x8xf32> to vector<1x8xf32>
    %72 = vector.broadcast %71 : vector<1x8xf32> to vector<8x8xf32>
    %73 = arith.truncf %51 : vector<8x128xf32> to vector<8x128xbf16>
    %74 = vector.extract_strided_slice %73 {offsets = [0, 0], sizes = [8, 32], strides = [1, 1]} : vector<8x128xbf16> to vector<8x32xbf16>
    %75 = vector.extract_strided_slice %73 {offsets = [0, 32], sizes = [8, 32], strides = [1, 1]} : vector<8x128xbf16> to vector<8x32xbf16>
    %76 = vector.extract_strided_slice %73 {offsets = [0, 64], sizes = [8, 32], strides = [1, 1]} : vector<8x128xbf16> to vector<8x32xbf16>
    %77 = vector.extract_strided_slice %73 {offsets = [0, 96], sizes = [8, 32], strides = [1, 1]} : vector<8x128xbf16> to vector<8x32xbf16>
    %78 = vector.shape_cast %74 : vector<8x32xbf16> to vector<1x8x32xbf16>
    %79 = vector.shape_cast %75 : vector<8x32xbf16> to vector<1x8x32xbf16>
    %80 = vector.shape_cast %76 : vector<8x32xbf16> to vector<1x8x32xbf16>
    %81 = vector.shape_cast %77 : vector<8x32xbf16> to vector<1x8x32xbf16>
    %82 = tpu.concatenate %78, %79, %80, %81 in 0 : vector<1x8x32xbf16>, vector<1x8x32xbf16>, vector<1x8x32xbf16>, vector<1x8x32xbf16> -> vector<4x8x32xbf16>
    %83 = arith.truncf %57 : vector<8x128xf32> to vector<8x128xbf16>
    %84 = vector.extract_strided_slice %83 {offsets = [0, 0], sizes = [8, 32], strides = [1, 1]} : vector<8x128xbf16> to vector<8x32xbf16>
    %85 = vector.extract_strided_slice %83 {offsets = [0, 32], sizes = [8, 32], strides = [1, 1]} : vector<8x128xbf16> to vector<8x32xbf16>
    %86 = vector.extract_strided_slice %83 {offsets = [0, 64], sizes = [8, 32], strides = [1, 1]} : vector<8x128xbf16> to vector<8x32xbf16>
    %87 = vector.extract_strided_slice %83 {offsets = [0, 96], sizes = [8, 32], strides = [1, 1]} : vector<8x128xbf16> to vector<8x32xbf16>
    %88 = vector.shape_cast %84 : vector<8x32xbf16> to vector<1x8x32xbf16>
    %89 = vector.shape_cast %85 : vector<8x32xbf16> to vector<1x8x32xbf16>
    %90 = vector.shape_cast %86 : vector<8x32xbf16> to vector<1x8x32xbf16>
    %91 = vector.shape_cast %87 : vector<8x32xbf16> to vector<1x8x32xbf16>
    %92 = tpu.concatenate %88, %89, %90, %91 in 0 : vector<1x8x32xbf16>, vector<1x8x32xbf16>, vector<1x8x32xbf16>, vector<1x8x32xbf16> -> vector<4x8x32xbf16>
    %93 = arith.truncf %63 : vector<8x128xf32> to vector<8x128xbf16>
    %94 = vector.extract_strided_slice %93 {offsets = [0, 0], sizes = [8, 32], strides = [1, 1]} : vector<8x128xbf16> to vector<8x32xbf16>
    %95 = vector.extract_strided_slice %93 {offsets = [0, 32], sizes = [8, 32], strides = [1, 1]} : vector<8x128xbf16> to vector<8x32xbf16>
    %96 = vector.extract_strided_slice %93 {offsets = [0, 64], sizes = [8, 32], strides = [1, 1]} : vector<8x128xbf16> to vector<8x32xbf16>
    %97 = vector.extract_strided_slice %93 {offsets = [0, 96], sizes = [8, 32], strides = [1, 1]} : vector<8x128xbf16> to vector<8x32xbf16>
    %98 = vector.shape_cast %94 : vector<8x32xbf16> to vector<1x8x32xbf16>
    %99 = vector.shape_cast %95 : vector<8x32xbf16> to vector<1x8x32xbf16>
    %100 = vector.shape_cast %96 : vector<8x32xbf16> to vector<1x8x32xbf16>
    %101 = vector.shape_cast %97 : vector<8x32xbf16> to vector<1x8x32xbf16>
    %102 = tpu.concatenate %98, %99, %100, %101 in 0 : vector<1x8x32xbf16>, vector<1x8x32xbf16>, vector<1x8x32xbf16>, vector<1x8x32xbf16> -> vector<4x8x32xbf16>
    "tpu.trace_start"() <{level = 10 : i32, message = "hqd,hkd->hqk"}> : () -> ()
    %cst_39 = arith.constant dense<0.000000e+00> : vector<4x8x8xf32>
    %103 = tpu.matmul %82, %92, %cst_39 {dimension_numbers = #tpu.dot_dimension_numbers<[2], [2], [1], [1], [0, 0, 0, 1, 1, 1], [0], [0]>} : vector<4x8x32xbf16>, vector<4x8x32xbf16>, vector<4x8x8xf32> -> vector<4x8x8xf32>
    "tpu.trace_stop"() : () -> ()
    %cst_40 = arith.constant 0.176776692 : f32
    %104 = vector.broadcast %cst_40 : f32 to vector<4x8x8xf32>
    %105 = arith.mulf %103, %104 : vector<4x8x8xf32>
    %106 = vector.shape_cast %72 : vector<8x8xf32> to vector<1x8x8xf32>
    %107 = vector.broadcast %106 : vector<1x8x8xf32> to vector<4x8x8xf32>
    %108 = arith.addf %105, %107 : vector<4x8x8xf32>
    %cst_41 = arith.constant dense<0xFF800000> : vector<4x8xf32>
    %109 = vector.multi_reduction <maximumf>, %108, %cst_41 [2] : vector<4x8x8xf32> to vector<4x8xf32>
    %110 = vector.shape_cast %109 : vector<4x8xf32> to vector<4x8x1xf32>
    %111 = vector.broadcast %110 : vector<4x8x1xf32> to vector<4x8x8xf32>
    %112 = arith.subf %108, %111 : vector<4x8x8xf32>
    %113 = math.exp %112 : vector<4x8x8xf32>
    %cst_42 = arith.constant dense<0.000000e+00> : vector<4x8xf32>
    %114 = vector.multi_reduction <add>, %113, %cst_42 [2] : vector<4x8x8xf32> to vector<4x8xf32>
    %115 = vector.shape_cast %114 : vector<4x8xf32> to vector<4x8x1xf32>
    %116 = tpu.reciprocal %115 {approx = true} : vector<4x8x1xf32> -> vector<4x8x1xf32>
    %117 = vector.broadcast %116 : vector<4x8x1xf32> to vector<4x8x8xf32>
    %118 = arith.mulf %113, %117 : vector<4x8x8xf32>
    %119 = arith.truncf %118 : vector<4x8x8xf32> to vector<4x8x8xbf16>
    "tpu.trace_start"() <{level = 10 : i32, message = "hqk,hkd->hqd"}> : () -> ()
    %cst_43 = arith.constant dense<0.000000e+00> : vector<4x8x32xf32>
    %120 = tpu.matmul %119, %102, %cst_43 {dimension_numbers = #tpu.dot_dimension_numbers<[2], [1], [1], [2], [0, 0, 0, 1, 1, 2], [0], [0]>} : vector<4x8x8xbf16>, vector<4x8x32xbf16>, vector<4x8x32xf32> -> vector<4x8x32xf32>
    "tpu.trace_stop"() : () -> ()
    %121 = vector.extract_strided_slice %120 {offsets = [0, 0, 0], sizes = [1, 8, 32], strides = [1, 1, 1]} : vector<4x8x32xf32> to vector<1x8x32xf32>
    %122 = vector.shape_cast %121 : vector<1x8x32xf32> to vector<8x32xf32>
    %123 = vector.extract_strided_slice %120 {offsets = [1, 0, 0], sizes = [1, 8, 32], strides = [1, 1, 1]} : vector<4x8x32xf32> to vector<1x8x32xf32>
    %124 = vector.shape_cast %123 : vector<1x8x32xf32> to vector<8x32xf32>
    %125 = vector.extract_strided_slice %120 {offsets = [2, 0, 0], sizes = [1, 8, 32], strides = [1, 1, 1]} : vector<4x8x32xf32> to vector<1x8x32xf32>
    %126 = vector.shape_cast %125 : vector<1x8x32xf32> to vector<8x32xf32>
    %127 = vector.extract_strided_slice %120 {offsets = [3, 0, 0], sizes = [1, 8, 32], strides = [1, 1, 1]} : vector<4x8x32xf32> to vector<1x8x32xf32>
    %128 = vector.shape_cast %127 : vector<1x8x32xf32> to vector<8x32xf32>
    %129 = tpu.concatenate %122, %124, %126, %128 in 1 : vector<8x32xf32>, vector<8x32xf32>, vector<8x32xf32>, vector<8x32xf32> -> vector<8x128xf32>
    %130 = arith.truncf %129 : vector<8x128xf32> to vector<8x128xbf16>
    %c0_44 = arith.constant 0 : index
    %c0_45 = arith.constant 0 : index
    %131 = vector.load %arg13[%c0_44, %c0_45] : memref<128x128xbf16, #tpu.memory_space<vmem>>, vector<128x128xbf16>
    %cst_46 = arith.constant dense<0.000000e+00> : vector<8x128xf32>
    %132 = tpu.matmul %130, %131, %cst_46 {dimension_numbers = #tpu.dot_dimension_numbers<[1], [0], [0], [1], [0, 0, 1, 1], [], []>} : vector<8x128xbf16>, vector<128x128xbf16>, vector<8x128xf32> -> vector<8x128xf32>
    %c0_47 = arith.constant 0 : index
    %c0_48 = arith.constant 0 : index
    %133 = vector.load %arg14[%c0_47, %c0_48] : memref<1x128xf32, #tpu.memory_space<vmem>>, vector<1x128xf32>
    %134 = vector.broadcast %133 : vector<1x128xf32> to vector<8x128xf32>
    %135 = arith.addf %132, %134 : vector<8x128xf32>
    %136 = arith.addf %1, %135 : vector<8x128xf32>
    %c0_49 = arith.constant 0 : index
    %c0_50 = arith.constant 0 : index
    %c0_51 = arith.constant 0 : index
    %137 = vector.load %arg15[%c0_49, %c0_50, %c0_51] : memref<1x8x128xf32, #tpu.memory_space<vmem>>, vector<1x8x128xf32>
    %138 = vector.shape_cast %137 : vector<1x8x128xf32> to vector<8x128xf32>
    %139 = vector.shape_cast %136 : vector<8x128xf32> to vector<1x8x128xf32>
    tpu.vector_store %arg15[%c0_49, %c0_50, %c0_51], %139 {strides = array<i32>} : memref<1x8x128xf32, #tpu.memory_space<vmem>>, vector<1x8x128xf32>,
    return
  }
  func.func @transform_0(%arg0: i32, %arg1: i32) -> (i32, i32, i32) {
    %c0_i32 = arith.constant 0 : i32
    %c0_i32_0 = arith.constant 0 : i32
    return %arg0, %arg1, %c0_i32 : i32, i32, i32
  }
  func.func @transform_1(%arg0: i32, %arg1: i32) -> (i32, i32, i32) {
    %c0_i32 = arith.constant 0 : i32
    %c0_i32_0 = arith.constant 0 : i32
    %c0_i32_1 = arith.constant 0 : i32
    return %arg0, %c0_i32, %c0_i32_0 : i32, i32, i32
  }
  func.func @transform_2(%arg0: i32, %arg1: i32) -> (i32, i32, i32) {
    %c0_i32 = arith.constant 0 : i32
    %c0_i32_0 = arith.constant 0 : i32
    %c0_i32_1 = arith.constant 0 : i32
    return %arg0, %c0_i32, %c0_i32_0 : i32, i32, i32
  }
  func.func @transform_3(%arg0: i32, %arg1: i32) -> (i32, i32) {
    %c0_i32 = arith.constant 0 : i32
    %c0_i32_0 = arith.constant 0 : i32
    %c0_i32_1 = arith.constant 0 : i32
    return %c0_i32, %c0_i32_0 : i32, i32
  }
  func.func @transform_4(%arg0: i32, %arg1: i32) -> (i32, i32) {
    %c0_i32 = arith.constant 0 : i32
    %c0_i32_0 = arith.constant 0 : i32
    %c0_i32_1 = arith.constant 0 : i32
    return %c0_i32, %c0_i32_0 : i32, i32
  }
  func.func @transform_5(%arg0: i32, %arg1: i32) -> (i32, i32) {
    %c0_i32 = arith.constant 0 : i32
    %c0_i32_0 = arith.constant 0 : i32
    %c0_i32_1 = arith.constant 0 : i32
    return %c0_i32, %c0_i32_0 : i32, i32
  }
  func.func @transform_6(%arg0: i32, %arg1: i32) -> (i32, i32) {
    %c0_i32 = arith.constant 0 : i32
    %c0_i32_0 = arith.constant 0 : i32
    %c0_i32_1 = arith.constant 0 : i32
    return %c0_i32, %c0_i32_0 : i32, i32
  }
  func.func @transform_7(%arg0: i32, %arg1: i32) -> (i32, i32) {
    %c0_i32 = arith.constant 0 : i32
    %c0_i32_0 = arith.constant 0 : i32
    %c0_i32_1 = arith.constant 0 : i32
    return %c0_i32, %c0_i32_0 : i32, i32
  }
  func.func @transform_8(%arg0: i32, %arg1: i32) -> (i32, i32) {
    %c0_i32 = arith.constant 0 : i32
    %c0_i32_0 = arith.constant 0 : i32
    %c0_i32_1 = arith.constant 0 : i32
    return %c0_i32, %c0_i32_0 : i32, i32
  }
  func.func @transform_9(%arg0: i32, %arg1: i32) -> (i32, i32) {
    %c0_i32 = arith.constant 0 : i32
    %c0_i32_0 = arith.constant 0 : i32
    %c0_i32_1 = arith.constant 0 : i32
    return %c0_i32, %c0_i32_0 : i32, i32
  }
  func.func @transform_10(%arg0: i32, %arg1: i32) -> (i32, i32) {
    %c0_i32 = arith.constant 0 : i32
    %c0_i32_0 = arith.constant 0 : i32
    %c0_i32_1 = arith.constant 0 : i32
    return %c0_i32, %c0_i32_0 : i32, i32
  }
  func.func @transform_11(%arg0: i32, %arg1: i32) -> (i32, i32) {
    %c0_i32 = arith.constant 0 : i32
    %c0_i32_0 = arith.constant 0 : i32
    %c0_i32_1 = arith.constant 0 : i32
    return %c0_i32, %c0_i32_0 : i32, i32
  }
  func.func @transform_12(%arg0: i32, %arg1: i32) -> (i32, i32) {
    %c0_i32 = arith.constant 0 : i32
    %c0_i32_0 = arith.constant 0 : i32
    %c0_i32_1 = arith.constant 0 : i32
    return %c0_i32, %c0_i32_0 : i32, i32
  }
  func.func @transform_13(%arg0: i32, %arg1: i32) -> (i32, i32, i32) {
    %c0_i32 = arith.constant 0 : i32
    %c0_i32_0 = arith.constant 0 : i32
    return %arg0, %arg1, %c0_i32 : i32, i32, i32
  }
}

module attributes {stable_mosaic.version = 11 : i64} {
  func.func @_ln_ffn_kernel(%arg0: i32, %arg1: i32, %arg2: memref<16x128xf32, #tpu.memory_space<vmem>>, %arg3: memref<1x128xf32, #tpu.memory_space<vmem>>, %arg4: memref<1x128xf32, #tpu.memory_space<vmem>>, %arg5: memref<128x512xbf16, #tpu.memory_space<vmem>>, %arg6: memref<1x512xf32, #tpu.memory_space<vmem>>, %arg7: memref<512x128xbf16, #tpu.memory_space<vmem>>, %arg8: memref<1x128xf32, #tpu.memory_space<vmem>>, %arg9: memref<1x128xf32, #tpu.memory_space<vmem>>, %arg10: memref<1x128xf32, #tpu.memory_space<vmem>>, %arg11: memref<16x128xf32, #tpu.memory_space<vmem>>, %arg12: memref<16x128xf32, #tpu.memory_space<vmem>>) attributes {dimension_semantics = [#tpu.dimension_semantics<parallel>, #tpu.dimension_semantics<arbitrary>], iteration_bounds = array<i64: 1, 1>, scalar_prefetch = 0 : i64, scratch_operands = 1 : i64, tpu.core_type = #tpu.core_type<tc>, window_params = [{transform_indices = @transform_0, window_bounds = array<i64: 16, 128>}, {pipeline_mode = #tpu.pipeline_mode<synchronous>, transform_indices = @transform_1, window_bounds = array<i64: 1, 128>}, {pipeline_mode = #tpu.pipeline_mode<synchronous>, transform_indices = @transform_2, window_bounds = array<i64: 1, 128>}, {transform_indices = @transform_3, window_bounds = array<i64: 128, 512>}, {transform_indices = @transform_4, window_bounds = array<i64: 1, 512>}, {transform_indices = @transform_5, window_bounds = array<i64: 512, 128>}, {pipeline_mode = #tpu.pipeline_mode<synchronous>, transform_indices = @transform_6, window_bounds = array<i64: 1, 128>}, {pipeline_mode = #tpu.pipeline_mode<synchronous>, transform_indices = @transform_7, window_bounds = array<i64: 1, 128>}, {pipeline_mode = #tpu.pipeline_mode<synchronous>, transform_indices = @transform_8, window_bounds = array<i64: 1, 128>}, {transform_indices = @transform_9, window_bounds = array<i64: 16, 128>}]} {
    %c0 = arith.constant 0 : index
    %c0_0 = arith.constant 0 : index
    %0 = vector.load %arg2[%c0, %c0_0] : memref<16x128xf32, #tpu.memory_space<vmem>>, vector<16x128xf32>
    %c0_1 = arith.constant 0 : index
    %c0_2 = arith.constant 0 : index
    %1 = vector.load %arg3[%c0_1, %c0_2] : memref<1x128xf32, #tpu.memory_space<vmem>>, vector<1x128xf32>
    %c0_3 = arith.constant 0 : index
    %c0_4 = arith.constant 0 : index
    %2 = vector.load %arg4[%c0_3, %c0_4] : memref<1x128xf32, #tpu.memory_space<vmem>>, vector<1x128xf32>
    %cst = arith.constant dense<0.000000e+00> : vector<16xf32>
    %3 = vector.multi_reduction <add>, %0, %cst [1] : vector<16x128xf32> to vector<16xf32>
    %4 = vector.shape_cast %3 : vector<16xf32> to vector<16x1xf32>
    %cst_5 = arith.constant 1.280000e+02 : f32
    %5 = vector.broadcast %cst_5 : f32 to vector<16x1xf32>
    %6 = arith.divf %4, %5 : vector<16x1xf32>
    %7 = vector.broadcast %6 : vector<16x1xf32> to vector<16x128xf32>
    %8 = arith.subf %0, %7 : vector<16x128xf32>
    %9 = arith.mulf %8, %8 : vector<16x128xf32>
    %cst_6 = arith.constant dense<0.000000e+00> : vector<16xf32>
    %10 = vector.multi_reduction <add>, %9, %cst_6 [1] : vector<16x128xf32> to vector<16xf32>
    %11 = vector.shape_cast %10 : vector<16xf32> to vector<16x1xf32>
    %cst_7 = arith.constant 1.280000e+02 : f32
    %12 = vector.broadcast %cst_7 : f32 to vector<16x1xf32>
    %13 = arith.divf %11, %12 : vector<16x1xf32>
    %cst_8 = arith.constant 9.99999974E-6 : f32
    %14 = vector.broadcast %cst_8 : f32 to vector<16x1xf32>
    %15 = arith.addf %13, %14 : vector<16x1xf32>
    %16 = math.rsqrt %15 : vector<16x1xf32>
    %17 = vector.broadcast %16 : vector<16x1xf32> to vector<16x128xf32>
    %18 = arith.mulf %8, %17 : vector<16x128xf32>
    %19 = vector.broadcast %1 : vector<1x128xf32> to vector<16x128xf32>
    %20 = arith.mulf %18, %19 : vector<16x128xf32>
    %21 = vector.broadcast %2 : vector<1x128xf32> to vector<16x128xf32>
    %22 = arith.addf %20, %21 : vector<16x128xf32>
    %23 = arith.truncf %22 : vector<16x128xf32> to vector<16x128xbf16>
    %c0_9 = arith.constant 0 : index
    %c0_10 = arith.constant 0 : index
    %24 = vector.load %arg5[%c0_9, %c0_10] : memref<128x512xbf16, #tpu.memory_space<vmem>>, vector<128x512xbf16>
    %cst_11 = arith.constant dense<0.000000e+00> : vector<16x512xf32>
    %25 = tpu.matmul %23, %24, %cst_11 {dimension_numbers = #tpu.dot_dimension_numbers<[1], [0], [0], [1], [0, 0, 1, 1], [], []>} : vector<16x128xbf16>, vector<128x512xbf16>, vector<16x512xf32> -> vector<16x512xf32>
    %c0_12 = arith.constant 0 : index
    %c0_13 = arith.constant 0 : index
    %26 = vector.load %arg6[%c0_12, %c0_13] : memref<1x512xf32, #tpu.memory_space<vmem>>, vector<1x512xf32>
    %27 = vector.broadcast %26 : vector<1x512xf32> to vector<16x512xf32>
    %28 = arith.addf %25, %27 : vector<16x512xf32>
    %cst_14 = arith.constant 0.000000e+00 : f32
    %29 = vector.broadcast %cst_14 : f32 to vector<16x512xf32>
    %30 = arith.maximumf %28, %29 : vector<16x512xf32>
    %31 = arith.truncf %30 : vector<16x512xf32> to vector<16x512xbf16>
    %c0_15 = arith.constant 0 : index
    %c0_16 = arith.constant 0 : index
    %32 = vector.load %arg7[%c0_15, %c0_16] : memref<512x128xbf16, #tpu.memory_space<vmem>>, vector<512x128xbf16>
    %cst_17 = arith.constant dense<0.000000e+00> : vector<16x128xf32>
    %33 = tpu.matmul %31, %32, %cst_17 {dimension_numbers = #tpu.dot_dimension_numbers<[1], [0], [0], [1], [0, 0, 1, 1], [], []>} : vector<16x512xbf16>, vector<512x128xbf16>, vector<16x128xf32> -> vector<16x128xf32>
    %c0_i32 = arith.constant 0 : i32
    %34 = arith.cmpi eq, %arg1, %c0_i32 : i32
    %35 = arith.extui %34 : i1 to i32
    %c0_i32_18 = arith.constant 0 : i32
    %36 = arith.cmpi ne, %35, %c0_i32_18 : i32
    scf.if %36 {
      %cst_25 = arith.constant 0.000000e+00 : f32
      %43 = vector.broadcast %cst_25 : f32 to vector<16x128xf32>
      %c0_26 = arith.constant 0 : index
      %c0_27 = arith.constant 0 : index
      %44 = vector.load %arg12[%c0_26, %c0_27] : memref<16x128xf32, #tpu.memory_space<vmem>>, vector<16x128xf32>
      tpu.vector_store %arg12[%c0_26, %c0_27], %43 {strides = array<i32>} : memref<16x128xf32, #tpu.memory_space<vmem>>, vector<16x128xf32>,
    } else {
    }
    %c0_19 = arith.constant 0 : index
    %c0_20 = arith.constant 0 : index
    %37 = vector.load %arg12[%c0_19, %c0_20] : memref<16x128xf32, #tpu.memory_space<vmem>>, vector<16x128xf32>
    %38 = arith.addf %37, %33 : vector<16x128xf32>
    %c0_21 = arith.constant 0 : index
    %c0_22 = arith.constant 0 : index
    %39 = vector.load %arg12[%c0_21, %c0_22] : memref<16x128xf32, #tpu.memory_space<vmem>>, vector<16x128xf32>
    tpu.vector_store %arg12[%c0_21, %c0_22], %38 {strides = array<i32>} : memref<16x128xf32, #tpu.memory_space<vmem>>, vector<16x128xf32>,
    %c0_i32_23 = arith.constant 0 : i32
    %40 = arith.cmpi eq, %arg1, %c0_i32_23 : i32
    %41 = arith.extui %40 : i1 to i32
    %c0_i32_24 = arith.constant 0 : i32
    %42 = arith.cmpi ne, %41, %c0_i32_24 : i32
    scf.if %42 {
      %c0_25 = arith.constant 0 : index
      %c0_26 = arith.constant 0 : index
      %43 = vector.load %arg12[%c0_25, %c0_26] : memref<16x128xf32, #tpu.memory_space<vmem>>, vector<16x128xf32>
      %44 = arith.addf %0, %43 : vector<16x128xf32>
      %c0_27 = arith.constant 0 : index
      %c0_28 = arith.constant 0 : index
      %45 = vector.load %arg8[%c0_27, %c0_28] : memref<1x128xf32, #tpu.memory_space<vmem>>, vector<1x128xf32>
      %46 = vector.broadcast %45 : vector<1x128xf32> to vector<16x128xf32>
      %47 = arith.addf %44, %46 : vector<16x128xf32>
      %c0_29 = arith.constant 0 : index
      %c0_30 = arith.constant 0 : index
      %48 = vector.load %arg9[%c0_29, %c0_30] : memref<1x128xf32, #tpu.memory_space<vmem>>, vector<1x128xf32>
      %c0_31 = arith.constant 0 : index
      %c0_32 = arith.constant 0 : index
      %49 = vector.load %arg10[%c0_31, %c0_32] : memref<1x128xf32, #tpu.memory_space<vmem>>, vector<1x128xf32>
      %cst_33 = arith.constant dense<0.000000e+00> : vector<16xf32>
      %50 = vector.multi_reduction <add>, %47, %cst_33 [1] : vector<16x128xf32> to vector<16xf32>
      %51 = vector.shape_cast %50 : vector<16xf32> to vector<16x1xf32>
      %cst_34 = arith.constant 1.280000e+02 : f32
      %52 = vector.broadcast %cst_34 : f32 to vector<16x1xf32>
      %53 = arith.divf %51, %52 : vector<16x1xf32>
      %54 = vector.broadcast %53 : vector<16x1xf32> to vector<16x128xf32>
      %55 = arith.subf %47, %54 : vector<16x128xf32>
      %56 = arith.mulf %55, %55 : vector<16x128xf32>
      %cst_35 = arith.constant dense<0.000000e+00> : vector<16xf32>
      %57 = vector.multi_reduction <add>, %56, %cst_35 [1] : vector<16x128xf32> to vector<16xf32>
      %58 = vector.shape_cast %57 : vector<16xf32> to vector<16x1xf32>
      %cst_36 = arith.constant 1.280000e+02 : f32
      %59 = vector.broadcast %cst_36 : f32 to vector<16x1xf32>
      %60 = arith.divf %58, %59 : vector<16x1xf32>
      %cst_37 = arith.constant 9.99999974E-6 : f32
      %61 = vector.broadcast %cst_37 : f32 to vector<16x1xf32>
      %62 = arith.addf %60, %61 : vector<16x1xf32>
      %63 = math.rsqrt %62 : vector<16x1xf32>
      %64 = vector.broadcast %63 : vector<16x1xf32> to vector<16x128xf32>
      %65 = arith.mulf %55, %64 : vector<16x128xf32>
      %66 = vector.broadcast %48 : vector<1x128xf32> to vector<16x128xf32>
      %67 = arith.mulf %65, %66 : vector<16x128xf32>
      %68 = vector.broadcast %49 : vector<1x128xf32> to vector<16x128xf32>
      %69 = arith.addf %67, %68 : vector<16x128xf32>
      %c0_38 = arith.constant 0 : index
      %c0_39 = arith.constant 0 : index
      %70 = vector.load %arg11[%c0_38, %c0_39] : memref<16x128xf32, #tpu.memory_space<vmem>>, vector<16x128xf32>
      tpu.vector_store %arg11[%c0_38, %c0_39], %69 {strides = array<i32>} : memref<16x128xf32, #tpu.memory_space<vmem>>, vector<16x128xf32>,
    } else {
    }
    return
  }
  func.func @transform_0(%arg0: i32, %arg1: i32) -> (i32, i32) {
    %c0_i32 = arith.constant 0 : i32
    %c0_i32_0 = arith.constant 0 : i32
    return %arg0, %c0_i32 : i32, i32
  }
  func.func @transform_1(%arg0: i32, %arg1: i32) -> (i32, i32) {
    %c0_i32 = arith.constant 0 : i32
    %c0_i32_0 = arith.constant 0 : i32
    %c0_i32_1 = arith.constant 0 : i32
    return %c0_i32, %c0_i32_0 : i32, i32
  }
  func.func @transform_2(%arg0: i32, %arg1: i32) -> (i32, i32) {
    %c0_i32 = arith.constant 0 : i32
    %c0_i32_0 = arith.constant 0 : i32
    %c0_i32_1 = arith.constant 0 : i32
    return %c0_i32, %c0_i32_0 : i32, i32
  }
  func.func @transform_3(%arg0: i32, %arg1: i32) -> (i32, i32) {
    %c0_i32 = arith.constant 0 : i32
    %c0_i32_0 = arith.constant 0 : i32
    return %c0_i32, %arg1 : i32, i32
  }
  func.func @transform_4(%arg0: i32, %arg1: i32) -> (i32, i32) {
    %c0_i32 = arith.constant 0 : i32
    %c0_i32_0 = arith.constant 0 : i32
    return %c0_i32, %arg1 : i32, i32
  }
  func.func @transform_5(%arg0: i32, %arg1: i32) -> (i32, i32) {
    %c0_i32 = arith.constant 0 : i32
    %c0_i32_0 = arith.constant 0 : i32
    return %arg1, %c0_i32 : i32, i32
  }
  func.func @transform_6(%arg0: i32, %arg1: i32) -> (i32, i32) {
    %c0_i32 = arith.constant 0 : i32
    %c0_i32_0 = arith.constant 0 : i32
    %c0_i32_1 = arith.constant 0 : i32
    return %c0_i32, %c0_i32_0 : i32, i32
  }
  func.func @transform_7(%arg0: i32, %arg1: i32) -> (i32, i32) {
    %c0_i32 = arith.constant 0 : i32
    %c0_i32_0 = arith.constant 0 : i32
    %c0_i32_1 = arith.constant 0 : i32
    return %c0_i32, %c0_i32_0 : i32, i32
  }
  func.func @transform_8(%arg0: i32, %arg1: i32) -> (i32, i32) {
    %c0_i32 = arith.constant 0 : i32
    %c0_i32_0 = arith.constant 0 : i32
    %c0_i32_1 = arith.constant 0 : i32
    return %c0_i32, %c0_i32_0 : i32, i32
  }
  func.func @transform_9(%arg0: i32, %arg1: i32) -> (i32, i32) {
    %c0_i32 = arith.constant 0 : i32
    %c0_i32_0 = arith.constant 0 : i32
    return %arg0, %c0_i32 : i32, i32
  }
}

module attributes {stable_mosaic.version = 11 : i64} {
  func.func @_mha_block_kernel(%arg0: i32, %arg1: i32, %arg2: memref<1x8x128xf32, #tpu.memory_space<vmem>>, %arg3: memref<1x8x128xf32, #tpu.memory_space<vmem>>, %arg4: memref<1x1x8xf32, #tpu.memory_space<vmem>>, %arg5: memref<1x128xf32, #tpu.memory_space<vmem>>, %arg6: memref<1x128xf32, #tpu.memory_space<vmem>>, %arg7: memref<128x128xbf16, #tpu.memory_space<vmem>>, %arg8: memref<1x128xf32, #tpu.memory_space<vmem>>, %arg9: memref<128x128xbf16, #tpu.memory_space<vmem>>, %arg10: memref<1x128xf32, #tpu.memory_space<vmem>>, %arg11: memref<128x128xbf16, #tpu.memory_space<vmem>>, %arg12: memref<1x128xf32, #tpu.memory_space<vmem>>, %arg13: memref<128x128xbf16, #tpu.memory_space<vmem>>, %arg14: memref<1x128xf32, #tpu.memory_space<vmem>>, %arg15: memref<1x8x128xf32, #tpu.memory_space<vmem>>) attributes {dimension_semantics = [#tpu.dimension_semantics<parallel>, #tpu.dimension_semantics<parallel>], iteration_bounds = array<i64: 2, 1>, scalar_prefetch = 0 : i64, scratch_operands = 0 : i64, tpu.core_type = #tpu.core_type<tc>, window_params = [{transform_indices = @transform_0, window_bounds = array<i64: 1, 8, 128>}, {transform_indices = @transform_1, window_bounds = array<i64: 1, 8, 128>}, {transform_indices = @transform_2, window_bounds = array<i64: 1, 1, 8>}, {pipeline_mode = #tpu.pipeline_mode<synchronous>, transform_indices = @transform_3, window_bounds = array<i64: 1, 128>}, {pipeline_mode = #tpu.pipeline_mode<synchronous>, transform_indices = @transform_4, window_bounds = array<i64: 1, 128>}, {pipeline_mode = #tpu.pipeline_mode<synchronous>, transform_indices = @transform_5, window_bounds = array<i64: 128, 128>}, {pipeline_mode = #tpu.pipeline_mode<synchronous>, transform_indices = @transform_6, window_bounds = array<i64: 1, 128>}, {pipeline_mode = #tpu.pipeline_mode<synchronous>, transform_indices = @transform_7, window_bounds = array<i64: 128, 128>}, {pipeline_mode = #tpu.pipeline_mode<synchronous>, transform_indices = @transform_8, window_bounds = array<i64: 1, 128>}, {pipeline_mode = #tpu.pipeline_mode<synchronous>, transform_indices = @transform_9, window_bounds = array<i64: 128, 128>}, {pipeline_mode = #tpu.pipeline_mode<synchronous>, transform_indices = @transform_10, window_bounds = array<i64: 1, 128>}, {pipeline_mode = #tpu.pipeline_mode<synchronous>, transform_indices = @transform_11, window_bounds = array<i64: 128, 128>}, {pipeline_mode = #tpu.pipeline_mode<synchronous>, transform_indices = @transform_12, window_bounds = array<i64: 1, 128>}, {transform_indices = @transform_13, window_bounds = array<i64: 1, 8, 128>}]} {
    %c0 = arith.constant 0 : index
    %c0_0 = arith.constant 0 : index
    %c0_1 = arith.constant 0 : index
    %0 = vector.load %arg2[%c0, %c0_0, %c0_1] : memref<1x8x128xf32, #tpu.memory_space<vmem>>, vector<1x8x128xf32>
    %1 = vector.shape_cast %0 : vector<1x8x128xf32> to vector<8x128xf32>
    %c0_2 = arith.constant 0 : index
    %c0_3 = arith.constant 0 : index
    %c0_4 = arith.constant 0 : index
    %2 = vector.load %arg3[%c0_2, %c0_3, %c0_4] : memref<1x8x128xf32, #tpu.memory_space<vmem>>, vector<1x8x128xf32>
    %3 = vector.shape_cast %2 : vector<1x8x128xf32> to vector<8x128xf32>
    %c0_5 = arith.constant 0 : index
    %c0_6 = arith.constant 0 : index
    %4 = vector.load %arg5[%c0_5, %c0_6] : memref<1x128xf32, #tpu.memory_space<vmem>>, vector<1x128xf32>
    %c0_7 = arith.constant 0 : index
    %c0_8 = arith.constant 0 : index
    %5 = vector.load %arg6[%c0_7, %c0_8] : memref<1x128xf32, #tpu.memory_space<vmem>>, vector<1x128xf32>
    %cst = arith.constant dense<0.000000e+00> : vector<8xf32>
    %6 = vector.multi_reduction <add>, %1, %cst [1] : vector<8x128xf32> to vector<8xf32>
    %7 = vector.shape_cast %6 : vector<8xf32> to vector<8x1xf32>
    %cst_9 = arith.constant 1.280000e+02 : f32
    %8 = vector.broadcast %cst_9 : f32 to vector<8x1xf32>
    %9 = arith.divf %7, %8 : vector<8x1xf32>
    %10 = vector.broadcast %9 : vector<8x1xf32> to vector<8x128xf32>
    %11 = arith.subf %1, %10 : vector<8x128xf32>
    %12 = arith.mulf %11, %11 : vector<8x128xf32>
    %cst_10 = arith.constant dense<0.000000e+00> : vector<8xf32>
    %13 = vector.multi_reduction <add>, %12, %cst_10 [1] : vector<8x128xf32> to vector<8xf32>
    %14 = vector.shape_cast %13 : vector<8xf32> to vector<8x1xf32>
    %cst_11 = arith.constant 1.280000e+02 : f32
    %15 = vector.broadcast %cst_11 : f32 to vector<8x1xf32>
    %16 = arith.divf %14, %15 : vector<8x1xf32>
    %cst_12 = arith.constant 9.99999974E-6 : f32
    %17 = vector.broadcast %cst_12 : f32 to vector<8x1xf32>
    %18 = arith.addf %16, %17 : vector<8x1xf32>
    %19 = math.rsqrt %18 : vector<8x1xf32>
    %20 = vector.broadcast %19 : vector<8x1xf32> to vector<8x128xf32>
    %21 = arith.mulf %11, %20 : vector<8x128xf32>
    %22 = vector.broadcast %4 : vector<1x128xf32> to vector<8x128xf32>
    %23 = arith.mulf %21, %22 : vector<8x128xf32>
    %24 = vector.broadcast %5 : vector<1x128xf32> to vector<8x128xf32>
    %25 = arith.addf %23, %24 : vector<8x128xf32>
    %cst_13 = arith.constant dense<0.000000e+00> : vector<8xf32>
    %26 = vector.multi_reduction <add>, %3, %cst_13 [1] : vector<8x128xf32> to vector<8xf32>
    %27 = vector.shape_cast %26 : vector<8xf32> to vector<8x1xf32>
    %cst_14 = arith.constant 1.280000e+02 : f32
    %28 = vector.broadcast %cst_14 : f32 to vector<8x1xf32>
    %29 = arith.divf %27, %28 : vector<8x1xf32>
    %30 = vector.broadcast %29 : vector<8x1xf32> to vector<8x128xf32>
    %31 = arith.subf %3, %30 : vector<8x128xf32>
    %32 = arith.mulf %31, %31 : vector<8x128xf32>
    %cst_15 = arith.constant dense<0.000000e+00> : vector<8xf32>
    %33 = vector.multi_reduction <add>, %32, %cst_15 [1] : vector<8x128xf32> to vector<8xf32>
    %34 = vector.shape_cast %33 : vector<8xf32> to vector<8x1xf32>
    %cst_16 = arith.constant 1.280000e+02 : f32
    %35 = vector.broadcast %cst_16 : f32 to vector<8x1xf32>
    %36 = arith.divf %34, %35 : vector<8x1xf32>
    %cst_17 = arith.constant 9.99999974E-6 : f32
    %37 = vector.broadcast %cst_17 : f32 to vector<8x1xf32>
    %38 = arith.addf %36, %37 : vector<8x1xf32>
    %39 = math.rsqrt %38 : vector<8x1xf32>
    %40 = vector.broadcast %39 : vector<8x1xf32> to vector<8x128xf32>
    %41 = arith.mulf %31, %40 : vector<8x128xf32>
    %42 = vector.broadcast %4 : vector<1x128xf32> to vector<8x128xf32>
    %43 = arith.mulf %41, %42 : vector<8x128xf32>
    %44 = vector.broadcast %5 : vector<1x128xf32> to vector<8x128xf32>
    %45 = arith.addf %43, %44 : vector<8x128xf32>
    %46 = arith.truncf %25 : vector<8x128xf32> to vector<8x128xbf16>
    %c0_18 = arith.constant 0 : index
    %c0_19 = arith.constant 0 : index
    %47 = vector.load %arg7[%c0_18, %c0_19] : memref<128x128xbf16, #tpu.memory_space<vmem>>, vector<128x128xbf16>
    %cst_20 = arith.constant dense<0.000000e+00> : vector<8x128xf32>
    %48 = tpu.matmul %46, %47, %cst_20 {dimension_numbers = #tpu.dot_dimension_numbers<[1], [0], [0], [1], [0, 0, 1, 1], [], []>} : vector<8x128xbf16>, vector<128x128xbf16>, vector<8x128xf32> -> vector<8x128xf32>
    %c0_21 = arith.constant 0 : index
    %c0_22 = arith.constant 0 : index
    %49 = vector.load %arg8[%c0_21, %c0_22] : memref<1x128xf32, #tpu.memory_space<vmem>>, vector<1x128xf32>
    %50 = vector.broadcast %49 : vector<1x128xf32> to vector<8x128xf32>
    %51 = arith.addf %48, %50 : vector<8x128xf32>
    %52 = arith.truncf %45 : vector<8x128xf32> to vector<8x128xbf16>
    %c0_23 = arith.constant 0 : index
    %c0_24 = arith.constant 0 : index
    %53 = vector.load %arg9[%c0_23, %c0_24] : memref<128x128xbf16, #tpu.memory_space<vmem>>, vector<128x128xbf16>
    %cst_25 = arith.constant dense<0.000000e+00> : vector<8x128xf32>
    %54 = tpu.matmul %52, %53, %cst_25 {dimension_numbers = #tpu.dot_dimension_numbers<[1], [0], [0], [1], [0, 0, 1, 1], [], []>} : vector<8x128xbf16>, vector<128x128xbf16>, vector<8x128xf32> -> vector<8x128xf32>
    %c0_26 = arith.constant 0 : index
    %c0_27 = arith.constant 0 : index
    %55 = vector.load %arg10[%c0_26, %c0_27] : memref<1x128xf32, #tpu.memory_space<vmem>>, vector<1x128xf32>
    %56 = vector.broadcast %55 : vector<1x128xf32> to vector<8x128xf32>
    %57 = arith.addf %54, %56 : vector<8x128xf32>
    %58 = arith.truncf %45 : vector<8x128xf32> to vector<8x128xbf16>
    %c0_28 = arith.constant 0 : index
    %c0_29 = arith.constant 0 : index
    %59 = vector.load %arg11[%c0_28, %c0_29] : memref<128x128xbf16, #tpu.memory_space<vmem>>, vector<128x128xbf16>
    %cst_30 = arith.constant dense<0.000000e+00> : vector<8x128xf32>
    %60 = tpu.matmul %58, %59, %cst_30 {dimension_numbers = #tpu.dot_dimension_numbers<[1], [0], [0], [1], [0, 0, 1, 1], [], []>} : vector<8x128xbf16>, vector<128x128xbf16>, vector<8x128xf32> -> vector<8x128xf32>
    %c0_31 = arith.constant 0 : index
    %c0_32 = arith.constant 0 : index
    %61 = vector.load %arg12[%c0_31, %c0_32] : memref<1x128xf32, #tpu.memory_space<vmem>>, vector<1x128xf32>
    %62 = vector.broadcast %61 : vector<1x128xf32> to vector<8x128xf32>
    %63 = arith.addf %60, %62 : vector<8x128xf32>
    %c0_33 = arith.constant 0 : index
    %c0_34 = arith.constant 0 : index
    %c0_35 = arith.constant 0 : index
    %64 = vector.load %arg4[%c0_33, %c0_34, %c0_35] : memref<1x1x8xf32, #tpu.memory_space<vmem>>, vector<1x1x8xf32>
    %65 = vector.shape_cast %64 : vector<1x1x8xf32> to vector<1x8xf32>
    %cst_36 = arith.constant 0.000000e+00 : f32
    %66 = vector.broadcast %cst_36 : f32 to vector<1x8xf32>
    %67 = arith.cmpf oeq, %65, %66 : vector<1x8xf32>
    %cst_37 = arith.constant -1.000000e+09 : f32
    %cst_38 = arith.constant 0.000000e+00 : f32
    %68 = vector.broadcast %cst_37 : f32 to vector<1x8xf32>
    %69 = vector.broadcast %cst_38 : f32 to vector<1x8xf32>
    %70 = arith.select %67, %68, %69 : vector<1x8xi1>, vector<1x8xf32>
    %71 = vector.shape_cast %70 : vector<1x8xf32> to vector<1x8xf32>
    %72 = vector.broadcast %71 : vector<1x8xf32> to vector<8x8xf32>
    %c8_i32 = arith.constant 8 : i32
    %73 = arith.muli %arg1, %c8_i32 : i32
    %74 = tpu.iota {dimensions = array<i32: 0>} : vector<8x8xi32>
    %75 = vector.broadcast %73 : i32 to vector<8x8xi32>
    %76 = arith.addi %74, %75 : vector<8x8xi32>
    %77 = tpu.iota {dimensions = array<i32: 1>} : vector<8x8xi32>
    %78 = arith.cmpi sge, %76, %77 : vector<8x8xi32>
    %cst_39 = arith.constant -1.000000e+09 : f32
    %79 = vector.broadcast %cst_39 : f32 to vector<8x8xf32>
    %80 = arith.select %78, %72, %79 : vector<8x8xi1>, vector<8x8xf32>
    %81 = arith.truncf %51 : vector<8x128xf32> to vector<8x128xbf16>
    %82 = vector.extract_strided_slice %81 {offsets = [0, 0], sizes = [8, 32], strides = [1, 1]} : vector<8x128xbf16> to vector<8x32xbf16>
    %83 = vector.extract_strided_slice %81 {offsets = [0, 32], sizes = [8, 32], strides = [1, 1]} : vector<8x128xbf16> to vector<8x32xbf16>
    %84 = vector.extract_strided_slice %81 {offsets = [0, 64], sizes = [8, 32], strides = [1, 1]} : vector<8x128xbf16> to vector<8x32xbf16>
    %85 = vector.extract_strided_slice %81 {offsets = [0, 96], sizes = [8, 32], strides = [1, 1]} : vector<8x128xbf16> to vector<8x32xbf16>
    %86 = vector.shape_cast %82 : vector<8x32xbf16> to vector<1x8x32xbf16>
    %87 = vector.shape_cast %83 : vector<8x32xbf16> to vector<1x8x32xbf16>
    %88 = vector.shape_cast %84 : vector<8x32xbf16> to vector<1x8x32xbf16>
    %89 = vector.shape_cast %85 : vector<8x32xbf16> to vector<1x8x32xbf16>
    %90 = tpu.concatenate %86, %87, %88, %89 in 0 : vector<1x8x32xbf16>, vector<1x8x32xbf16>, vector<1x8x32xbf16>, vector<1x8x32xbf16> -> vector<4x8x32xbf16>
    %91 = arith.truncf %57 : vector<8x128xf32> to vector<8x128xbf16>
    %92 = vector.extract_strided_slice %91 {offsets = [0, 0], sizes = [8, 32], strides = [1, 1]} : vector<8x128xbf16> to vector<8x32xbf16>
    %93 = vector.extract_strided_slice %91 {offsets = [0, 32], sizes = [8, 32], strides = [1, 1]} : vector<8x128xbf16> to vector<8x32xbf16>
    %94 = vector.extract_strided_slice %91 {offsets = [0, 64], sizes = [8, 32], strides = [1, 1]} : vector<8x128xbf16> to vector<8x32xbf16>
    %95 = vector.extract_strided_slice %91 {offsets = [0, 96], sizes = [8, 32], strides = [1, 1]} : vector<8x128xbf16> to vector<8x32xbf16>
    %96 = vector.shape_cast %92 : vector<8x32xbf16> to vector<1x8x32xbf16>
    %97 = vector.shape_cast %93 : vector<8x32xbf16> to vector<1x8x32xbf16>
    %98 = vector.shape_cast %94 : vector<8x32xbf16> to vector<1x8x32xbf16>
    %99 = vector.shape_cast %95 : vector<8x32xbf16> to vector<1x8x32xbf16>
    %100 = tpu.concatenate %96, %97, %98, %99 in 0 : vector<1x8x32xbf16>, vector<1x8x32xbf16>, vector<1x8x32xbf16>, vector<1x8x32xbf16> -> vector<4x8x32xbf16>
    %101 = arith.truncf %63 : vector<8x128xf32> to vector<8x128xbf16>
    %102 = vector.extract_strided_slice %101 {offsets = [0, 0], sizes = [8, 32], strides = [1, 1]} : vector<8x128xbf16> to vector<8x32xbf16>
    %103 = vector.extract_strided_slice %101 {offsets = [0, 32], sizes = [8, 32], strides = [1, 1]} : vector<8x128xbf16> to vector<8x32xbf16>
    %104 = vector.extract_strided_slice %101 {offsets = [0, 64], sizes = [8, 32], strides = [1, 1]} : vector<8x128xbf16> to vector<8x32xbf16>
    %105 = vector.extract_strided_slice %101 {offsets = [0, 96], sizes = [8, 32], strides = [1, 1]} : vector<8x128xbf16> to vector<8x32xbf16>
    %106 = vector.shape_cast %102 : vector<8x32xbf16> to vector<1x8x32xbf16>
    %107 = vector.shape_cast %103 : vector<8x32xbf16> to vector<1x8x32xbf16>
    %108 = vector.shape_cast %104 : vector<8x32xbf16> to vector<1x8x32xbf16>
    %109 = vector.shape_cast %105 : vector<8x32xbf16> to vector<1x8x32xbf16>
    %110 = tpu.concatenate %106, %107, %108, %109 in 0 : vector<1x8x32xbf16>, vector<1x8x32xbf16>, vector<1x8x32xbf16>, vector<1x8x32xbf16> -> vector<4x8x32xbf16>
    "tpu.trace_start"() <{level = 10 : i32, message = "hqd,hkd->hqk"}> : () -> ()
    %cst_40 = arith.constant dense<0.000000e+00> : vector<4x8x8xf32>
    %111 = tpu.matmul %90, %100, %cst_40 {dimension_numbers = #tpu.dot_dimension_numbers<[2], [2], [1], [1], [0, 0, 0, 1, 1, 1], [0], [0]>} : vector<4x8x32xbf16>, vector<4x8x32xbf16>, vector<4x8x8xf32> -> vector<4x8x8xf32>
    "tpu.trace_stop"() : () -> ()
    %cst_41 = arith.constant 0.176776692 : f32
    %112 = vector.broadcast %cst_41 : f32 to vector<4x8x8xf32>
    %113 = arith.mulf %111, %112 : vector<4x8x8xf32>
    %114 = vector.shape_cast %80 : vector<8x8xf32> to vector<1x8x8xf32>
    %115 = vector.broadcast %114 : vector<1x8x8xf32> to vector<4x8x8xf32>
    %116 = arith.addf %113, %115 : vector<4x8x8xf32>
    %cst_42 = arith.constant dense<0xFF800000> : vector<4x8xf32>
    %117 = vector.multi_reduction <maximumf>, %116, %cst_42 [2] : vector<4x8x8xf32> to vector<4x8xf32>
    %118 = vector.shape_cast %117 : vector<4x8xf32> to vector<4x8x1xf32>
    %119 = vector.broadcast %118 : vector<4x8x1xf32> to vector<4x8x8xf32>
    %120 = arith.subf %116, %119 : vector<4x8x8xf32>
    %121 = math.exp %120 : vector<4x8x8xf32>
    %cst_43 = arith.constant dense<0.000000e+00> : vector<4x8xf32>
    %122 = vector.multi_reduction <add>, %121, %cst_43 [2] : vector<4x8x8xf32> to vector<4x8xf32>
    %123 = vector.shape_cast %122 : vector<4x8xf32> to vector<4x8x1xf32>
    %124 = tpu.reciprocal %123 {approx = true} : vector<4x8x1xf32> -> vector<4x8x1xf32>
    %125 = vector.broadcast %124 : vector<4x8x1xf32> to vector<4x8x8xf32>
    %126 = arith.mulf %121, %125 : vector<4x8x8xf32>
    %127 = arith.truncf %126 : vector<4x8x8xf32> to vector<4x8x8xbf16>
    "tpu.trace_start"() <{level = 10 : i32, message = "hqk,hkd->hqd"}> : () -> ()
    %cst_44 = arith.constant dense<0.000000e+00> : vector<4x8x32xf32>
    %128 = tpu.matmul %127, %110, %cst_44 {dimension_numbers = #tpu.dot_dimension_numbers<[2], [1], [1], [2], [0, 0, 0, 1, 1, 2], [0], [0]>} : vector<4x8x8xbf16>, vector<4x8x32xbf16>, vector<4x8x32xf32> -> vector<4x8x32xf32>
    "tpu.trace_stop"() : () -> ()
    %129 = vector.extract_strided_slice %128 {offsets = [0, 0, 0], sizes = [1, 8, 32], strides = [1, 1, 1]} : vector<4x8x32xf32> to vector<1x8x32xf32>
    %130 = vector.shape_cast %129 : vector<1x8x32xf32> to vector<8x32xf32>
    %131 = vector.extract_strided_slice %128 {offsets = [1, 0, 0], sizes = [1, 8, 32], strides = [1, 1, 1]} : vector<4x8x32xf32> to vector<1x8x32xf32>
    %132 = vector.shape_cast %131 : vector<1x8x32xf32> to vector<8x32xf32>
    %133 = vector.extract_strided_slice %128 {offsets = [2, 0, 0], sizes = [1, 8, 32], strides = [1, 1, 1]} : vector<4x8x32xf32> to vector<1x8x32xf32>
    %134 = vector.shape_cast %133 : vector<1x8x32xf32> to vector<8x32xf32>
    %135 = vector.extract_strided_slice %128 {offsets = [3, 0, 0], sizes = [1, 8, 32], strides = [1, 1, 1]} : vector<4x8x32xf32> to vector<1x8x32xf32>
    %136 = vector.shape_cast %135 : vector<1x8x32xf32> to vector<8x32xf32>
    %137 = tpu.concatenate %130, %132, %134, %136 in 1 : vector<8x32xf32>, vector<8x32xf32>, vector<8x32xf32>, vector<8x32xf32> -> vector<8x128xf32>
    %138 = arith.truncf %137 : vector<8x128xf32> to vector<8x128xbf16>
    %c0_45 = arith.constant 0 : index
    %c0_46 = arith.constant 0 : index
    %139 = vector.load %arg13[%c0_45, %c0_46] : memref<128x128xbf16, #tpu.memory_space<vmem>>, vector<128x128xbf16>
    %cst_47 = arith.constant dense<0.000000e+00> : vector<8x128xf32>
    %140 = tpu.matmul %138, %139, %cst_47 {dimension_numbers = #tpu.dot_dimension_numbers<[1], [0], [0], [1], [0, 0, 1, 1], [], []>} : vector<8x128xbf16>, vector<128x128xbf16>, vector<8x128xf32> -> vector<8x128xf32>
    %c0_48 = arith.constant 0 : index
    %c0_49 = arith.constant 0 : index
    %141 = vector.load %arg14[%c0_48, %c0_49] : memref<1x128xf32, #tpu.memory_space<vmem>>, vector<1x128xf32>
    %142 = vector.broadcast %141 : vector<1x128xf32> to vector<8x128xf32>
    %143 = arith.addf %140, %142 : vector<8x128xf32>
    %144 = arith.addf %1, %143 : vector<8x128xf32>
    %c0_50 = arith.constant 0 : index
    %c0_51 = arith.constant 0 : index
    %c0_52 = arith.constant 0 : index
    %145 = vector.load %arg15[%c0_50, %c0_51, %c0_52] : memref<1x8x128xf32, #tpu.memory_space<vmem>>, vector<1x8x128xf32>
    %146 = vector.shape_cast %145 : vector<1x8x128xf32> to vector<8x128xf32>
    %147 = vector.shape_cast %144 : vector<8x128xf32> to vector<1x8x128xf32>
    tpu.vector_store %arg15[%c0_50, %c0_51, %c0_52], %147 {strides = array<i32>} : memref<1x8x128xf32, #tpu.memory_space<vmem>>, vector<1x8x128xf32>,
    return
  }
  func.func @transform_0(%arg0: i32, %arg1: i32) -> (i32, i32, i32) {
    %c0_i32 = arith.constant 0 : i32
    %c0_i32_0 = arith.constant 0 : i32
    return %arg0, %arg1, %c0_i32 : i32, i32, i32
  }
  func.func @transform_1(%arg0: i32, %arg1: i32) -> (i32, i32, i32) {
    %c0_i32 = arith.constant 0 : i32
    %c0_i32_0 = arith.constant 0 : i32
    %c0_i32_1 = arith.constant 0 : i32
    return %arg0, %c0_i32, %c0_i32_0 : i32, i32, i32
  }
  func.func @transform_2(%arg0: i32, %arg1: i32) -> (i32, i32, i32) {
    %c0_i32 = arith.constant 0 : i32
    %c0_i32_0 = arith.constant 0 : i32
    %c0_i32_1 = arith.constant 0 : i32
    return %arg0, %c0_i32, %c0_i32_0 : i32, i32, i32
  }
  func.func @transform_3(%arg0: i32, %arg1: i32) -> (i32, i32) {
    %c0_i32 = arith.constant 0 : i32
    %c0_i32_0 = arith.constant 0 : i32
    %c0_i32_1 = arith.constant 0 : i32
    return %c0_i32, %c0_i32_0 : i32, i32
  }
  func.func @transform_4(%arg0: i32, %arg1: i32) -> (i32, i32) {
    %c0_i32 = arith.constant 0 : i32
    %c0_i32_0 = arith.constant 0 : i32
    %c0_i32_1 = arith.constant 0 : i32
    return %c0_i32, %c0_i32_0 : i32, i32
  }
  func.func @transform_5(%arg0: i32, %arg1: i32) -> (i32, i32) {
    %c0_i32 = arith.constant 0 : i32
    %c0_i32_0 = arith.constant 0 : i32
    %c0_i32_1 = arith.constant 0 : i32
    return %c0_i32, %c0_i32_0 : i32, i32
  }
  func.func @transform_6(%arg0: i32, %arg1: i32) -> (i32, i32) {
    %c0_i32 = arith.constant 0 : i32
    %c0_i32_0 = arith.constant 0 : i32
    %c0_i32_1 = arith.constant 0 : i32
    return %c0_i32, %c0_i32_0 : i32, i32
  }
  func.func @transform_7(%arg0: i32, %arg1: i32) -> (i32, i32) {
    %c0_i32 = arith.constant 0 : i32
    %c0_i32_0 = arith.constant 0 : i32
    %c0_i32_1 = arith.constant 0 : i32
    return %c0_i32, %c0_i32_0 : i32, i32
  }
  func.func @transform_8(%arg0: i32, %arg1: i32) -> (i32, i32) {
    %c0_i32 = arith.constant 0 : i32
    %c0_i32_0 = arith.constant 0 : i32
    %c0_i32_1 = arith.constant 0 : i32
    return %c0_i32, %c0_i32_0 : i32, i32
  }
  func.func @transform_9(%arg0: i32, %arg1: i32) -> (i32, i32) {
    %c0_i32 = arith.constant 0 : i32
    %c0_i32_0 = arith.constant 0 : i32
    %c0_i32_1 = arith.constant 0 : i32
    return %c0_i32, %c0_i32_0 : i32, i32
  }
  func.func @transform_10(%arg0: i32, %arg1: i32) -> (i32, i32) {
    %c0_i32 = arith.constant 0 : i32
    %c0_i32_0 = arith.constant 0 : i32
    %c0_i32_1 = arith.constant 0 : i32
    return %c0_i32, %c0_i32_0 : i32, i32
  }
  func.func @transform_11(%arg0: i32, %arg1: i32) -> (i32, i32) {
    %c0_i32 = arith.constant 0 : i32
    %c0_i32_0 = arith.constant 0 : i32
    %c0_i32_1 = arith.constant 0 : i32
    return %c0_i32, %c0_i32_0 : i32, i32
  }
  func.func @transform_12(%arg0: i32, %arg1: i32) -> (i32, i32) {
    %c0_i32 = arith.constant 0 : i32
    %c0_i32_0 = arith.constant 0 : i32
    %c0_i32_1 = arith.constant 0 : i32
    return %c0_i32, %c0_i32_0 : i32, i32
  }
  func.func @transform_13(%arg0: i32, %arg1: i32) -> (i32, i32, i32) {
    %c0_i32 = arith.constant 0 : i32
    %c0_i32_0 = arith.constant 0 : i32
    return %arg0, %arg1, %c0_i32 : i32, i32, i32
  }
}

module attributes {stable_mosaic.version = 11 : i64} {
  func.func @_mha_block_kernel(%arg0: i32, %arg1: i32, %arg2: memref<1x8x128xf32, #tpu.memory_space<vmem>>, %arg3: memref<1x8x128xf32, #tpu.memory_space<vmem>>, %arg4: memref<1x1x8xf32, #tpu.memory_space<vmem>>, %arg5: memref<1x128xf32, #tpu.memory_space<vmem>>, %arg6: memref<1x128xf32, #tpu.memory_space<vmem>>, %arg7: memref<128x128xbf16, #tpu.memory_space<vmem>>, %arg8: memref<1x128xf32, #tpu.memory_space<vmem>>, %arg9: memref<128x128xbf16, #tpu.memory_space<vmem>>, %arg10: memref<1x128xf32, #tpu.memory_space<vmem>>, %arg11: memref<128x128xbf16, #tpu.memory_space<vmem>>, %arg12: memref<1x128xf32, #tpu.memory_space<vmem>>, %arg13: memref<128x128xbf16, #tpu.memory_space<vmem>>, %arg14: memref<1x128xf32, #tpu.memory_space<vmem>>, %arg15: memref<1x8x128xf32, #tpu.memory_space<vmem>>) attributes {dimension_semantics = [#tpu.dimension_semantics<parallel>, #tpu.dimension_semantics<parallel>], iteration_bounds = array<i64: 2, 1>, scalar_prefetch = 0 : i64, scratch_operands = 0 : i64, tpu.core_type = #tpu.core_type<tc>, window_params = [{transform_indices = @transform_0, window_bounds = array<i64: 1, 8, 128>}, {transform_indices = @transform_1, window_bounds = array<i64: 1, 8, 128>}, {transform_indices = @transform_2, window_bounds = array<i64: 1, 1, 8>}, {pipeline_mode = #tpu.pipeline_mode<synchronous>, transform_indices = @transform_3, window_bounds = array<i64: 1, 128>}, {pipeline_mode = #tpu.pipeline_mode<synchronous>, transform_indices = @transform_4, window_bounds = array<i64: 1, 128>}, {pipeline_mode = #tpu.pipeline_mode<synchronous>, transform_indices = @transform_5, window_bounds = array<i64: 128, 128>}, {pipeline_mode = #tpu.pipeline_mode<synchronous>, transform_indices = @transform_6, window_bounds = array<i64: 1, 128>}, {pipeline_mode = #tpu.pipeline_mode<synchronous>, transform_indices = @transform_7, window_bounds = array<i64: 128, 128>}, {pipeline_mode = #tpu.pipeline_mode<synchronous>, transform_indices = @transform_8, window_bounds = array<i64: 1, 128>}, {pipeline_mode = #tpu.pipeline_mode<synchronous>, transform_indices = @transform_9, window_bounds = array<i64: 128, 128>}, {pipeline_mode = #tpu.pipeline_mode<synchronous>, transform_indices = @transform_10, window_bounds = array<i64: 1, 128>}, {pipeline_mode = #tpu.pipeline_mode<synchronous>, transform_indices = @transform_11, window_bounds = array<i64: 128, 128>}, {pipeline_mode = #tpu.pipeline_mode<synchronous>, transform_indices = @transform_12, window_bounds = array<i64: 1, 128>}, {transform_indices = @transform_13, window_bounds = array<i64: 1, 8, 128>}]} {
    %c0 = arith.constant 0 : index
    %c0_0 = arith.constant 0 : index
    %c0_1 = arith.constant 0 : index
    %0 = vector.load %arg2[%c0, %c0_0, %c0_1] : memref<1x8x128xf32, #tpu.memory_space<vmem>>, vector<1x8x128xf32>
    %1 = vector.shape_cast %0 : vector<1x8x128xf32> to vector<8x128xf32>
    %c0_2 = arith.constant 0 : index
    %c0_3 = arith.constant 0 : index
    %c0_4 = arith.constant 0 : index
    %2 = vector.load %arg3[%c0_2, %c0_3, %c0_4] : memref<1x8x128xf32, #tpu.memory_space<vmem>>, vector<1x8x128xf32>
    %3 = vector.shape_cast %2 : vector<1x8x128xf32> to vector<8x128xf32>
    %c0_5 = arith.constant 0 : index
    %c0_6 = arith.constant 0 : index
    %4 = vector.load %arg5[%c0_5, %c0_6] : memref<1x128xf32, #tpu.memory_space<vmem>>, vector<1x128xf32>
    %c0_7 = arith.constant 0 : index
    %c0_8 = arith.constant 0 : index
    %5 = vector.load %arg6[%c0_7, %c0_8] : memref<1x128xf32, #tpu.memory_space<vmem>>, vector<1x128xf32>
    %cst = arith.constant dense<0.000000e+00> : vector<8xf32>
    %6 = vector.multi_reduction <add>, %1, %cst [1] : vector<8x128xf32> to vector<8xf32>
    %7 = vector.shape_cast %6 : vector<8xf32> to vector<8x1xf32>
    %cst_9 = arith.constant 1.280000e+02 : f32
    %8 = vector.broadcast %cst_9 : f32 to vector<8x1xf32>
    %9 = arith.divf %7, %8 : vector<8x1xf32>
    %10 = vector.broadcast %9 : vector<8x1xf32> to vector<8x128xf32>
    %11 = arith.subf %1, %10 : vector<8x128xf32>
    %12 = arith.mulf %11, %11 : vector<8x128xf32>
    %cst_10 = arith.constant dense<0.000000e+00> : vector<8xf32>
    %13 = vector.multi_reduction <add>, %12, %cst_10 [1] : vector<8x128xf32> to vector<8xf32>
    %14 = vector.shape_cast %13 : vector<8xf32> to vector<8x1xf32>
    %cst_11 = arith.constant 1.280000e+02 : f32
    %15 = vector.broadcast %cst_11 : f32 to vector<8x1xf32>
    %16 = arith.divf %14, %15 : vector<8x1xf32>
    %cst_12 = arith.constant 9.99999974E-6 : f32
    %17 = vector.broadcast %cst_12 : f32 to vector<8x1xf32>
    %18 = arith.addf %16, %17 : vector<8x1xf32>
    %19 = math.rsqrt %18 : vector<8x1xf32>
    %20 = vector.broadcast %19 : vector<8x1xf32> to vector<8x128xf32>
    %21 = arith.mulf %11, %20 : vector<8x128xf32>
    %22 = vector.broadcast %4 : vector<1x128xf32> to vector<8x128xf32>
    %23 = arith.mulf %21, %22 : vector<8x128xf32>
    %24 = vector.broadcast %5 : vector<1x128xf32> to vector<8x128xf32>
    %25 = arith.addf %23, %24 : vector<8x128xf32>
    %26 = arith.truncf %25 : vector<8x128xf32> to vector<8x128xbf16>
    %c0_13 = arith.constant 0 : index
    %c0_14 = arith.constant 0 : index
    %27 = vector.load %arg7[%c0_13, %c0_14] : memref<128x128xbf16, #tpu.memory_space<vmem>>, vector<128x128xbf16>
    %cst_15 = arith.constant dense<0.000000e+00> : vector<8x128xf32>
    %28 = tpu.matmul %26, %27, %cst_15 {dimension_numbers = #tpu.dot_dimension_numbers<[1], [0], [0], [1], [0, 0, 1, 1], [], []>} : vector<8x128xbf16>, vector<128x128xbf16>, vector<8x128xf32> -> vector<8x128xf32>
    %c0_16 = arith.constant 0 : index
    %c0_17 = arith.constant 0 : index
    %29 = vector.load %arg8[%c0_16, %c0_17] : memref<1x128xf32, #tpu.memory_space<vmem>>, vector<1x128xf32>
    %30 = vector.broadcast %29 : vector<1x128xf32> to vector<8x128xf32>
    %31 = arith.addf %28, %30 : vector<8x128xf32>
    %32 = arith.truncf %3 : vector<8x128xf32> to vector<8x128xbf16>
    %c0_18 = arith.constant 0 : index
    %c0_19 = arith.constant 0 : index
    %33 = vector.load %arg9[%c0_18, %c0_19] : memref<128x128xbf16, #tpu.memory_space<vmem>>, vector<128x128xbf16>
    %cst_20 = arith.constant dense<0.000000e+00> : vector<8x128xf32>
    %34 = tpu.matmul %32, %33, %cst_20 {dimension_numbers = #tpu.dot_dimension_numbers<[1], [0], [0], [1], [0, 0, 1, 1], [], []>} : vector<8x128xbf16>, vector<128x128xbf16>, vector<8x128xf32> -> vector<8x128xf32>
    %c0_21 = arith.constant 0 : index
    %c0_22 = arith.constant 0 : index
    %35 = vector.load %arg10[%c0_21, %c0_22] : memref<1x128xf32, #tpu.memory_space<vmem>>, vector<1x128xf32>
    %36 = vector.broadcast %35 : vector<1x128xf32> to vector<8x128xf32>
    %37 = arith.addf %34, %36 : vector<8x128xf32>
    %38 = arith.truncf %3 : vector<8x128xf32> to vector<8x128xbf16>
    %c0_23 = arith.constant 0 : index
    %c0_24 = arith.constant 0 : index
    %39 = vector.load %arg11[%c0_23, %c0_24] : memref<128x128xbf16, #tpu.memory_space<vmem>>, vector<128x128xbf16>
    %cst_25 = arith.constant dense<0.000000e+00> : vector<8x128xf32>
    %40 = tpu.matmul %38, %39, %cst_25 {dimension_numbers = #tpu.dot_dimension_numbers<[1], [0], [0], [1], [0, 0, 1, 1], [], []>} : vector<8x128xbf16>, vector<128x128xbf16>, vector<8x128xf32> -> vector<8x128xf32>
    %c0_26 = arith.constant 0 : index
    %c0_27 = arith.constant 0 : index
    %41 = vector.load %arg12[%c0_26, %c0_27] : memref<1x128xf32, #tpu.memory_space<vmem>>, vector<1x128xf32>
    %42 = vector.broadcast %41 : vector<1x128xf32> to vector<8x128xf32>
    %43 = arith.addf %40, %42 : vector<8x128xf32>
    %c0_28 = arith.constant 0 : index
    %c0_29 = arith.constant 0 : index
    %c0_30 = arith.constant 0 : index
    %44 = vector.load %arg4[%c0_28, %c0_29, %c0_30] : memref<1x1x8xf32, #tpu.memory_space<vmem>>, vector<1x1x8xf32>
    %45 = vector.shape_cast %44 : vector<1x1x8xf32> to vector<1x8xf32>
    %cst_31 = arith.constant 0.000000e+00 : f32
    %46 = vector.broadcast %cst_31 : f32 to vector<1x8xf32>
    %47 = arith.cmpf oeq, %45, %46 : vector<1x8xf32>
    %cst_32 = arith.constant -1.000000e+09 : f32
    %cst_33 = arith.constant 0.000000e+00 : f32
    %48 = vector.broadcast %cst_32 : f32 to vector<1x8xf32>
    %49 = vector.broadcast %cst_33 : f32 to vector<1x8xf32>
    %50 = arith.select %47, %48, %49 : vector<1x8xi1>, vector<1x8xf32>
    %51 = vector.shape_cast %50 : vector<1x8xf32> to vector<1x8xf32>
    %52 = vector.broadcast %51 : vector<1x8xf32> to vector<8x8xf32>
    %53 = arith.truncf %31 : vector<8x128xf32> to vector<8x128xbf16>
    %54 = vector.extract_strided_slice %53 {offsets = [0, 0], sizes = [8, 32], strides = [1, 1]} : vector<8x128xbf16> to vector<8x32xbf16>
    %55 = vector.extract_strided_slice %53 {offsets = [0, 32], sizes = [8, 32], strides = [1, 1]} : vector<8x128xbf16> to vector<8x32xbf16>
    %56 = vector.extract_strided_slice %53 {offsets = [0, 64], sizes = [8, 32], strides = [1, 1]} : vector<8x128xbf16> to vector<8x32xbf16>
    %57 = vector.extract_strided_slice %53 {offsets = [0, 96], sizes = [8, 32], strides = [1, 1]} : vector<8x128xbf16> to vector<8x32xbf16>
    %58 = vector.shape_cast %54 : vector<8x32xbf16> to vector<1x8x32xbf16>
    %59 = vector.shape_cast %55 : vector<8x32xbf16> to vector<1x8x32xbf16>
    %60 = vector.shape_cast %56 : vector<8x32xbf16> to vector<1x8x32xbf16>
    %61 = vector.shape_cast %57 : vector<8x32xbf16> to vector<1x8x32xbf16>
    %62 = tpu.concatenate %58, %59, %60, %61 in 0 : vector<1x8x32xbf16>, vector<1x8x32xbf16>, vector<1x8x32xbf16>, vector<1x8x32xbf16> -> vector<4x8x32xbf16>
    %63 = arith.truncf %37 : vector<8x128xf32> to vector<8x128xbf16>
    %64 = vector.extract_strided_slice %63 {offsets = [0, 0], sizes = [8, 32], strides = [1, 1]} : vector<8x128xbf16> to vector<8x32xbf16>
    %65 = vector.extract_strided_slice %63 {offsets = [0, 32], sizes = [8, 32], strides = [1, 1]} : vector<8x128xbf16> to vector<8x32xbf16>
    %66 = vector.extract_strided_slice %63 {offsets = [0, 64], sizes = [8, 32], strides = [1, 1]} : vector<8x128xbf16> to vector<8x32xbf16>
    %67 = vector.extract_strided_slice %63 {offsets = [0, 96], sizes = [8, 32], strides = [1, 1]} : vector<8x128xbf16> to vector<8x32xbf16>
    %68 = vector.shape_cast %64 : vector<8x32xbf16> to vector<1x8x32xbf16>
    %69 = vector.shape_cast %65 : vector<8x32xbf16> to vector<1x8x32xbf16>
    %70 = vector.shape_cast %66 : vector<8x32xbf16> to vector<1x8x32xbf16>
    %71 = vector.shape_cast %67 : vector<8x32xbf16> to vector<1x8x32xbf16>
    %72 = tpu.concatenate %68, %69, %70, %71 in 0 : vector<1x8x32xbf16>, vector<1x8x32xbf16>, vector<1x8x32xbf16>, vector<1x8x32xbf16> -> vector<4x8x32xbf16>
    %73 = arith.truncf %43 : vector<8x128xf32> to vector<8x128xbf16>
    %74 = vector.extract_strided_slice %73 {offsets = [0, 0], sizes = [8, 32], strides = [1, 1]} : vector<8x128xbf16> to vector<8x32xbf16>
    %75 = vector.extract_strided_slice %73 {offsets = [0, 32], sizes = [8, 32], strides = [1, 1]} : vector<8x128xbf16> to vector<8x32xbf16>
    %76 = vector.extract_strided_slice %73 {offsets = [0, 64], sizes = [8, 32], strides = [1, 1]} : vector<8x128xbf16> to vector<8x32xbf16>
    %77 = vector.extract_strided_slice %73 {offsets = [0, 96], sizes = [8, 32], strides = [1, 1]} : vector<8x128xbf16> to vector<8x32xbf16>
    %78 = vector.shape_cast %74 : vector<8x32xbf16> to vector<1x8x32xbf16>
    %79 = vector.shape_cast %75 : vector<8x32xbf16> to vector<1x8x32xbf16>
    %80 = vector.shape_cast %76 : vector<8x32xbf16> to vector<1x8x32xbf16>
    %81 = vector.shape_cast %77 : vector<8x32xbf16> to vector<1x8x32xbf16>
    %82 = tpu.concatenate %78, %79, %80, %81 in 0 : vector<1x8x32xbf16>, vector<1x8x32xbf16>, vector<1x8x32xbf16>, vector<1x8x32xbf16> -> vector<4x8x32xbf16>
    "tpu.trace_start"() <{level = 10 : i32, message = "hqd,hkd->hqk"}> : () -> ()
    %cst_34 = arith.constant dense<0.000000e+00> : vector<4x8x8xf32>
    %83 = tpu.matmul %62, %72, %cst_34 {dimension_numbers = #tpu.dot_dimension_numbers<[2], [2], [1], [1], [0, 0, 0, 1, 1, 1], [0], [0]>} : vector<4x8x32xbf16>, vector<4x8x32xbf16>, vector<4x8x8xf32> -> vector<4x8x8xf32>
    "tpu.trace_stop"() : () -> ()
    %cst_35 = arith.constant 0.176776692 : f32
    %84 = vector.broadcast %cst_35 : f32 to vector<4x8x8xf32>
    %85 = arith.mulf %83, %84 : vector<4x8x8xf32>
    %86 = vector.shape_cast %52 : vector<8x8xf32> to vector<1x8x8xf32>
    %87 = vector.broadcast %86 : vector<1x8x8xf32> to vector<4x8x8xf32>
    %88 = arith.addf %85, %87 : vector<4x8x8xf32>
    %cst_36 = arith.constant dense<0xFF800000> : vector<4x8xf32>
    %89 = vector.multi_reduction <maximumf>, %88, %cst_36 [2] : vector<4x8x8xf32> to vector<4x8xf32>
    %90 = vector.shape_cast %89 : vector<4x8xf32> to vector<4x8x1xf32>
    %91 = vector.broadcast %90 : vector<4x8x1xf32> to vector<4x8x8xf32>
    %92 = arith.subf %88, %91 : vector<4x8x8xf32>
    %93 = math.exp %92 : vector<4x8x8xf32>
    %cst_37 = arith.constant dense<0.000000e+00> : vector<4x8xf32>
    %94 = vector.multi_reduction <add>, %93, %cst_37 [2] : vector<4x8x8xf32> to vector<4x8xf32>
    %95 = vector.shape_cast %94 : vector<4x8xf32> to vector<4x8x1xf32>
    %96 = tpu.reciprocal %95 {approx = true} : vector<4x8x1xf32> -> vector<4x8x1xf32>
    %97 = vector.broadcast %96 : vector<4x8x1xf32> to vector<4x8x8xf32>
    %98 = arith.mulf %93, %97 : vector<4x8x8xf32>
    %99 = arith.truncf %98 : vector<4x8x8xf32> to vector<4x8x8xbf16>
    "tpu.trace_start"() <{level = 10 : i32, message = "hqk,hkd->hqd"}> : () -> ()
    %cst_38 = arith.constant dense<0.000000e+00> : vector<4x8x32xf32>
    %100 = tpu.matmul %99, %82, %cst_38 {dimension_numbers = #tpu.dot_dimension_numbers<[2], [1], [1], [2], [0, 0, 0, 1, 1, 2], [0], [0]>} : vector<4x8x8xbf16>, vector<4x8x32xbf16>, vector<4x8x32xf32> -> vector<4x8x32xf32>
    "tpu.trace_stop"() : () -> ()
    %101 = vector.extract_strided_slice %100 {offsets = [0, 0, 0], sizes = [1, 8, 32], strides = [1, 1, 1]} : vector<4x8x32xf32> to vector<1x8x32xf32>
    %102 = vector.shape_cast %101 : vector<1x8x32xf32> to vector<8x32xf32>
    %103 = vector.extract_strided_slice %100 {offsets = [1, 0, 0], sizes = [1, 8, 32], strides = [1, 1, 1]} : vector<4x8x32xf32> to vector<1x8x32xf32>
    %104 = vector.shape_cast %103 : vector<1x8x32xf32> to vector<8x32xf32>
    %105 = vector.extract_strided_slice %100 {offsets = [2, 0, 0], sizes = [1, 8, 32], strides = [1, 1, 1]} : vector<4x8x32xf32> to vector<1x8x32xf32>
    %106 = vector.shape_cast %105 : vector<1x8x32xf32> to vector<8x32xf32>
    %107 = vector.extract_strided_slice %100 {offsets = [3, 0, 0], sizes = [1, 8, 32], strides = [1, 1, 1]} : vector<4x8x32xf32> to vector<1x8x32xf32>
    %108 = vector.shape_cast %107 : vector<1x8x32xf32> to vector<8x32xf32>
    %109 = tpu.concatenate %102, %104, %106, %108 in 1 : vector<8x32xf32>, vector<8x32xf32>, vector<8x32xf32>, vector<8x32xf32> -> vector<8x128xf32>
    %110 = arith.truncf %109 : vector<8x128xf32> to vector<8x128xbf16>
    %c0_39 = arith.constant 0 : index
    %c0_40 = arith.constant 0 : index
    %111 = vector.load %arg13[%c0_39, %c0_40] : memref<128x128xbf16, #tpu.memory_space<vmem>>, vector<128x128xbf16>
    %cst_41 = arith.constant dense<0.000000e+00> : vector<8x128xf32>
    %112 = tpu.matmul %110, %111, %cst_41 {dimension_numbers = #tpu.dot_dimension_numbers<[1], [0], [0], [1], [0, 0, 1, 1], [], []>} : vector<8x128xbf16>, vector<128x128xbf16>, vector<8x128xf32> -> vector<8x128xf32>
    %c0_42 = arith.constant 0 : index
    %c0_43 = arith.constant 0 : index
    %113 = vector.load %arg14[%c0_42, %c0_43] : memref<1x128xf32, #tpu.memory_space<vmem>>, vector<1x128xf32>
    %114 = vector.broadcast %113 : vector<1x128xf32> to vector<8x128xf32>
    %115 = arith.addf %112, %114 : vector<8x128xf32>
    %116 = arith.addf %1, %115 : vector<8x128xf32>
    %c0_44 = arith.constant 0 : index
    %c0_45 = arith.constant 0 : index
    %c0_46 = arith.constant 0 : index
    %117 = vector.load %arg15[%c0_44, %c0_45, %c0_46] : memref<1x8x128xf32, #tpu.memory_space<vmem>>, vector<1x8x128xf32>
    %118 = vector.shape_cast %117 : vector<1x8x128xf32> to vector<8x128xf32>
    %119 = vector.shape_cast %116 : vector<8x128xf32> to vector<1x8x128xf32>
    tpu.vector_store %arg15[%c0_44, %c0_45, %c0_46], %119 {strides = array<i32>} : memref<1x8x128xf32, #tpu.memory_space<vmem>>, vector<1x8x128xf32>,
    return
  }
  func.func @transform_0(%arg0: i32, %arg1: i32) -> (i32, i32, i32) {
    %c0_i32 = arith.constant 0 : i32
    %c0_i32_0 = arith.constant 0 : i32
    return %arg0, %arg1, %c0_i32 : i32, i32, i32
  }
  func.func @transform_1(%arg0: i32, %arg1: i32) -> (i32, i32, i32) {
    %c0_i32 = arith.constant 0 : i32
    %c0_i32_0 = arith.constant 0 : i32
    %c0_i32_1 = arith.constant 0 : i32
    return %arg0, %c0_i32, %c0_i32_0 : i32, i32, i32
  }
  func.func @transform_2(%arg0: i32, %arg1: i32) -> (i32, i32, i32) {
    %c0_i32 = arith.constant 0 : i32
    %c0_i32_0 = arith.constant 0 : i32
    %c0_i32_1 = arith.constant 0 : i32
    return %arg0, %c0_i32, %c0_i32_0 : i32, i32, i32
  }
  func.func @transform_3(%arg0: i32, %arg1: i32) -> (i32, i32) {
    %c0_i32 = arith.constant 0 : i32
    %c0_i32_0 = arith.constant 0 : i32
    %c0_i32_1 = arith.constant 0 : i32
    return %c0_i32, %c0_i32_0 : i32, i32
  }
  func.func @transform_4(%arg0: i32, %arg1: i32) -> (i32, i32) {
    %c0_i32 = arith.constant 0 : i32
    %c0_i32_0 = arith.constant 0 : i32
    %c0_i32_1 = arith.constant 0 : i32
    return %c0_i32, %c0_i32_0 : i32, i32
  }
  func.func @transform_5(%arg0: i32, %arg1: i32) -> (i32, i32) {
    %c0_i32 = arith.constant 0 : i32
    %c0_i32_0 = arith.constant 0 : i32
    %c0_i32_1 = arith.constant 0 : i32
    return %c0_i32, %c0_i32_0 : i32, i32
  }
  func.func @transform_6(%arg0: i32, %arg1: i32) -> (i32, i32) {
    %c0_i32 = arith.constant 0 : i32
    %c0_i32_0 = arith.constant 0 : i32
    %c0_i32_1 = arith.constant 0 : i32
    return %c0_i32, %c0_i32_0 : i32, i32
  }
  func.func @transform_7(%arg0: i32, %arg1: i32) -> (i32, i32) {
    %c0_i32 = arith.constant 0 : i32
    %c0_i32_0 = arith.constant 0 : i32
    %c0_i32_1 = arith.constant 0 : i32
    return %c0_i32, %c0_i32_0 : i32, i32
  }
  func.func @transform_8(%arg0: i32, %arg1: i32) -> (i32, i32) {
    %c0_i32 = arith.constant 0 : i32
    %c0_i32_0 = arith.constant 0 : i32
    %c0_i32_1 = arith.constant 0 : i32
    return %c0_i32, %c0_i32_0 : i32, i32
  }
  func.func @transform_9(%arg0: i32, %arg1: i32) -> (i32, i32) {
    %c0_i32 = arith.constant 0 : i32
    %c0_i32_0 = arith.constant 0 : i32
    %c0_i32_1 = arith.constant 0 : i32
    return %c0_i32, %c0_i32_0 : i32, i32
  }
  func.func @transform_10(%arg0: i32, %arg1: i32) -> (i32, i32) {
    %c0_i32 = arith.constant 0 : i32
    %c0_i32_0 = arith.constant 0 : i32
    %c0_i32_1 = arith.constant 0 : i32
    return %c0_i32, %c0_i32_0 : i32, i32
  }
  func.func @transform_11(%arg0: i32, %arg1: i32) -> (i32, i32) {
    %c0_i32 = arith.constant 0 : i32
    %c0_i32_0 = arith.constant 0 : i32
    %c0_i32_1 = arith.constant 0 : i32
    return %c0_i32, %c0_i32_0 : i32, i32
  }
  func.func @transform_12(%arg0: i32, %arg1: i32) -> (i32, i32) {
    %c0_i32 = arith.constant 0 : i32
    %c0_i32_0 = arith.constant 0 : i32
    %c0_i32_1 = arith.constant 0 : i32
    return %c0_i32, %c0_i32_0 : i32, i32
  }
  func.func @transform_13(%arg0: i32, %arg1: i32) -> (i32, i32, i32) {
    %c0_i32 = arith.constant 0 : i32
    %c0_i32_0 = arith.constant 0 : i32
    return %arg0, %arg1, %c0_i32 : i32, i32, i32
  }
}

module attributes {stable_mosaic.version = 11 : i64} {
  func.func @_ln_ffn_kernel(%arg0: i32, %arg1: i32, %arg2: memref<16x128xf32, #tpu.memory_space<vmem>>, %arg3: memref<1x128xf32, #tpu.memory_space<vmem>>, %arg4: memref<1x128xf32, #tpu.memory_space<vmem>>, %arg5: memref<128x512xbf16, #tpu.memory_space<vmem>>, %arg6: memref<1x512xf32, #tpu.memory_space<vmem>>, %arg7: memref<512x128xbf16, #tpu.memory_space<vmem>>, %arg8: memref<1x128xf32, #tpu.memory_space<vmem>>, %arg9: memref<1x128xf32, #tpu.memory_space<vmem>>, %arg10: memref<1x128xf32, #tpu.memory_space<vmem>>, %arg11: memref<16x128xf32, #tpu.memory_space<vmem>>, %arg12: memref<16x128xf32, #tpu.memory_space<vmem>>) attributes {dimension_semantics = [#tpu.dimension_semantics<parallel>, #tpu.dimension_semantics<arbitrary>], iteration_bounds = array<i64: 1, 1>, scalar_prefetch = 0 : i64, scratch_operands = 1 : i64, tpu.core_type = #tpu.core_type<tc>, window_params = [{transform_indices = @transform_0, window_bounds = array<i64: 16, 128>}, {pipeline_mode = #tpu.pipeline_mode<synchronous>, transform_indices = @transform_1, window_bounds = array<i64: 1, 128>}, {pipeline_mode = #tpu.pipeline_mode<synchronous>, transform_indices = @transform_2, window_bounds = array<i64: 1, 128>}, {transform_indices = @transform_3, window_bounds = array<i64: 128, 512>}, {transform_indices = @transform_4, window_bounds = array<i64: 1, 512>}, {transform_indices = @transform_5, window_bounds = array<i64: 512, 128>}, {pipeline_mode = #tpu.pipeline_mode<synchronous>, transform_indices = @transform_6, window_bounds = array<i64: 1, 128>}, {pipeline_mode = #tpu.pipeline_mode<synchronous>, transform_indices = @transform_7, window_bounds = array<i64: 1, 128>}, {pipeline_mode = #tpu.pipeline_mode<synchronous>, transform_indices = @transform_8, window_bounds = array<i64: 1, 128>}, {transform_indices = @transform_9, window_bounds = array<i64: 16, 128>}]} {
    %c0 = arith.constant 0 : index
    %c0_0 = arith.constant 0 : index
    %0 = vector.load %arg2[%c0, %c0_0] : memref<16x128xf32, #tpu.memory_space<vmem>>, vector<16x128xf32>
    %c0_1 = arith.constant 0 : index
    %c0_2 = arith.constant 0 : index
    %1 = vector.load %arg3[%c0_1, %c0_2] : memref<1x128xf32, #tpu.memory_space<vmem>>, vector<1x128xf32>
    %c0_3 = arith.constant 0 : index
    %c0_4 = arith.constant 0 : index
    %2 = vector.load %arg4[%c0_3, %c0_4] : memref<1x128xf32, #tpu.memory_space<vmem>>, vector<1x128xf32>
    %cst = arith.constant dense<0.000000e+00> : vector<16xf32>
    %3 = vector.multi_reduction <add>, %0, %cst [1] : vector<16x128xf32> to vector<16xf32>
    %4 = vector.shape_cast %3 : vector<16xf32> to vector<16x1xf32>
    %cst_5 = arith.constant 1.280000e+02 : f32
    %5 = vector.broadcast %cst_5 : f32 to vector<16x1xf32>
    %6 = arith.divf %4, %5 : vector<16x1xf32>
    %7 = vector.broadcast %6 : vector<16x1xf32> to vector<16x128xf32>
    %8 = arith.subf %0, %7 : vector<16x128xf32>
    %9 = arith.mulf %8, %8 : vector<16x128xf32>
    %cst_6 = arith.constant dense<0.000000e+00> : vector<16xf32>
    %10 = vector.multi_reduction <add>, %9, %cst_6 [1] : vector<16x128xf32> to vector<16xf32>
    %11 = vector.shape_cast %10 : vector<16xf32> to vector<16x1xf32>
    %cst_7 = arith.constant 1.280000e+02 : f32
    %12 = vector.broadcast %cst_7 : f32 to vector<16x1xf32>
    %13 = arith.divf %11, %12 : vector<16x1xf32>
    %cst_8 = arith.constant 9.99999974E-6 : f32
    %14 = vector.broadcast %cst_8 : f32 to vector<16x1xf32>
    %15 = arith.addf %13, %14 : vector<16x1xf32>
    %16 = math.rsqrt %15 : vector<16x1xf32>
    %17 = vector.broadcast %16 : vector<16x1xf32> to vector<16x128xf32>
    %18 = arith.mulf %8, %17 : vector<16x128xf32>
    %19 = vector.broadcast %1 : vector<1x128xf32> to vector<16x128xf32>
    %20 = arith.mulf %18, %19 : vector<16x128xf32>
    %21 = vector.broadcast %2 : vector<1x128xf32> to vector<16x128xf32>
    %22 = arith.addf %20, %21 : vector<16x128xf32>
    %23 = arith.truncf %22 : vector<16x128xf32> to vector<16x128xbf16>
    %c0_9 = arith.constant 0 : index
    %c0_10 = arith.constant 0 : index
    %24 = vector.load %arg5[%c0_9, %c0_10] : memref<128x512xbf16, #tpu.memory_space<vmem>>, vector<128x512xbf16>
    %cst_11 = arith.constant dense<0.000000e+00> : vector<16x512xf32>
    %25 = tpu.matmul %23, %24, %cst_11 {dimension_numbers = #tpu.dot_dimension_numbers<[1], [0], [0], [1], [0, 0, 1, 1], [], []>} : vector<16x128xbf16>, vector<128x512xbf16>, vector<16x512xf32> -> vector<16x512xf32>
    %c0_12 = arith.constant 0 : index
    %c0_13 = arith.constant 0 : index
    %26 = vector.load %arg6[%c0_12, %c0_13] : memref<1x512xf32, #tpu.memory_space<vmem>>, vector<1x512xf32>
    %27 = vector.broadcast %26 : vector<1x512xf32> to vector<16x512xf32>
    %28 = arith.addf %25, %27 : vector<16x512xf32>
    %cst_14 = arith.constant 0.000000e+00 : f32
    %29 = vector.broadcast %cst_14 : f32 to vector<16x512xf32>
    %30 = arith.maximumf %28, %29 : vector<16x512xf32>
    %31 = arith.truncf %30 : vector<16x512xf32> to vector<16x512xbf16>
    %c0_15 = arith.constant 0 : index
    %c0_16 = arith.constant 0 : index
    %32 = vector.load %arg7[%c0_15, %c0_16] : memref<512x128xbf16, #tpu.memory_space<vmem>>, vector<512x128xbf16>
    %cst_17 = arith.constant dense<0.000000e+00> : vector<16x128xf32>
    %33 = tpu.matmul %31, %32, %cst_17 {dimension_numbers = #tpu.dot_dimension_numbers<[1], [0], [0], [1], [0, 0, 1, 1], [], []>} : vector<16x512xbf16>, vector<512x128xbf16>, vector<16x128xf32> -> vector<16x128xf32>
    %c0_i32 = arith.constant 0 : i32
    %34 = arith.cmpi eq, %arg1, %c0_i32 : i32
    %35 = arith.extui %34 : i1 to i32
    %c0_i32_18 = arith.constant 0 : i32
    %36 = arith.cmpi ne, %35, %c0_i32_18 : i32
    scf.if %36 {
      %cst_25 = arith.constant 0.000000e+00 : f32
      %43 = vector.broadcast %cst_25 : f32 to vector<16x128xf32>
      %c0_26 = arith.constant 0 : index
      %c0_27 = arith.constant 0 : index
      %44 = vector.load %arg12[%c0_26, %c0_27] : memref<16x128xf32, #tpu.memory_space<vmem>>, vector<16x128xf32>
      tpu.vector_store %arg12[%c0_26, %c0_27], %43 {strides = array<i32>} : memref<16x128xf32, #tpu.memory_space<vmem>>, vector<16x128xf32>,
    } else {
    }
    %c0_19 = arith.constant 0 : index
    %c0_20 = arith.constant 0 : index
    %37 = vector.load %arg12[%c0_19, %c0_20] : memref<16x128xf32, #tpu.memory_space<vmem>>, vector<16x128xf32>
    %38 = arith.addf %37, %33 : vector<16x128xf32>
    %c0_21 = arith.constant 0 : index
    %c0_22 = arith.constant 0 : index
    %39 = vector.load %arg12[%c0_21, %c0_22] : memref<16x128xf32, #tpu.memory_space<vmem>>, vector<16x128xf32>
    tpu.vector_store %arg12[%c0_21, %c0_22], %38 {strides = array<i32>} : memref<16x128xf32, #tpu.memory_space<vmem>>, vector<16x128xf32>,
    %c0_i32_23 = arith.constant 0 : i32
    %40 = arith.cmpi eq, %arg1, %c0_i32_23 : i32
    %41 = arith.extui %40 : i1 to i32
    %c0_i32_24 = arith.constant 0 : i32
    %42 = arith.cmpi ne, %41, %c0_i32_24 : i32
    scf.if %42 {
      %c0_25 = arith.constant 0 : index
      %c0_26 = arith.constant 0 : index
      %43 = vector.load %arg12[%c0_25, %c0_26] : memref<16x128xf32, #tpu.memory_space<vmem>>, vector<16x128xf32>
      %44 = arith.addf %0, %43 : vector<16x128xf32>
      %c0_27 = arith.constant 0 : index
      %c0_28 = arith.constant 0 : index
      %45 = vector.load %arg8[%c0_27, %c0_28] : memref<1x128xf32, #tpu.memory_space<vmem>>, vector<1x128xf32>
      %46 = vector.broadcast %45 : vector<1x128xf32> to vector<16x128xf32>
      %47 = arith.addf %44, %46 : vector<16x128xf32>
      %c0_29 = arith.constant 0 : index
      %c0_30 = arith.constant 0 : index
      %48 = vector.load %arg9[%c0_29, %c0_30] : memref<1x128xf32, #tpu.memory_space<vmem>>, vector<1x128xf32>
      %c0_31 = arith.constant 0 : index
      %c0_32 = arith.constant 0 : index
      %49 = vector.load %arg10[%c0_31, %c0_32] : memref<1x128xf32, #tpu.memory_space<vmem>>, vector<1x128xf32>
      %cst_33 = arith.constant dense<0.000000e+00> : vector<16xf32>
      %50 = vector.multi_reduction <add>, %47, %cst_33 [1] : vector<16x128xf32> to vector<16xf32>
      %51 = vector.shape_cast %50 : vector<16xf32> to vector<16x1xf32>
      %cst_34 = arith.constant 1.280000e+02 : f32
      %52 = vector.broadcast %cst_34 : f32 to vector<16x1xf32>
      %53 = arith.divf %51, %52 : vector<16x1xf32>
      %54 = vector.broadcast %53 : vector<16x1xf32> to vector<16x128xf32>
      %55 = arith.subf %47, %54 : vector<16x128xf32>
      %56 = arith.mulf %55, %55 : vector<16x128xf32>
      %cst_35 = arith.constant dense<0.000000e+00> : vector<16xf32>
      %57 = vector.multi_reduction <add>, %56, %cst_35 [1] : vector<16x128xf32> to vector<16xf32>
      %58 = vector.shape_cast %57 : vector<16xf32> to vector<16x1xf32>
      %cst_36 = arith.constant 1.280000e+02 : f32
      %59 = vector.broadcast %cst_36 : f32 to vector<16x1xf32>
      %60 = arith.divf %58, %59 : vector<16x1xf32>
      %cst_37 = arith.constant 9.99999974E-6 : f32
      %61 = vector.broadcast %cst_37 : f32 to vector<16x1xf32>
      %62 = arith.addf %60, %61 : vector<16x1xf32>
      %63 = math.rsqrt %62 : vector<16x1xf32>
      %64 = vector.broadcast %63 : vector<16x1xf32> to vector<16x128xf32>
      %65 = arith.mulf %55, %64 : vector<16x128xf32>
      %66 = vector.broadcast %48 : vector<1x128xf32> to vector<16x128xf32>
      %67 = arith.mulf %65, %66 : vector<16x128xf32>
      %68 = vector.broadcast %49 : vector<1x128xf32> to vector<16x128xf32>
      %69 = arith.addf %67, %68 : vector<16x128xf32>
      %c0_38 = arith.constant 0 : index
      %c0_39 = arith.constant 0 : index
      %70 = vector.load %arg11[%c0_38, %c0_39] : memref<16x128xf32, #tpu.memory_space<vmem>>, vector<16x128xf32>
      tpu.vector_store %arg11[%c0_38, %c0_39], %69 {strides = array<i32>} : memref<16x128xf32, #tpu.memory_space<vmem>>, vector<16x128xf32>,
    } else {
    }
    return
  }
  func.func @transform_0(%arg0: i32, %arg1: i32) -> (i32, i32) {
    %c0_i32 = arith.constant 0 : i32
    %c0_i32_0 = arith.constant 0 : i32
    return %arg0, %c0_i32 : i32, i32
  }
  func.func @transform_1(%arg0: i32, %arg1: i32) -> (i32, i32) {
    %c0_i32 = arith.constant 0 : i32
    %c0_i32_0 = arith.constant 0 : i32
    %c0_i32_1 = arith.constant 0 : i32
    return %c0_i32, %c0_i32_0 : i32, i32
  }
  func.func @transform_2(%arg0: i32, %arg1: i32) -> (i32, i32) {
    %c0_i32 = arith.constant 0 : i32
    %c0_i32_0 = arith.constant 0 : i32
    %c0_i32_1 = arith.constant 0 : i32
    return %c0_i32, %c0_i32_0 : i32, i32
  }
  func.func @transform_3(%arg0: i32, %arg1: i32) -> (i32, i32) {
    %c0_i32 = arith.constant 0 : i32
    %c0_i32_0 = arith.constant 0 : i32
    return %c0_i32, %arg1 : i32, i32
  }
  func.func @transform_4(%arg0: i32, %arg1: i32) -> (i32, i32) {
    %c0_i32 = arith.constant 0 : i32
    %c0_i32_0 = arith.constant 0 : i32
    return %c0_i32, %arg1 : i32, i32
  }
  func.func @transform_5(%arg0: i32, %arg1: i32) -> (i32, i32) {
    %c0_i32 = arith.constant 0 : i32
    %c0_i32_0 = arith.constant 0 : i32
    return %arg1, %c0_i32 : i32, i32
  }
  func.func @transform_6(%arg0: i32, %arg1: i32) -> (i32, i32) {
    %c0_i32 = arith.constant 0 : i32
    %c0_i32_0 = arith.constant 0 : i32
    %c0_i32_1 = arith.constant 0 : i32
    return %c0_i32, %c0_i32_0 : i32, i32
  }
  func.func @transform_7(%arg0: i32, %arg1: i32) -> (i32, i32) {
    %c0_i32 = arith.constant 0 : i32
    %c0_i32_0 = arith.constant 0 : i32
    %c0_i32_1 = arith.constant 0 : i32
    return %c0_i32, %c0_i32_0 : i32, i32
  }
  func.func @transform_8(%arg0: i32, %arg1: i32) -> (i32, i32) {
    %c0_i32 = arith.constant 0 : i32
    %c0_i32_0 = arith.constant 0 : i32
    %c0_i32_1 = arith.constant 0 : i32
    return %c0_i32, %c0_i32_0 : i32, i32
  }
  func.func @transform_9(%arg0: i32, %arg1: i32) -> (i32, i32) {
    %c0_i32 = arith.constant 0 : i32
    %c0_i32_0 = arith.constant 0 : i32
    return %arg0, %c0_i32 : i32, i32
  }
}

</mosaic_0001>

<bundles_post_ra>
// kernel: transformer_forward.13
= control target key start
LH: loop header
LB: loop body
LE: loop exit
PB: predicated region body
PF: predicated region fallthrough
CT: control target
= control target key end

     0   :  { %v1003_v36 = vmov 0   ;;  %s1296_s0 = inlined_call_operand.vmem [shape: f32[16,128], index: 0, kind: input, shape index: {}]   ;;  %s1297_s3 = inlined_call_operand.vmem [shape: bf16[128,512], index: 3, kind: input, shape index: {}]   ;;  %s1298_s5 = inlined_call_operand.vmem [shape: bf16[512,128], index: 5, kind: input, shape index: {}]   ;;  %s1299_s1 = inlined_call_operand.vmem [shape: f32[1,128], index: 1, kind: input, shape index: {}]   ;;  %s1300_s2 = inlined_call_operand.vmem [shape: f32[1,128], index: 2, kind: input, shape index: {}]   ;;  %s1301_s4 = inlined_call_operand.vmem [shape: f32[1,512], index: 4, kind: input, shape index: {}]   ;;  %s1302_s6 = inlined_call_operand.vmem [shape: f32[1,128], index: 6, kind: input, shape index: {}]   ;;  %s1303_s7 = inlined_call_operand.vmem [shape: f32[1,128], index: 7, kind: input, shape index: {}]   ;;  %s1304_s8 = inlined_call_operand.vmem [shape: f32[1,128], index: 8, kind: input, shape index: {}]   ;;  %s1305_s9 = inlined_call_operand.vmem [shape: f32[16,128], index: 9, kind: output, shape index: {}]  }
   0x1   :  { %v1057_v0 = vld [vmem:[%s1296_s0] sm:$0xff]  ;;  %v1063_v1 = vld [vmem:[%s1296_s0 + $0x8] sm:$0xff]  ;;  %323 = vmatprep.mubr.bf16.mxu0 %v1003_v36  ;;  %366 = vmatprep.mubr.bf16.mxu1 %v1003_v36  ;;  %v963_v43 = vld [vmem:[%s1298_s5 + $0x78] sm:$0xff]  }
   0x2   :  { %37 = vadd.xlane.f32.xlu0 %v1057_v0  ;;  %v915_v2 = vld [vmem:[%s1297_s3 + $0xe4] ss:$16 sps:$4 sm:$0xff]   ;;  %v917_v3 = vld [vmem:[%s1297_s3 + $0xec] ss:$16 sps:$4 sm:$0xff]   ;;  %v919_v4 = vld [vmem:[%s1297_s3 + $0xe0] ss:$16 sps:$4 sm:$0xff]  }
   0x3   :  { %291 = vmatprep.subr.bf16.mxu0 %v915_v2  ;;  %v920_v5 = vld [vmem:[%s1297_s3 + $0xe8] ss:$16 sps:$4 sm:$0xff]   ;;  %334 = vmatprep.subr.bf16.mxu1 %v917_v3  ;;  %v921_v14 = vld [vmem:[%s1297_s3 + $0xc4] ss:$16 sps:$4 sm:$0xff]   ;;  %v923_v15 = vld [vmem:[%s1297_s3 + $0xcc] ss:$16 sps:$4 sm:$0xff]  }
   0x4   :  { %292 = vmatpush1.bf16.msra.mxu0 %v919_v4  ;;  %335 = vmatpush1.bf16.msra.mxu1 %v920_v5  ;;  %v925_v16 = vld [vmem:[%s1297_s3 + $0xc0] ss:$16 sps:$4 sm:$0xff]   ;;  %v926_v17 = vld [vmem:[%s1297_s3 + $0xc8] ss:$16 sps:$4 sm:$0xff]   ;;  %v927_v18 = vld [vmem:[%s1297_s3 + $0xa4] ss:$16 sps:$4 sm:$0xff]  }
   0x5   :  { %293 = vmatprep.subr.bf16.mxu0 %v921_v14  ;;  %336 = vmatprep.subr.bf16.mxu1 %v923_v15  ;;  %v929_v19 = vld [vmem:[%s1297_s3 + $0xac] ss:$16 sps:$4 sm:$0xff]   ;;  %v931_v20 = vld [vmem:[%s1297_s3 + $0xa0] ss:$16 sps:$4 sm:$0xff]   ;;  %v932_v21 = vld [vmem:[%s1297_s3 + $0xa8] ss:$16 sps:$4 sm:$0xff]  }
   0x6   :  { %39 = vadd.xlane.f32.xlu0 %v1063_v1  ;;  %v933_v22 = vld [vmem:[%s1297_s3 + $0x84] ss:$16 sps:$4 sm:$0xff]   ;;  %v935_v23 = vld [vmem:[%s1297_s3 + $0x8c] ss:$16 sps:$4 sm:$0xff]   ;;  %v937_v24 = vld [vmem:[%s1297_s3 + $0x80] ss:$16 sps:$4 sm:$0xff]  }
   0x7   :  { %v938_v25 = vld [vmem:[%s1297_s3 + $0x88] ss:$16 sps:$4 sm:$0xff]   ;;  %v939_v26 = vld [vmem:[%s1297_s3 + $0x64] ss:$16 sps:$4 sm:$0xff]   ;;  %v941_v27 = vld [vmem:[%s1297_s3 + $0x6c] ss:$16 sps:$4 sm:$0xff]  }
   0x8   :  { %294 = vmatpush1.bf16.msra.mxu0 %v925_v16  ;;  %337 = vmatpush1.bf16.msra.mxu1 %v926_v17  ;;  %v943_v28 = vld [vmem:[%s1297_s3 + $0x60] ss:$16 sps:$4 sm:$0xff]   ;;  %v944_v29 = vld [vmem:[%s1297_s3 + $0x68] ss:$16 sps:$4 sm:$0xff]   ;;  %v945_v30 = vld [vmem:[%s1297_s3 + $0x44] ss:$16 sps:$4 sm:$0xff]  }
   0x9   :  { %295 = vmatprep.subr.bf16.mxu0 %v927_v18  ;;  %338 = vmatprep.subr.bf16.mxu1 %v929_v19  ;;  %v947_v31 = vld [vmem:[%s1297_s3 + $0x4c] ss:$16 sps:$4 sm:$0xff]   ;;  %v949_v32 = vld [vmem:[%s1297_s3 + $0x40] ss:$16 sps:$4 sm:$0xff]   ;;  %v950_v33 = vld [vmem:[%s1297_s3 + $0x48] ss:$16 sps:$4 sm:$0xff]  }
   0xa   :  { %v951_v34 = vld [vmem:[%s1297_s3 + $0x24] ss:$16 sps:$4 sm:$0xff]   ;;  %v953_v35 = vld [vmem:[%s1297_s3 + $0x2c] ss:$16 sps:$4 sm:$0xff]   ;;  %v955_v37 = vld [vmem:[%s1297_s3 + $0x20] ss:$16 sps:$4 sm:$0xff]  }
   0xb   :  { %v956_v38 = vld [vmem:[%s1297_s3 + $0x28] ss:$16 sps:$4 sm:$0xff]   ;;  %v957_v39 = vld [vmem:[%s1297_s3 + $0x4] ss:$16 sps:$4 sm:$0xff]   ;;  %v959_v40 = vld [vmem:[%s1297_s3 + $0xc] ss:$16 sps:$4 sm:$0xff]  }
   0xc   :  { %296 = vmatpush1.bf16.msra.mxu0 %v931_v20  ;;  %339 = vmatpush1.bf16.msra.mxu1 %v932_v21  ;;  %v961_v41 = vld [vmem:[%s1297_s3] ss:$16 sps:$4 sm:$0xff]   ;;  %v962_v42 = vld [vmem:[%s1297_s3 + $0x8] ss:$16 sps:$4 sm:$0xff]  }
   0xd   :  { %297 = vmatprep.subr.bf16.mxu0 %v933_v22  ;;  %340 = vmatprep.subr.bf16.mxu1 %v935_v23  ;;  %v964_v44 = vld [vmem:[%s1298_s5 + $0xf8] sm:$0xff]   ;;  %v801_v53 = vld [vmem:[%s1299_s1] ss:$0 sm:$0xff]  ;;  %v967_v2 = vld [vmem:[%s1298_s5 + $0x70] sm:$0xff]  }
   0xe   :  { %v802_v57 = vld [vmem:[%s1300_s2] ss:$0 sm:$0xff]  ;;  %v965_v61 = vld [vmem:[%s1298_s5 + $0x38] sm:$0xff]   ;;  %v968_v3 = vld [vmem:[%s1298_s5 + $0xf0] sm:$0xff]  }
   0xf   :  { %v966_v62 = vld [vmem:[%s1298_s5 + $0xb8] sm:$0xff]   ;;  %v969_v4 = vld [vmem:[%s1298_s5 + $0x30] sm:$0xff]   ;;  %v987_v22 = vld [vmem:[%s1298_s5 + $0x48] sm:$0xff]  }
  0x10   :  { %298 = vmatpush1.bf16.msra.mxu0 %v937_v24  ;;  %341 = vmatpush1.bf16.msra.mxu1 %v938_v25  ;;  %v970_v5 = vld [vmem:[%s1298_s5 + $0xb0] sm:$0xff]   ;;  %v979_v14 = vld [vmem:[%s1298_s5 + $0x58] sm:$0xff]   ;;  %v988_v23 = vld [vmem:[%s1298_s5 + $0xc8] sm:$0xff]  }
  0x11   :  { %299 = vmatprep.subr.bf16.mxu0 %v939_v26  ;;  %342 = vmatprep.subr.bf16.mxu1 %v941_v27  ;;  %v980_v15 = vld [vmem:[%s1298_s5 + $0xd8] sm:$0xff]   ;;  %v983_v18 = vld [vmem:[%s1298_s5 + $0x50] sm:$0xff]   ;;  %v989_v24 = vld [vmem:[%s1298_s5 + $0x8] sm:$0xff]  }
  0x12   :  { %v981_v16 = vld [vmem:[%s1298_s5 + $0x18] sm:$0xff]   ;;  %v984_v19 = vld [vmem:[%s1298_s5 + $0xd0] sm:$0xff]   ;;  %v990_v25 = vld [vmem:[%s1298_s5 + $0x88] sm:$0xff]  }
  0x13   :  { %v982_v17 = vld [vmem:[%s1298_s5 + $0x98] sm:$0xff]   ;;  %v985_v20 = vld [vmem:[%s1298_s5 + $0x10] sm:$0xff]   ;;  %v991_v26 = vld [vmem:[%s1298_s5 + $0x40] sm:$0xff]  }
  0x14   :  { %300 = vmatpush1.bf16.msra.mxu0 %v943_v28  ;;  %343 = vmatpush1.bf16.msra.mxu1 %v944_v29  ;;  %v986_v21 = vld [vmem:[%s1298_s5 + $0x90] sm:$0xff]   ;;  %v992_v27 = vld [vmem:[%s1298_s5 + $0xc0] sm:$0xff]  }
  0x15   :  { %301 = vmatprep.subr.bf16.mxu0 %v945_v30  ;;  %344 = vmatprep.subr.bf16.mxu1 %v947_v31  ;;  %v993_v28 = vld [vmem:[%s1298_s5] sm:$0xff]   ;;  %v111_v30 = vlaneseq }
  0x16   :  { %v994_v29 = vld [vmem:[%s1298_s5 + $0x80] sm:$0xff]  }
  0x17   :  { %v112_v31 = vshrl.u32 %v111_v30, 7  ;;  %v109_v36 = vld [vmem:[%s1301_s4] sm:$0xf] }
  0x18   :  { %302 = vmatpush1.bf16.msra.mxu0 %v949_v32  ;;  %345 = vmatpush1.bf16.msra.mxu1 %v950_v33 }
  0x19   :  { %303 = vmatprep.subr.bf16.mxu0 %v951_v34  ;;  %346 = vmatprep.subr.bf16.mxu1 %v953_v35  ;;  %v117_v32 = vsub.s32 1, %v112_v31  ;;  %v125_v33 = vsub.s32 3, %v112_v31  ;;  %v113_v34 = vsub.s32 0, %v112_v31  ;;  %v121_v35 = vsub.s32 2, %v112_v31 }
  0x1c   :  { %304 = vmatpush1.bf16.msra.mxu0 %v955_v37  ;;  %347 = vmatpush1.bf16.msra.mxu1 %v956_v38 }
  0x1d   :  { %305 = vmatprep.subr.bf16.mxu0 %v957_v39  ;;  %348 = vmatprep.subr.bf16.mxu1 %v959_v40  ;;  %v118_v39 = vrot.slane %v109_v36, %v117_v32  ;;  %v126_v40 = vrot.slane %v109_v36, %v125_v33 }
  0x20   :  { %306 = vmatpush1.bf16.msra.mxu0 %v961_v41  ;;  %349 = vmatpush1.bf16.msra.mxu1 %v962_v42  ;;  %v114_v41 = vrot.slane %v109_v36, %v113_v34  ;;  %v122_v42 = vrot.slane %v109_v36, %v121_v35 }
  0x21   :  { %870 = vmatprep.subr.bf16.mxu0 %v963_v43  ;;  %892 = vmatprep.subr.bf16.mxu1 %v964_v44 }
  0x8b   :  { %v38_v6 = vpop.xlane.xlu0 %37 }
  0x8c   :  { %v42_v7 = vmul.f32 0.0078125, %v38_v6  ;;  %v971_v6 = vld [vmem:[%s1298_s5 + $0x68] sm:$0xff]  }
  0x8e   :  { %v1079_v8 = vsub.f32 %v1057_v0, %v42_v7  ;;  %v972_v7 = vld [vmem:[%s1298_s5 + $0xe8] sm:$0xff]  }
  0x8f   :  { %v40_v9 = vpop.xlane.xlu0 %39 }
  0x90   :  { %v43_v10 = vmul.f32 0.0078125, %v40_v9  ;;  %v46_v11 = vmul.f32 %v1079_v8, %v1079_v8  ;;  %v974_v9 = vld [vmem:[%s1298_s5 + $0xa8] sm:$0xff]  }
  0x92   :  { %v1084_v12 = vsub.f32 %v1063_v1, %v43_v10  ;;  %48 = vadd.xlane.f32.xlu1 %v46_v11  ;;  %v975_v10 = vld [vmem:[%s1298_s5 + $0x60] sm:$0xff]  }
  0x93   :  { %v976_v11 = vld [vmem:[%s1298_s5 + $0xe0] sm:$0xff]  }
  0x94   :  { %v47_v13 = vmul.f32 %v1084_v12, %v1084_v12 }
  0x96   :  { %50 = vadd.xlane.f32.xlu1 %v47_v13  ;;  %v978_v13 = vld [vmem:[%s1298_s5 + $0xa0] sm:$0xff]  }
 0x11b   :  { %v49_v45 = vpop.xlane.xlu1 %48 }
 0x11c   :  { %v52_v46 = vmul.f32 0.0078125, %v49_v45 }
 0x11e   :  { %v54_v47 = vadd.f32 1e-05, %v52_v46 }
 0x11f   :  { %v51_v48 = vpop.xlane.xlu1 %50 }
 0x120   :  { %995 = vrsqrt.f32 %v54_v47  ;;  %v53_v49 = vmul.f32 0.0078125, %v51_v48 }
 0x122   :  { %v55_v50 = vadd.f32 1e-05, %v53_v49 }
 0x124   :  { %997 = vrsqrt.f32 %v55_v50 }
 0x12d   :  { %v996_v51 = vpop.eup %995 }
 0x12e   :  { %v58_v52 = vmul.f32 %v996_v51, %v1079_v8  ;;  %v973_v8 = vld [vmem:[%s1298_s5 + $0x28] sm:$0xff]  }
 0x130   :  { %v66_v56 = vmul.f32 %v801_v53, %v58_v52 }
 0x131   :  { %v998_v54 = vpop.eup %997 }
 0x132   :  { %v59_v55 = vmul.f32 %v998_v54, %v1084_v12  ;;  %v74_v59 = vadd.f32 %v802_v57, %v66_v56  ;;  %v977_v12 = vld [vmem:[%s1298_s5 + $0x20] sm:$0xff]  }
 0x134   :  { %v67_v58 = vmul.f32 %v801_v53, %v59_v55 }
 0x136   :  { %v75_v60 = vadd.f32 %v802_v57, %v67_v58 }
 0x138   :  { %v76_v63 = vpack.c.bf16 %v75_v60, %v74_v59 }
 0x13a   :  { %324 = vmatmul.mubr.bf16.vlgmr.msra.gmra.mxu0 %v76_v63  ;;  %367 = vmatmul.mubr.bf16.vlgmr.msra.gmra.mxu1 %v76_v63 }
 0x13b   :  { %871 = vmatpush3.bf16.msra.mxu0 %v965_v61  ;;  %893 = vmatpush3.bf16.msra.mxu1 %v966_v62 }
 0x13c   :  { %872 = vmatprep.subr.bf16.mxu0 %v967_v2  ;;  %894 = vmatprep.subr.bf16.mxu1 %v968_v3 }
 0x13f   :  { %873 = vmatpush3.bf16.msra.mxu0 %v969_v4  ;;  %895 = vmatpush3.bf16.msra.mxu1 %v970_v5 }
 0x140   :  { %874 = vmatprep.subr.bf16.mxu0 %v971_v6  ;;  %896 = vmatprep.subr.bf16.mxu1 %v972_v7 }
 0x143   :  { %875 = vmatpush3.bf16.msra.mxu0 %v973_v8  ;;  %897 = vmatpush3.bf16.msra.mxu1 %v974_v9 }
 0x144   :  { %876 = vmatprep.subr.bf16.mxu0 %v975_v10  ;;  %898 = vmatprep.subr.bf16.mxu1 %v976_v11 }
 0x147   :  { %877 = vmatpush3.bf16.msra.mxu0 %v977_v12  ;;  %899 = vmatpush3.bf16.msra.mxu1 %v978_v13 }
 0x148   :  { %878 = vmatprep.subr.bf16.mxu0 %v979_v14  ;;  %900 = vmatprep.subr.bf16.mxu1 %v980_v15 }
 0x14b   :  { %879 = vmatpush3.bf16.msra.mxu0 %v981_v16  ;;  %901 = vmatpush3.bf16.msra.mxu1 %v982_v17 }
 0x14c   :  { %880 = vmatprep.subr.bf16.mxu0 %v983_v18  ;;  %902 = vmatprep.subr.bf16.mxu1 %v984_v19  ;;  %v867_v18 = vld [vmem:[%s1302_s6] ss:$0 sm:$0xff] }
 0x14f   :  { %881 = vmatpush3.bf16.msra.mxu0 %v985_v20  ;;  %903 = vmatpush3.bf16.msra.mxu1 %v986_v21 }
 0x150   :  { %882 = vmatprep.subr.bf16.mxu0 %v987_v22  ;;  %904 = vmatprep.subr.bf16.mxu1 %v988_v23 }
 0x153   :  { %883 = vmatpush3.bf16.msra.mxu0 %v989_v24  ;;  %905 = vmatpush3.bf16.msra.mxu1 %v990_v25 }
 0x154   :  { %884 = vmatprep.subr.bf16.mxu0 %v991_v26  ;;  %906 = vmatprep.subr.bf16.mxu1 %v992_v27 }
 0x157   :  { %885 = vmatpush3.bf16.msra.mxu0 %v993_v28  ;;  %907 = vmatpush3.bf16.msra.mxu1 %v994_v29 }
 0x1fa   :  { %v325_v37 = vpop.f32.mrf.mxu0  ;;  %v368_v38 = vpop.f32.mrf.mxu1 }
 0x1fb   :  { %v326_v51 = vadd.f32 %v325_v37, %v114_v41  ;;  %v369_v52 = vadd.f32 %v368_v38, %v122_v42 }
 0x1fc   :  { %v327_v43 = vpop.f32.mrf.mxu0  ;;  %v370_v44 = vpop.f32.mrf.mxu1 }
 0x1fd   :  { %v328_v47 = vadd.f32 %v327_v43, %v118_v39  ;;  %v371_v48 = vadd.f32 %v370_v44, %v126_v40  ;;  %v377_v63 = vmax.f32 %v326_v51, 0.0  ;;  %v379_v2 = vmax.f32 %v369_v52, 0.0 }
 0x1fe   :  { %v329_v45 = vpop.f32.mrf.mxu0  ;;  %v372_v46 = vpop.f32.mrf.mxu1 }
 0x1ff   :  { %v330_v49 = vadd.f32 %v329_v45, %v114_v41  ;;  %v373_v50 = vadd.f32 %v372_v46, %v122_v42  ;;  %v378_v59 = vmax.f32 %v328_v47, 0.0  ;;  %v380_v60 = vmax.f32 %v371_v48, 0.0  ;;  %v869_v41 = vld [vmem:[%s1304_s8] ss:$0 sm:$0xff] }
 0x200   :  { %v331_v53 = vpop.f32.mrf.mxu0  ;;  %v374_v54 = vpop.f32.mrf.mxu1 }
 0x201   :  { %v332_v55 = vadd.f32 %v331_v53, %v118_v39  ;;  %v375_v56 = vadd.f32 %v374_v54, %v126_v40  ;;  %v381_v57 = vmax.f32 %v330_v49, 0.0  ;;  %v383_v58 = vmax.f32 %v373_v50, 0.0  ;;  %v868_v39 = vld [vmem:[%s1303_s7] ss:$0 sm:$0xff] }
 0x203   :  { %v382_v61 = vmax.f32 %v332_v55, 0.0  ;;  %v384_v62 = vmax.f32 %v375_v56, 0.0  ;;  %v385_v5 = vpack.c.bf16 %v381_v57, %v377_v63  ;;  %v387_v6 = vpack.c.bf16 %v383_v58, %v379_v2 }
 0x205   :  { %v386_v3 = vpack.c.bf16 %v382_v61, %v378_v59  ;;  %v388_v4 = vpack.c.bf16 %v384_v62, %v380_v60 }
 0x207   :  { %677 = vmatprep.mubr.bf16.mxu0 %v386_v3  ;;  %718 = vmatprep.mubr.bf16.mxu1 %v388_v4 }
 0x208   :  { %678 = vmatmul.mubr.bf16.vlgmr.msra.gmra.mxu0 %v385_v5  ;;  %719 = vmatmul.mubr.bf16.vlgmr.msra.gmra.mxu1 %v387_v6 }
 0x2c8   :  { %v886_v7 = vpop.f32.mrf.mxu0  ;;  %v908_v8 = vpop.f32.mrf.mxu1 }
 0x2ca   :  { %v887_v9 = vpop.f32.mrf.mxu0  ;;  %v909_v10 = vpop.f32.mrf.mxu1 }
 0x2cb   :  { %v888_v11 = vadd.f32 %v887_v9, %v886_v7  ;;  %v910_v12 = vadd.f32 %v909_v10, %v908_v8 }
 0x2cc   :  { %v889_v13 = vpop.f32.mrf.mxu0  ;;  %v911_v14 = vpop.f32.mrf.mxu1 }
 0x2cd   :  { %v721_v15 = vadd.f32 %v910_v12, %v888_v11 }
 0x2ce   :  { %v890_v16 = vpop.f32.mrf.mxu0  ;;  %v912_v17 = vpop.f32.mrf.mxu1 }
 0x2cf   :  { %v891_v19 = vadd.f32 %v890_v16, %v889_v13  ;;  %v913_v20 = vadd.f32 %v912_v17, %v911_v14  ;;  %v744_v21 = vadd.f32 %v721_v15, %v1057_v0 }
 0x2d1   :  { %v724_v22 = vadd.f32 %v913_v20, %v891_v19  ;;  %v753_v23 = vadd.f32 %v867_v18, %v744_v21 }
 0x2d3   :  { %757 = vadd.xlane.f32.xlu0 %v753_v23  ;;  %v745_v24 = vadd.f32 %v724_v22, %v1063_v1 }
 0x2d5   :  { %v754_v25 = vadd.f32 %v867_v18, %v745_v24 }
 0x2d7   :  { %759 = vadd.xlane.f32.xlu1 %v754_v25 }
 0x35c   :  { %v758_v26 = vpop.xlane.xlu0 %757 }
 0x35d   :  { %v761_v27 = vmul.f32 0.0078125, %v758_v26 }
 0x35f   :  { %v763_v28 = vsub.f32 %v753_v23, %v761_v27 }
 0x360   :  { %v760_v29 = vpop.xlane.xlu1 %759 }
 0x361   :  { %v762_v30 = vmul.f32 0.0078125, %v760_v29  ;;  %v765_v31 = vmul.f32 %v763_v28, %v763_v28 }
 0x363   :  { %v764_v32 = vsub.f32 %v754_v25, %v762_v30  ;;  %767 = vadd.xlane.f32.xlu0 %v765_v31 }
 0x365   :  { %v766_v33 = vmul.f32 %v764_v32, %v764_v32 }
 0x367   :  { %769 = vadd.xlane.f32.xlu1 %v766_v33 }
 0x3ec   :  { %v768_v34 = vpop.xlane.xlu0 %767 }
 0x3ed   :  { %v771_v35 = vmul.f32 0.0078125, %v768_v34 }
 0x3ef   :  { %v773_v0 = vadd.f32 1e-05, %v771_v35 }
 0x3f0   :  { %v770_v36 = vpop.xlane.xlu1 %769 }
 0x3f1   :  { %999 = vrsqrt.f32 %v773_v0  ;;  %v772_v37 = vmul.f32 0.0078125, %v770_v36 }
 0x3f3   :  { %v774_v38 = vadd.f32 1e-05, %v772_v37 }
 0x3f5   :  { %1001 = vrsqrt.f32 %v774_v38 }
 0x3fe   :  { %v1000_v1 = vpop.eup %999 }
 0x3ff   :  { %v777_v40 = vmul.f32 %v1000_v1, %v763_v28 }
 0x401   :  { %v785_v42 = vmul.f32 %v868_v39, %v777_v40 }
 0x402   :  { %v1002_v43 = vpop.eup %1001 }
 0x403   :  { %v793_v44 = vadd.f32 %v869_v41, %v785_v42  ;;  %v778_v45 = vmul.f32 %v1002_v43, %v764_v32 }
 0x405   :  { %795 = vst [vmem:[%s1305_s9] sm:$0xff] %v793_v44  ;;  %v786_v46 = vmul.f32 %v868_v39, %v778_v45 }
 0x407   :  { %v794_v47 = vadd.f32 %v869_v41, %v786_v46 }
 0x409   :  { %796 = vst [vmem:[%s1305_s9 + $0x8] sm:$0xff] %v794_v47 }

// kernel: transformer_forward.11
= control target key start
LH: loop header
LB: loop body
LE: loop exit
PB: predicated region body
PF: predicated region fallthrough
CT: control target
= control target key end

     0   :  { %v951_v36 = vmov 0   ;;  %s1228_s0 = inlined_call_operand.vmem [shape: f32[16,128], index: 0, kind: input, shape index: {}]   ;;  %s1229_s3 = inlined_call_operand.vmem [shape: bf16[128,512], index: 3, kind: input, shape index: {}]   ;;  %s1230_s5 = inlined_call_operand.vmem [shape: bf16[512,128], index: 5, kind: input, shape index: {}]   ;;  %s1231_s1 = inlined_call_operand.vmem [shape: f32[1,128], index: 1, kind: input, shape index: {}]   ;;  %s1232_s2 = inlined_call_operand.vmem [shape: f32[1,128], index: 2, kind: input, shape index: {}]   ;;  %s1233_s4 = inlined_call_operand.vmem [shape: f32[1,512], index: 4, kind: input, shape index: {}]   ;;  %s1234_s6 = inlined_call_operand.vmem [shape: f32[1,128], index: 6, kind: input, shape index: {}]   ;;  %s1235_s7 = inlined_call_operand.vmem [shape: f32[16,128], index: 7, kind: output, shape index: {}]  }
   0x1   :  { %v995_v0 = vld [vmem:[%s1228_s0] sm:$0xff]  ;;  %v1001_v1 = vld [vmem:[%s1228_s0 + $0x8] sm:$0xff]  ;;  %317 = vmatprep.mubr.bf16.mxu0 %v951_v36  ;;  %360 = vmatprep.mubr.bf16.mxu1 %v951_v36  ;;  %v915_v43 = vld [vmem:[%s1230_s5 + $0x78] sm:$0xff]  }
   0x2   :  { %31 = vadd.xlane.f32.xlu0 %v995_v0  ;;  %v867_v2 = vld [vmem:[%s1229_s3 + $0xe4] ss:$16 sps:$4 sm:$0xff]   ;;  %v869_v3 = vld [vmem:[%s1229_s3 + $0xec] ss:$16 sps:$4 sm:$0xff]   ;;  %v871_v4 = vld [vmem:[%s1229_s3 + $0xe0] ss:$16 sps:$4 sm:$0xff]  }
   0x3   :  { %285 = vmatprep.subr.bf16.mxu0 %v867_v2  ;;  %v872_v5 = vld [vmem:[%s1229_s3 + $0xe8] ss:$16 sps:$4 sm:$0xff]   ;;  %328 = vmatprep.subr.bf16.mxu1 %v869_v3  ;;  %v873_v14 = vld [vmem:[%s1229_s3 + $0xc4] ss:$16 sps:$4 sm:$0xff]   ;;  %v875_v15 = vld [vmem:[%s1229_s3 + $0xcc] ss:$16 sps:$4 sm:$0xff]  }
   0x4   :  { %286 = vmatpush1.bf16.msra.mxu0 %v871_v4  ;;  %329 = vmatpush1.bf16.msra.mxu1 %v872_v5  ;;  %v877_v16 = vld [vmem:[%s1229_s3 + $0xc0] ss:$16 sps:$4 sm:$0xff]   ;;  %v878_v17 = vld [vmem:[%s1229_s3 + $0xc8] ss:$16 sps:$4 sm:$0xff]   ;;  %v879_v18 = vld [vmem:[%s1229_s3 + $0xa4] ss:$16 sps:$4 sm:$0xff]  }
   0x5   :  { %287 = vmatprep.subr.bf16.mxu0 %v873_v14  ;;  %330 = vmatprep.subr.bf16.mxu1 %v875_v15  ;;  %v881_v19 = vld [vmem:[%s1229_s3 + $0xac] ss:$16 sps:$4 sm:$0xff]   ;;  %v883_v20 = vld [vmem:[%s1229_s3 + $0xa0] ss:$16 sps:$4 sm:$0xff]   ;;  %v884_v21 = vld [vmem:[%s1229_s3 + $0xa8] ss:$16 sps:$4 sm:$0xff]  }
   0x6   :  { %33 = vadd.xlane.f32.xlu0 %v1001_v1  ;;  %v885_v22 = vld [vmem:[%s1229_s3 + $0x84] ss:$16 sps:$4 sm:$0xff]   ;;  %v887_v23 = vld [vmem:[%s1229_s3 + $0x8c] ss:$16 sps:$4 sm:$0xff]   ;;  %v889_v24 = vld [vmem:[%s1229_s3 + $0x80] ss:$16 sps:$4 sm:$0xff]  }
   0x7   :  { %v890_v25 = vld [vmem:[%s1229_s3 + $0x88] ss:$16 sps:$4 sm:$0xff]   ;;  %v891_v26 = vld [vmem:[%s1229_s3 + $0x64] ss:$16 sps:$4 sm:$0xff]   ;;  %v893_v27 = vld [vmem:[%s1229_s3 + $0x6c] ss:$16 sps:$4 sm:$0xff]  }
   0x8   :  { %288 = vmatpush1.bf16.msra.mxu0 %v877_v16  ;;  %331 = vmatpush1.bf16.msra.mxu1 %v878_v17  ;;  %v895_v28 = vld [vmem:[%s1229_s3 + $0x60] ss:$16 sps:$4 sm:$0xff]   ;;  %v896_v29 = vld [vmem:[%s1229_s3 + $0x68] ss:$16 sps:$4 sm:$0xff]   ;;  %v897_v30 = vld [vmem:[%s1229_s3 + $0x44] ss:$16 sps:$4 sm:$0xff]  }
   0x9   :  { %289 = vmatprep.subr.bf16.mxu0 %v879_v18  ;;  %332 = vmatprep.subr.bf16.mxu1 %v881_v19  ;;  %v899_v31 = vld [vmem:[%s1229_s3 + $0x4c] ss:$16 sps:$4 sm:$0xff]   ;;  %v901_v32 = vld [vmem:[%s1229_s3 + $0x40] ss:$16 sps:$4 sm:$0xff]   ;;  %v902_v33 = vld [vmem:[%s1229_s3 + $0x48] ss:$16 sps:$4 sm:$0xff]  }
   0xa   :  { %v903_v34 = vld [vmem:[%s1229_s3 + $0x24] ss:$16 sps:$4 sm:$0xff]   ;;  %v905_v35 = vld [vmem:[%s1229_s3 + $0x2c] ss:$16 sps:$4 sm:$0xff]   ;;  %v907_v37 = vld [vmem:[%s1229_s3 + $0x20] ss:$16 sps:$4 sm:$0xff]  }
   0xb   :  { %v908_v38 = vld [vmem:[%s1229_s3 + $0x28] ss:$16 sps:$4 sm:$0xff]   ;;  %v909_v39 = vld [vmem:[%s1229_s3 + $0x4] ss:$16 sps:$4 sm:$0xff]   ;;  %v911_v40 = vld [vmem:[%s1229_s3 + $0xc] ss:$16 sps:$4 sm:$0xff]  }
   0xc   :  { %290 = vmatpush1.bf16.msra.mxu0 %v883_v20  ;;  %333 = vmatpush1.bf16.msra.mxu1 %v884_v21  ;;  %v913_v41 = vld [vmem:[%s1229_s3] ss:$16 sps:$4 sm:$0xff]   ;;  %v914_v42 = vld [vmem:[%s1229_s3 + $0x8] ss:$16 sps:$4 sm:$0xff]  }
   0xd   :  { %291 = vmatprep.subr.bf16.mxu0 %v885_v22  ;;  %334 = vmatprep.subr.bf16.mxu1 %v887_v23  ;;  %v916_v44 = vld [vmem:[%s1230_s5 + $0xf8] sm:$0xff]   ;;  %v755_v53 = vld [vmem:[%s1231_s1] ss:$0 sm:$0xff]  ;;  %v919_v2 = vld [vmem:[%s1230_s5 + $0x70] sm:$0xff]  }
   0xe   :  { %v756_v57 = vld [vmem:[%s1232_s2] ss:$0 sm:$0xff]  ;;  %v917_v61 = vld [vmem:[%s1230_s5 + $0x38] sm:$0xff]   ;;  %v920_v3 = vld [vmem:[%s1230_s5 + $0xf0] sm:$0xff]  }
   0xf   :  { %v918_v62 = vld [vmem:[%s1230_s5 + $0xb8] sm:$0xff]   ;;  %v921_v4 = vld [vmem:[%s1230_s5 + $0x30] sm:$0xff]   ;;  %v939_v22 = vld [vmem:[%s1230_s5 + $0x48] sm:$0xff]  }
  0x10   :  { %292 = vmatpush1.bf16.msra.mxu0 %v889_v24  ;;  %335 = vmatpush1.bf16.msra.mxu1 %v890_v25  ;;  %v922_v5 = vld [vmem:[%s1230_s5 + $0xb0] sm:$0xff]   ;;  %v931_v14 = vld [vmem:[%s1230_s5 + $0x58] sm:$0xff]   ;;  %v940_v23 = vld [vmem:[%s1230_s5 + $0xc8] sm:$0xff]  }
  0x11   :  { %293 = vmatprep.subr.bf16.mxu0 %v891_v26  ;;  %336 = vmatprep.subr.bf16.mxu1 %v893_v27  ;;  %v932_v15 = vld [vmem:[%s1230_s5 + $0xd8] sm:$0xff]   ;;  %v935_v18 = vld [vmem:[%s1230_s5 + $0x50] sm:$0xff]   ;;  %v941_v24 = vld [vmem:[%s1230_s5 + $0x8] sm:$0xff]  }
  0x12   :  { %v933_v16 = vld [vmem:[%s1230_s5 + $0x18] sm:$0xff]   ;;  %v936_v19 = vld [vmem:[%s1230_s5 + $0xd0] sm:$0xff]   ;;  %v942_v25 = vld [vmem:[%s1230_s5 + $0x88] sm:$0xff]  }
  0x13   :  { %v934_v17 = vld [vmem:[%s1230_s5 + $0x98] sm:$0xff]   ;;  %v937_v20 = vld [vmem:[%s1230_s5 + $0x10] sm:$0xff]   ;;  %v943_v26 = vld [vmem:[%s1230_s5 + $0x40] sm:$0xff]  }
  0x14   :  { %294 = vmatpush1.bf16.msra.mxu0 %v895_v28  ;;  %337 = vmatpush1.bf16.msra.mxu1 %v896_v29  ;;  %v938_v21 = vld [vmem:[%s1230_s5 + $0x90] sm:$0xff]   ;;  %v944_v27 = vld [vmem:[%s1230_s5 + $0xc0] sm:$0xff]  }
  0x15   :  { %295 = vmatprep.subr.bf16.mxu0 %v897_v30  ;;  %338 = vmatprep.subr.bf16.mxu1 %v899_v31  ;;  %v945_v28 = vld [vmem:[%s1230_s5] sm:$0xff]   ;;  %v105_v30 = vlaneseq }
  0x16   :  { %v946_v29 = vld [vmem:[%s1230_s5 + $0x80] sm:$0xff]  }
  0x17   :  { %v106_v31 = vshrl.u32 %v105_v30, 7  ;;  %v103_v36 = vld [vmem:[%s1233_s4] sm:$0xf] }
  0x18   :  { %296 = vmatpush1.bf16.msra.mxu0 %v901_v32  ;;  %339 = vmatpush1.bf16.msra.mxu1 %v902_v33 }
  0x19   :  { %297 = vmatprep.subr.bf16.mxu0 %v903_v34  ;;  %340 = vmatprep.subr.bf16.mxu1 %v905_v35  ;;  %v111_v32 = vsub.s32 1, %v106_v31  ;;  %v119_v33 = vsub.s32 3, %v106_v31  ;;  %v107_v34 = vsub.s32 0, %v106_v31  ;;  %v115_v35 = vsub.s32 2, %v106_v31 }
  0x1c   :  { %298 = vmatpush1.bf16.msra.mxu0 %v907_v37  ;;  %341 = vmatpush1.bf16.msra.mxu1 %v908_v38 }
  0x1d   :  { %299 = vmatprep.subr.bf16.mxu0 %v909_v39  ;;  %342 = vmatprep.subr.bf16.mxu1 %v911_v40  ;;  %v112_v39 = vrot.slane %v103_v36, %v111_v32  ;;  %v120_v40 = vrot.slane %v103_v36, %v119_v33 }
  0x20   :  { %300 = vmatpush1.bf16.msra.mxu0 %v913_v41  ;;  %343 = vmatpush1.bf16.msra.mxu1 %v914_v42  ;;  %v108_v41 = vrot.slane %v103_v36, %v107_v34  ;;  %v116_v42 = vrot.slane %v103_v36, %v115_v35 }
  0x21   :  { %822 = vmatprep.subr.bf16.mxu0 %v915_v43  ;;  %844 = vmatprep.subr.bf16.mxu1 %v916_v44 }
  0x8b   :  { %v32_v6 = vpop.xlane.xlu0 %31 }
  0x8c   :  { %v36_v7 = vmul.f32 0.0078125, %v32_v6  ;;  %v923_v6 = vld [vmem:[%s1230_s5 + $0x68] sm:$0xff]  }
  0x8e   :  { %v1017_v8 = vsub.f32 %v995_v0, %v36_v7  ;;  %v924_v7 = vld [vmem:[%s1230_s5 + $0xe8] sm:$0xff]  }
  0x8f   :  { %v34_v9 = vpop.xlane.xlu0 %33 }
  0x90   :  { %v37_v10 = vmul.f32 0.0078125, %v34_v9  ;;  %v40_v11 = vmul.f32 %v1017_v8, %v1017_v8  ;;  %v926_v9 = vld [vmem:[%s1230_s5 + $0xa8] sm:$0xff]  }
  0x92   :  { %v1022_v12 = vsub.f32 %v1001_v1, %v37_v10  ;;  %42 = vadd.xlane.f32.xlu1 %v40_v11  ;;  %v927_v10 = vld [vmem:[%s1230_s5 + $0x60] sm:$0xff]  }
  0x93   :  { %v928_v11 = vld [vmem:[%s1230_s5 + $0xe0] sm:$0xff]  }
  0x94   :  { %v41_v13 = vmul.f32 %v1022_v12, %v1022_v12 }
  0x96   :  { %44 = vadd.xlane.f32.xlu1 %v41_v13  ;;  %v930_v13 = vld [vmem:[%s1230_s5 + $0xa0] sm:$0xff]  }
 0x11b   :  { %v43_v45 = vpop.xlane.xlu1 %42 }
 0x11c   :  { %v46_v46 = vmul.f32 0.0078125, %v43_v45 }
 0x11e   :  { %v48_v47 = vadd.f32 1e-05, %v46_v46 }
 0x11f   :  { %v45_v48 = vpop.xlane.xlu1 %44 }
 0x120   :  { %947 = vrsqrt.f32 %v48_v47  ;;  %v47_v49 = vmul.f32 0.0078125, %v45_v48 }
 0x122   :  { %v49_v50 = vadd.f32 1e-05, %v47_v49 }
 0x124   :  { %949 = vrsqrt.f32 %v49_v50 }
 0x12d   :  { %v948_v51 = vpop.eup %947 }
 0x12e   :  { %v52_v52 = vmul.f32 %v948_v51, %v1017_v8  ;;  %v925_v8 = vld [vmem:[%s1230_s5 + $0x28] sm:$0xff]  }
 0x130   :  { %v60_v56 = vmul.f32 %v755_v53, %v52_v52 }
 0x131   :  { %v950_v54 = vpop.eup %949 }
 0x132   :  { %v53_v55 = vmul.f32 %v950_v54, %v1022_v12  ;;  %v68_v59 = vadd.f32 %v756_v57, %v60_v56  ;;  %v929_v12 = vld [vmem:[%s1230_s5 + $0x20] sm:$0xff]  }
 0x134   :  { %v61_v58 = vmul.f32 %v755_v53, %v53_v55 }
 0x136   :  { %v69_v60 = vadd.f32 %v756_v57, %v61_v58 }
 0x138   :  { %v70_v63 = vpack.c.bf16 %v69_v60, %v68_v59 }
 0x13a   :  { %318 = vmatmul.mubr.bf16.vlgmr.msra.gmra.mxu0 %v70_v63  ;;  %361 = vmatmul.mubr.bf16.vlgmr.msra.gmra.mxu1 %v70_v63 }
 0x13b   :  { %823 = vmatpush3.bf16.msra.mxu0 %v917_v61  ;;  %845 = vmatpush3.bf16.msra.mxu1 %v918_v62 }
 0x13c   :  { %824 = vmatprep.subr.bf16.mxu0 %v919_v2  ;;  %846 = vmatprep.subr.bf16.mxu1 %v920_v3 }
 0x13f   :  { %825 = vmatpush3.bf16.msra.mxu0 %v921_v4  ;;  %847 = vmatpush3.bf16.msra.mxu1 %v922_v5 }
 0x140   :  { %826 = vmatprep.subr.bf16.mxu0 %v923_v6  ;;  %848 = vmatprep.subr.bf16.mxu1 %v924_v7 }
 0x143   :  { %827 = vmatpush3.bf16.msra.mxu0 %v925_v8  ;;  %849 = vmatpush3.bf16.msra.mxu1 %v926_v9 }
 0x144   :  { %828 = vmatprep.subr.bf16.mxu0 %v927_v10  ;;  %850 = vmatprep.subr.bf16.mxu1 %v928_v11 }
 0x147   :  { %829 = vmatpush3.bf16.msra.mxu0 %v929_v12  ;;  %851 = vmatpush3.bf16.msra.mxu1 %v930_v13 }
 0x148   :  { %830 = vmatprep.subr.bf16.mxu0 %v931_v14  ;;  %852 = vmatprep.subr.bf16.mxu1 %v932_v15 }
 0x14b   :  { %831 = vmatpush3.bf16.msra.mxu0 %v933_v16  ;;  %853 = vmatpush3.bf16.msra.mxu1 %v934_v17  ;;  %v821_v16 = vld [vmem:[%s1234_s6] ss:$0 sm:$0xff] }
 0x14c   :  { %832 = vmatprep.subr.bf16.mxu0 %v935_v18  ;;  %854 = vmatprep.subr.bf16.mxu1 %v936_v19 }
 0x14f   :  { %833 = vmatpush3.bf16.msra.mxu0 %v937_v20  ;;  %855 = vmatpush3.bf16.msra.mxu1 %v938_v21 }
 0x150   :  { %834 = vmatprep.subr.bf16.mxu0 %v939_v22  ;;  %856 = vmatprep.subr.bf16.mxu1 %v940_v23 }
 0x153   :  { %835 = vmatpush3.bf16.msra.mxu0 %v941_v24  ;;  %857 = vmatpush3.bf16.msra.mxu1 %v942_v25 }
 0x154   :  { %836 = vmatprep.subr.bf16.mxu0 %v943_v26  ;;  %858 = vmatprep.subr.bf16.mxu1 %v944_v27 }
 0x157   :  { %837 = vmatpush3.bf16.msra.mxu0 %v945_v28  ;;  %859 = vmatpush3.bf16.msra.mxu1 %v946_v29 }
 0x1fa   :  { %v319_v37 = vpop.f32.mrf.mxu0  ;;  %v362_v38 = vpop.f32.mrf.mxu1 }
 0x1fb   :  { %v320_v51 = vadd.f32 %v319_v37, %v108_v41  ;;  %v363_v52 = vadd.f32 %v362_v38, %v116_v42 }
 0x1fc   :  { %v321_v43 = vpop.f32.mrf.mxu0  ;;  %v364_v44 = vpop.f32.mrf.mxu1 }
 0x1fd   :  { %v322_v47 = vadd.f32 %v321_v43, %v112_v39  ;;  %v365_v48 = vadd.f32 %v364_v44, %v120_v40  ;;  %v371_v63 = vmax.f32 %v320_v51, 0.0  ;;  %v373_v2 = vmax.f32 %v363_v52, 0.0 }
 0x1fe   :  { %v323_v45 = vpop.f32.mrf.mxu0  ;;  %v366_v46 = vpop.f32.mrf.mxu1 }
 0x1ff   :  { %v324_v49 = vadd.f32 %v323_v45, %v108_v41  ;;  %v367_v50 = vadd.f32 %v366_v46, %v116_v42  ;;  %v372_v59 = vmax.f32 %v322_v47, 0.0  ;;  %v374_v60 = vmax.f32 %v365_v48, 0.0 }
 0x200   :  { %v325_v53 = vpop.f32.mrf.mxu0  ;;  %v368_v54 = vpop.f32.mrf.mxu1 }
 0x201   :  { %v326_v55 = vadd.f32 %v325_v53, %v112_v39  ;;  %v369_v56 = vadd.f32 %v368_v54, %v120_v40  ;;  %v375_v57 = vmax.f32 %v324_v49, 0.0  ;;  %v377_v58 = vmax.f32 %v367_v50, 0.0 }
 0x203   :  { %v376_v61 = vmax.f32 %v326_v55, 0.0  ;;  %v378_v62 = vmax.f32 %v369_v56, 0.0  ;;  %v379_v5 = vpack.c.bf16 %v375_v57, %v371_v63  ;;  %v381_v6 = vpack.c.bf16 %v377_v58, %v373_v2 }
 0x205   :  { %v380_v3 = vpack.c.bf16 %v376_v61, %v372_v59  ;;  %v382_v4 = vpack.c.bf16 %v378_v62, %v374_v60 }
 0x207   :  { %671 = vmatprep.mubr.bf16.mxu0 %v380_v3  ;;  %712 = vmatprep.mubr.bf16.mxu1 %v382_v4 }
 0x208   :  { %672 = vmatmul.mubr.bf16.vlgmr.msra.gmra.mxu0 %v379_v5  ;;  %713 = vmatmul.mubr.bf16.vlgmr.msra.gmra.mxu1 %v381_v6 }
 0x2c8   :  { %v838_v7 = vpop.f32.mrf.mxu0  ;;  %v860_v8 = vpop.f32.mrf.mxu1 }
 0x2ca   :  { %v839_v9 = vpop.f32.mrf.mxu0  ;;  %v861_v10 = vpop.f32.mrf.mxu1 }
 0x2cb   :  { %v840_v11 = vadd.f32 %v839_v9, %v838_v7  ;;  %v862_v12 = vadd.f32 %v861_v10, %v860_v8 }
 0x2cc   :  { %v841_v13 = vpop.f32.mrf.mxu0  ;;  %v863_v14 = vpop.f32.mrf.mxu1 }
 0x2cd   :  { %v715_v15 = vadd.f32 %v862_v12, %v840_v11 }
 0x2ce   :  { %v842_v17 = vpop.f32.mrf.mxu0  ;;  %v864_v18 = vpop.f32.mrf.mxu1 }
 0x2cf   :  { %v738_v19 = vadd.f32 %v715_v15, %v995_v0  ;;  %v843_v20 = vadd.f32 %v842_v17, %v841_v13  ;;  %v865_v21 = vadd.f32 %v864_v18, %v863_v14 }
 0x2d1   :  { %v747_v22 = vadd.f32 %v821_v16, %v738_v19  ;;  %v718_v23 = vadd.f32 %v865_v21, %v843_v20 }
 0x2d3   :  { %749 = vst [vmem:[%s1235_s7] sm:$0xff] %v747_v22  ;;  %v739_v24 = vadd.f32 %v718_v23, %v1001_v1 }
 0x2d5   :  { %v748_v25 = vadd.f32 %v821_v16, %v739_v24 }
 0x2d7   :  { %750 = vst [vmem:[%s1235_s7 + $0x8] sm:$0xff] %v748_v25 }

// kernel: transformer_forward.14
= control target key start
LH: loop header
LB: loop body
LE: loop exit
PB: predicated region body
PF: predicated region fallthrough
CT: control target
= control target key end

     0   :  { %s1988_s25 = smov 0   ;;  %s1990_s26 = smov 0   ;;  %s2263_s0 = inlined_call_operand.vmem [shape: f32[2,8,128], index: 0, kind: input, shape index: {}, may-alias: {0,1}]   ;;  %s2264_s1 = inlined_call_operand.vmem [shape: f32[2,8,128], index: 1, kind: input, shape index: {}, may-alias: {0,1}]   ;;  %s2265_s2 = inlined_call_operand.vmem [shape: f32[2,1,8], index: 2, kind: input, shape index: {}]   ;;  %s2266_s3 = inlined_call_operand.vmem [shape: f32[1,128], index: 3, kind: input, shape index: {}]   ;;  %s2267_s4 = inlined_call_operand.vmem [shape: f32[1,128], index: 4, kind: input, shape index: {}]   ;;  %s2268_s5 = inlined_call_operand.vmem [shape: bf16[128,128], index: 5, kind: input, shape index: {}]   ;;  %s2269_s6 = inlined_call_operand.vmem [shape: f32[1,128], index: 6, kind: input, shape index: {}]   ;;  %s2270_s7 = inlined_call_operand.vmem [shape: bf16[128,128], index: 7, kind: input, shape index: {}]   ;;  %s2271_s8 = inlined_call_operand.vmem [shape: f32[1,128], index: 8, kind: input, shape index: {}]   ;;  %s2272_s9 = inlined_call_operand.vmem [shape: bf16[128,128], index: 9, kind: input, shape index: {}]   ;;  %s2273_s10 = inlined_call_operand.vmem [shape: f32[1,128], index: 10, kind: input, shape index: {}]   ;;  %s2274_s11 = inlined_call_operand.vmem [shape: bf16[128,128], index: 11, kind: input, shape index: {}]   ;;  %s2275_s12 = inlined_call_operand.vmem [shape: f32[1,128], index: 12, kind: input, shape index: {}]   ;;  %s2276_s13 = inlined_call_operand.vmem [shape: f32[2,8,128], index: 13, kind: output, shape index: {}]  }
   0x1   :  { %s1992_s27 = smov 0  }
   0x2 LB: > { %s35_s28 = sadd.s32 1, %s1907_s26  ;;  %p1576_p0 = scmp.ge.s32.totalorder %s1911_s27, 1  ;;  %s1911_s27 = sphi %s1992_s27, %s23_s27   ;;  %s1907_s26 = sphi %s1990_s26, %s2278_s26   ;;  %s1903_s25 = sphi %s1988_s25, %s2277_s25  }
   0x3   : > { %p37_p1 = scmp.ge.s32.totalorder %s35_s28, 2  ;;  %p422_p2 = scmp.lt.s32.totalorder %s1911_s27, 3 }
   0x5   : > { %s2280_s28 = smov (%p37_p1, %s35_s28), 0  ;;  %p423_p3 = pnand %p1576_p0, %p422_p2 }
   0x6   : > { %p477_p4 = scmp.lt.s32.totalorder (!%p423_p3), %s1903_s25, 1  ;;  %s1916_s16 = smov (!%p423_p3), 32  }
   0x7   : > { %426 = sbr.rel (%p423_p3) target bundleno = 1718 (0x6b6), region = 72  ;;  %s1917_s17 = smov (!%p423_p3), 64  }
   0xc   : > { %v1913_v0 = vmov 0.0   ;;  %s2282_s25 = smov (!%p477_p4, %s1903_s25), 1  ;;  %v1837_v3 = vld [vmem:[%s2270_s7 + $0x38] sm:$0xff]   ;;  %v1839_v5 = vld [vmem:[%s2270_s7 + $0x30] sm:$0xff]   ;;  %v1841_v15 = vld [vmem:[%s2270_s7 + $0x28] sm:$0xff]   ;;  %vm1914_vm0 = vmmov 0  }
   0xd   : > { %1700 = vmatprep.subr.bf16.mxu1 %v1913_v0  ;;  %1680 = vmatprep.subr.bf16.mxu0 %v1913_v0  ;;  %s2011_s29 = sshll.u32 %s2282_s25, 3  ;;  %v1838_v4 = vld [vmem:[%s2268_s5 + $0x38] sm:$0xff]   ;;  %v1840_v14 = vld [vmem:[%s2268_s5 + $0x30] sm:$0xff]   ;;  %v1842_v16 = vld [vmem:[%s2268_s5 + $0x28] sm:$0xff]   ;;  %vm919_vm1 = vcmask 261120   ;;  %vm1164_vm2 = vcmask 1043456   ;;  %s490_s22 = scalar_lea.vmem %s2265_s2, %s2282_s25 }
   0xe   : > { %s487_s15 = scalar_lea.vmem %s2264_s1, %s2011_s29  ;;  %s483_s18 = scalar_lea.vmem %s2263_s0, %s2011_s29  ;;  %1701 = vmatpush3.bf16.msra.mxu1 %v1837_v3  ;;  %1681 = vmatpush3.bf16.msra.mxu0 %v1838_v4  ;;  %v1843_v17 = vld [vmem:[%s2270_s7 + $0x20] sm:$0xff]   ;;  %v1845_v19 = vld [vmem:[%s2270_s7 + $0x18] sm:$0xff]   ;;  %v1847_v21 = vld [vmem:[%s2270_s7 + $0x10] sm:$0xff]   ;;  %vm1112_vm5 = vcmask 64512   ;;  %vm1359_vm6 = vcmask 523264   ;;  %vm1361_vm7 = vcmask 785408  }
   0xf   : > { %v500_v1 = vld [vmem:[%s487_s15] sm:$0xff]  ;;  %1702 = vmatprep.subr.bf16.mxu1 %v1913_v0  ;;  %1682 = vmatprep.subr.bf16.mxu0 %v1913_v0  ;;  %v1846_v20 = vld [vmem:[%s2268_s5 + $0x18] sm:$0xff]   ;;  %v1848_v22 = vld [vmem:[%s2268_s5 + $0x10] sm:$0xff]   ;;  %s1915_s15 = smov 96   ;;  %s497_s20 = scalar_lea.vmem %s2276_s13, %s2011_s29 }
  0x10   : > { %529 = vadd.xlane.f32.xlu0 %v500_v1  ;;  %v2021_v2 = vld [vmem:[%s483_s18] sm:$0xff]  ;;  %1716 = vmatprep.mubr.msk.bf16.mxu1 %vm1914_vm0, %v1913_v0  ;;  %v1849_v23 = vld [vmem:[%s2270_s7 + $0x8] sm:$0xff]   ;;  %v1853_v44 = vld [vmem:[%s2272_s9 + $0x38] sm:$0xff]  }
  0x11   : > { %v1844_v18 = vld [vmem:[%s2268_s5 + $0x20] sm:$0xff]   ;;  %1696 = vmatprep.mubr.msk.bf16.mxu0 %vm1914_vm0, %v1913_v0  ;;  %v1850_v24 = vld [vmem:[%s2268_s5 + $0x8] sm:$0xff]   ;;  %v1854_v46 = vld [vmem:[%s2272_s9 + $0x30] sm:$0xff]  }
  0x12   : > { %1703 = vmatpush3.bf16.msra.mxu1 %v1839_v5  ;;  %1683 = vmatpush3.bf16.msra.mxu0 %v1840_v14  ;;  %v1851_v25 = vld [vmem:[%s2270_s7] sm:$0xff]   ;;  %v1855_v47 = vld [vmem:[%s2272_s9 + $0x28] sm:$0xff]   ;;  %v1857_v49 = vld [vmem:[%s2272_s9 + $0x18] sm:$0xff]  }
  0x13   : > { %1704 = vmatprep.subr.bf16.mxu1 %v1913_v0  ;;  %1684 = vmatprep.subr.bf16.mxu0 %v1913_v0  ;;  %v1852_v26 = vld [vmem:[%s2268_s5] sm:$0xff]   ;;  %v1858_v50 = vld [vmem:[%s2272_s9 + $0x10] sm:$0xff]   ;;  %v1859_v51 = vld [vmem:[%s2272_s9 + $0x8] sm:$0xff]  }
  0x14   : > { %503 = vadd.xlane.f32.xlu0 %v2021_v2  ;;  %v1580_v34 = vld [vmem:[%s2266_s3] ss:$0 sm:$0xff] }
  0x15   : > { %v1581_v36 = vld [vmem:[%s2267_s4] ss:$0 sm:$0xff] }
  0x16   : > { %1705 = vmatpush3.bf16.msra.mxu1 %v1841_v15  ;;  %1685 = vmatpush3.bf16.msra.mxu0 %v1842_v16  ;;  %v1856_v48 = vld [vmem:[%s2272_s9 + $0x20] sm:$0xff]  }
  0x17   : > { %1706 = vmatprep.subr.bf16.mxu1 %v1913_v0  ;;  %1686 = vmatprep.subr.bf16.mxu0 %v1913_v0  ;;  %v1860_v52 = vld [vmem:[%s2272_s9] sm:$0xff]  }
  0x18   : > { %v1591_v53 = vld [vmem:[%s2271_s8] ss:$0 sm:$0xff] }
  0x19   : > { %v1582_v57 = vld [vmem:[%s2269_s6] ss:$0 sm:$0xff] }
  0x1a   : > { %1707 = vmatpush3.bf16.msra.mxu1 %v1843_v17  ;;  %1687 = vmatpush3.bf16.msra.mxu0 %v1844_v18  ;;  %v1600_v15 = vld [vmem:[%s2273_s10] ss:$0 sm:$0xff] }
  0x1b   : > { %1708 = vmatprep.subr.bf16.mxu1 %v1913_v0  ;;  %1688 = vmatprep.subr.bf16.mxu0 %v1913_v0 }
  0x1e   : > { %1709 = vmatpush3.bf16.msra.mxu1 %v1845_v19  ;;  %1689 = vmatpush3.bf16.msra.mxu0 %v1846_v20 }
  0x1f   : > { %1710 = vmatprep.subr.bf16.mxu1 %v1913_v0  ;;  %1690 = vmatprep.subr.bf16.mxu0 %v1913_v0 }
  0x22   : > { %1711 = vmatpush3.bf16.msra.mxu1 %v1847_v21  ;;  %1691 = vmatpush3.bf16.msra.mxu0 %v1848_v22 }
  0x23   : > { %1712 = vmatprep.subr.bf16.mxu1 %v1913_v0  ;;  %1692 = vmatprep.subr.bf16.mxu0 %v1913_v0 }
  0x26   : > { %1713 = vmatpush3.bf16.msra.mxu1 %v1849_v23  ;;  %1693 = vmatpush3.bf16.msra.mxu0 %v1850_v24  ;;  %v881_v23 = vlaneseq  ;;  %v877_v24 = vld [vmem:[%s490_s22] sm:$0x1] }
  0x27   : > { %1714 = vmatprep.subr.bf16.mxu1 %v1913_v0  ;;  %1694 = vmatprep.subr.bf16.mxu0 %v1913_v0  ;;  %vm878_vm3 = vcmp.eq.f32.partialorder %v877_v24, 0.0 }
  0x2a   : > { %1715 = vmatpush3.bf16.msra.mxu1 %v1851_v25  ;;  %1695 = vmatpush3.bf16.msra.mxu0 %v1852_v26  ;;  %v882_v25 = vshrl.u32 %v881_v23, 7 }
  0x2b   : > { %1740 = vmatprep.subr.bf16.mxu1 %v1913_v0  ;;  %1720 = vmatprep.subr.bf16.mxu0 %v1913_v0 }
  0x2c   : > { %v883_v26 = vsub.s32 0, %v882_v25 }
  0x99   : > { %v530_v6 = vpop.xlane.xlu0 %529 }
  0x9a   : > { %v531_v7 = vmul.f32 0.0078125, %v530_v6 }
  0x9c   : > { %v532_v8 = vsub.f32 %v500_v1, %v531_v7 }
  0x9d   : > { %v504_v9 = vpop.xlane.xlu0 %503 }
  0x9e   : > { %v506_v10 = vmul.f32 0.0078125, %v504_v9  ;;  %v533_v11 = vmul.f32 %v532_v8, %v532_v8 }
  0xa0   : > { %v507_v12 = vsub.f32 %v2021_v2, %v506_v10  ;;  %534 = vadd.xlane.f32.xlu1 %v533_v11 }
  0xa2   : > { %v508_v13 = vmul.f32 %v507_v12, %v507_v12 }
  0xa4   : > { %509 = vadd.xlane.f32.xlu1 %v508_v13 }
 0x129   : > { %v535_v27 = vpop.xlane.xlu1 %534 }
 0x12a   : > { %v536_v28 = vmul.f32 0.0078125, %v535_v27  ;;  %v879_v27 = vsel %vm878_vm3, -1e+09, %v1913_v0 }
 0x12c   : > { %v537_v29 = vadd.f32 1e-05, %v536_v28  ;;  %v892_v28 = vand.u32 127, %v881_v23 }
 0x12d   : > { %v510_v30 = vpop.xlane.xlu1 %509 }
 0x12e   : > { %1869 = vrsqrt.f32 %v537_v29  ;;  %v511_v31 = vmul.f32 0.0078125, %v510_v30  ;;  %v884_v29 = vrot.slane %v879_v27, %v883_v26  ;;  %vm893_vm4 = vcmp.ge.s32.totalorder %v882_v25, %v892_v28 }
 0x130   : > { %v512_v32 = vadd.f32 1e-05, %v511_v31  ;;  %v894_v31 = vsel %vm893_vm4, %v884_v29, -1e+09 }
 0x132   : > { %1871 = vrsqrt.f32 %v512_v32 }
 0x13b   : > { %v1870_v33 = vpop.eup %1869 }
 0x13c   : > { %v539_v35 = vmul.f32 %v1870_v33, %v532_v8 }
 0x13e   : > { %v540_v37 = vmul.f32 %v1580_v34, %v539_v35 }
 0x13f   : > { %v1872_v38 = vpop.eup %1871 }
 0x140   : > { %v541_v39 = vadd.f32 %v1581_v36, %v540_v37  ;;  %v514_v40 = vmul.f32 %v1872_v38, %v507_v12 }
 0x142   : > { %v654_v41 = vpack.c.bf16 %v541_v39, %v541_v39  ;;  %v521_v42 = vmul.f32 %v1580_v34, %v514_v40 }
 0x144   : > { %1717 = vmatmul.mubr.bf16.vlgmr.msra.gmra.mxu1 %v654_v41  ;;  %v528_v43 = vadd.f32 %v1581_v36, %v521_v42 }
 0x145   : > { %1742 = vmatprep.mubr.msk.bf16.mxu1 %vm1914_vm0, %v1913_v0 }
 0x146   : > { %v542_v45 = vpack.c.bf16 %v528_v43, %v528_v43 }
 0x148   : > { %1697 = vmatmul.mubr.bf16.vlgmr.msra.gmra.mxu0 %v542_v45 }
 0x149   : > { %1721 = vmatpush3.bf16.msra.mxu0 %v1853_v44  ;;  %1736 = vmatprep.mubr.msk.bf16.mxu0 %vm1914_vm0, %v1913_v0 }
 0x14a   : > { %1722 = vmatprep.subr.bf16.mxu0 %v1913_v0 }
 0x14d   : > { %1723 = vmatpush3.bf16.msra.mxu0 %v1854_v46 }
 0x14e   : > { %1724 = vmatprep.subr.bf16.mxu0 %v1913_v0 }
 0x151   : > { %1725 = vmatpush3.bf16.msra.mxu0 %v1855_v47 }
 0x152   : > { %1726 = vmatprep.subr.bf16.mxu0 %v1913_v0 }
 0x155   : > { %1727 = vmatpush3.bf16.msra.mxu0 %v1856_v48 }
 0x156   : > { %1728 = vmatprep.subr.bf16.mxu0 %v1913_v0 }
 0x159   : > { %1729 = vmatpush3.bf16.msra.mxu0 %v1857_v49 }
 0x15a   : > { %1730 = vmatprep.subr.bf16.mxu0 %v1913_v0 }
 0x15d   : > { %1731 = vmatpush3.bf16.msra.mxu0 %v1858_v50 }
 0x15e   : > { %1732 = vmatprep.subr.bf16.mxu0 %v1913_v0 }
 0x161   : > { %1733 = vmatpush3.bf16.msra.mxu0 %v1859_v51 }
 0x162   : > { %1734 = vmatprep.subr.bf16.mxu0 %v1913_v0 }
 0x165   : > { %1735 = vmatpush3.bf16.msra.mxu0 %v1860_v52 }
 0x166   : > { %1788 = vmatprep.subr.bf16.mxu0 %v1913_v0 }
 0x168   : > { %1737 = vmatmul.mubr.bf16.vlgmr.msra.gmra.mxu0 %v654_v41 }
 0x169   : > { %1804 = vmatprep.mubr.msk.bf16.mxu0 %vm1914_vm0, %v1913_v0 }
 0x204   : > { %v760_v54 = vpop.f32.mrf.mxu1 }
 0x205   : > { %v761_v55 = vadd.f32 %v1591_v53, %v760_v54 }
 0x206   : > { %v1718_v56 = vpop.f32.mrf.mxu1 }
 0x207   : > { %v903_v58 = vpack.c.bf16 %v761_v55, %v761_v55 }
 0x208   : > { %v648_v59 = vpop.f32.mrf.mxu0  ;;  %v763_v60 = vpop.f32.mrf.mxu1 }
 0x209   : > { %v649_v61 = vadd.f32 %v1582_v57, %v648_v59  ;;  %905 = vrot.lane.b32.xlu0 %v903_v58, %s1915_s15  ;;  %v924_v62 = vsel %vm919_vm1, %v903_v58, 0 }
 0x20a   : > { %v1698_v63 = vpop.f32.mrf.mxu0  ;;  %v1719_v1 = vpop.f32.mrf.mxu1  ;;  %1741 = vmatpush3.bf16.xpose.msra.mxu1 %v924_v62 }
 0x20b   : > { %v895_v3 = vpack.c.bf16 %v649_v61, %v649_v61  ;;  %1746 = vmatprep.subr.bf16.mxu1 %v1913_v0 }
 0x20c   : > { %v651_v4 = vpop.f32.mrf.mxu0 }
 0x20d   : > { %909 = vrot.lane.b32.xlu0 %v903_v58, %s1916_s16  ;;  %897 = vrot.lane.b32.xlu1 %v895_v3, %s1915_s15 }
 0x20e   : > { %v1699_v5 = vpop.f32.mrf.mxu0 }
 0x211   : > { %907 = vrot.lane.b32.xlu1 %v903_v58, %s1917_s17  ;;  %1743 = vmatmul.mubr.msk.bf16.vlgmr.msra.gmra.mxu1 %vm919_vm1, %v895_v3 }
 0x212   : > { %1748 = vmatprep.mubr.msk.bf16.mxu1 %vm1914_vm0, %v1913_v0 }
 0x215   : > { %899 = vrot.lane.b32.xlu1 %v895_v3, %s1917_s17 }
 0x219   : > { %901 = vrot.lane.b32.xlu1 %v895_v3, %s1916_s16 }
 0x228   : > { %v871_v6 = vpop.f32.mrf.mxu0 }
 0x229   : > { %v872_v18 = vadd.f32 %v1600_v15, %v871_v6 }
 0x22a   : > { %v1738_v7 = vpop.f32.mrf.mxu0 }
 0x22b   : > { %v2169_v20 = vpack.c.bf16 %v872_v18, %v872_v18 }
 0x22c   : > { %v874_v8 = vpop.f32.mrf.mxu0 }
 0x22d   : > { %v1166_v22 = vsel %vm1164_vm2, %v2169_v20, 0 }
 0x22e   : > { %v1739_v9 = vpop.f32.mrf.mxu0 }
 0x27b   : > { %v906_v10 = vpop.permute.xlu0 %905 }
 0x27c   : > { %v970_v11 = vsel %vm919_vm1, %v906_v10, 0 }
 0x27d   : > { %1747 = vmatpush3.bf16.xpose.msra.mxu1 %v970_v11 }
 0x27e   : > { %1752 = vmatprep.subr.bf16.mxu1 %v1913_v0 }
 0x27f   : > { %v898_v12 = vpop.permute.xlu1 %897  ;;  %v910_v16 = vpop.permute.xlu0 %909 }
 0x280   : > { %v1062_v19 = vsel %vm919_vm1, %v910_v16, 0 }
 0x283   : > { %v908_v13 = vpop.permute.xlu1 %907 }
 0x284   : > { %v1016_v14 = vsel %vm919_vm1, %v908_v13, 0  ;;  %1749 = vmatmul.mubr.msk.bf16.vlgmr.msra.gmra.mxu1 %vm919_vm1, %v898_v12 }
 0x285   : > { %1753 = vmatpush3.bf16.xpose.msra.mxu1 %v1016_v14  ;;  %1754 = vmatprep.mubr.msk.bf16.mxu1 %vm1914_vm0, %v1913_v0 }
 0x286   : > { %1758 = vmatprep.subr.bf16.mxu1 %v1913_v0 }
 0x287   : > { %v900_v17 = vpop.permute.xlu1 %899 }
 0x28b   : > { %v902_v21 = vpop.permute.xlu1 %901 }
 0x28c   : > { %1755 = vmatmul.mubr.msk.bf16.vlgmr.msra.gmra.mxu1 %vm919_vm1, %v900_v17 }
 0x28d   : > { %1759 = vmatpush3.bf16.xpose.msra.mxu1 %v1062_v19  ;;  %1760 = vmatprep.mubr.msk.bf16.mxu1 %vm1914_vm0, %v1913_v0 }
 0x28e   : > { %1764 = vmatprep.subr.bf16.mxu1 %v1913_v0 }
 0x294   : > { %1761 = vmatmul.mubr.msk.bf16.vlgmr.msra.gmra.mxu1 %vm919_vm1, %v902_v21 }
 0x295   : > { %1765 = vmatpush3.bf16.msra.mxu1 %v1166_v22  ;;  %1766 = vmatprep.mubr.msk.bf16.mxu1 %vm1914_vm0, %v1913_v0 }
 0x296   : > { %1770 = vmatprep.subr.bf16.mxu1 %v1913_v0 }
 0x2d1   : > { %v960_v30 = vpop.f32.mrf.mxu1 }
 0x2d2   : > { %v1104_v32 = vmul.f32 0.17677669, %v960_v30 }
 0x2d3   : > { %v1744_v33 = vpop.f32.mrf.mxu1 }
 0x2d4   : > { %v1108_v34 = vadd.f32 %v1104_v32, %v894_v31 }
 0x2d5   : > { %v963_v35 = vpop.f32.mrf.mxu1 }
 0x2d6   : > { %v1113_v36 = vsel %vm1112_vm5, %v1108_v34, -inf }
 0x2d7   : > { %1114 = vmax.xlane.f32.xlu0 %v1113_v36  ;;  %v1745_v37 = vpop.f32.mrf.mxu1 }
 0x344   : > { %v1006_v38 = vpop.f32.mrf.mxu1 }
 0x345   : > { %v1105_v39 = vmul.f32 0.17677669, %v1006_v38 }
 0x346   : > { %v1750_v40 = vpop.f32.mrf.mxu1 }
 0x347   : > { %v1109_v41 = vadd.f32 %v1105_v39, %v894_v31 }
 0x348   : > { %v1009_v42 = vpop.f32.mrf.mxu1 }
 0x349   : > { %v1116_v43 = vsel %vm1112_vm5, %v1109_v41, -inf }
 0x34a   : > { %1117 = vmax.xlane.f32.xlu1 %v1116_v43  ;;  %v1751_v44 = vpop.f32.mrf.mxu1  ;;  %v1861_v43 = vld [vmem:[%s2274_s11 + $0x38] sm:$0xff]  }
 0x34b   : > { %1789 = vmatpush3.bf16.msra.mxu0 %v1861_v43  ;;  %v1862_v44 = vld [vmem:[%s2274_s11 + $0x30] sm:$0xff]  }
 0x34c   : > { %v1052_v45 = vpop.f32.mrf.mxu1  ;;  %1790 = vmatprep.subr.bf16.mxu0 %v1913_v0 }
 0x34d   : > { %v1106_v46 = vmul.f32 0.17677669, %v1052_v45 }
 0x34e   : > { %v1756_v47 = vpop.f32.mrf.mxu1 }
 0x34f   : > { %v1110_v48 = vadd.f32 %v1106_v46, %v894_v31  ;;  %1791 = vmatpush3.bf16.msra.mxu0 %v1862_v44  ;;  %v1863_v47 = vld [vmem:[%s2274_s11 + $0x28] sm:$0xff]  }
 0x350   : > { %v1055_v49 = vpop.f32.mrf.mxu1  ;;  %1792 = vmatprep.subr.bf16.mxu0 %v1913_v0 }
 0x351   : > { %v1119_v50 = vsel %vm1112_vm5, %v1110_v48, -inf }
 0x352   : > { %1120 = vmax.xlane.f32.xlu0 %v1119_v50  ;;  %v1757_v51 = vpop.f32.mrf.mxu1  ;;  %v1864_v50 = vld [vmem:[%s2274_s11 + $0x20] sm:$0xff]  }
 0x353   : > { %1793 = vmatpush3.bf16.msra.mxu0 %v1863_v47 }
 0x354   : > { %v1098_v52 = vpop.f32.mrf.mxu1  ;;  %1794 = vmatprep.subr.bf16.mxu0 %v1913_v0 }
 0x355   : > { %v1107_v53 = vmul.f32 0.17677669, %v1098_v52 }
 0x356   : > { %v1762_v54 = vpop.f32.mrf.mxu1 }
 0x357   : > { %v1111_v55 = vadd.f32 %v1107_v53, %v894_v31  ;;  %1795 = vmatpush3.bf16.msra.mxu0 %v1864_v50  ;;  %v1865_v53 = vld [vmem:[%s2274_s11 + $0x18] sm:$0xff]  }
 0x358   : > { %v1101_v56 = vpop.f32.mrf.mxu1  ;;  %1796 = vmatprep.subr.bf16.mxu0 %v1913_v0 }
 0x359   : > { %v1122_v57 = vsel %vm1112_vm5, %v1111_v55, -inf  ;;  %v1866_v56 = vld [vmem:[%s2274_s11 + $0x10] sm:$0xff]  }
 0x35a   : > { %1123 = vmax.xlane.f32.xlu0 %v1122_v57  ;;  %v1763_v58 = vpop.f32.mrf.mxu1  ;;  %v1867_v57 = vld [vmem:[%s2274_s11 + $0x8] sm:$0xff]  }
 0x35b   : > { %1797 = vmatpush3.bf16.msra.mxu0 %v1865_v53  ;;  %v1868_v58 = vld [vmem:[%s2274_s11] sm:$0xff]  }
 0x35c   : > { %1798 = vmatprep.subr.bf16.mxu0 %v1913_v0 }
 0x35f   : > { %1799 = vmatpush3.bf16.msra.mxu0 %v1866_v56 }
 0x360   : > { %v1115_v59 = vpop.xlane.xlu0 %1114  ;;  %1800 = vmatprep.subr.bf16.mxu0 %v1913_v0 }
 0x361   : > { %v1125_v60 = vsub.f32 %v1108_v34, %v1115_v59 }
 0x363   : > { %v1129_v61 = vmul.f32 1.442695, %v1125_v60  ;;  %1801 = vmatpush3.bf16.msra.mxu0 %v1867_v57 }
 0x364   : > { %1802 = vmatprep.subr.bf16.mxu0 %v1913_v0 }
 0x365   : > { %1873 = vpow2.f32 %v1129_v61 }
 0x367   : > { %1803 = vmatpush3.bf16.msra.mxu0 %v1868_v58 }
 0x372   : > { %v1874_v62 = vpop.eup %1873 }
 0x373   : > { %v1137_v63 = vsel %vm1112_vm5, %v1874_v62, 0.0 }
 0x374   : > { %1138 = vadd.xlane.f32.xlu0 %v1137_v63 }
 0x3d3   : > { %v1118_v1 = vpop.xlane.xlu1 %1117 }
 0x3d4   : > { %v1126_v3 = vsub.f32 %v1109_v41, %v1118_v1 }
 0x3d6   : > { %v1131_v4 = vmul.f32 1.442695, %v1126_v3 }
 0x3d8   : > { %1875 = vpow2.f32 %v1131_v4 }
 0x3db   : > { %v1121_v5 = vpop.xlane.xlu0 %1120 }
 0x3dc   : > { %v1127_v6 = vsub.f32 %v1110_v48, %v1121_v5 }
 0x3de   : > { %v1133_v7 = vmul.f32 1.442695, %v1127_v6 }
 0x3e0   : > { %1877 = vpow2.f32 %v1133_v7  ;;  %v1617_v7 = vld [vmem:[%s2275_s12] ss:$0 sm:$0xff] }
 0x3e3   : > { %v1124_v12 = vpop.xlane.xlu0 %1123 }
 0x3e4   : > { %v1128_v14 = vsub.f32 %v1111_v55, %v1124_v12 }
 0x3e5   : > { %v1876_v8 = vpop.eup %1875 }
 0x3e6   : > { %v1140_v9 = vsel %vm1112_vm5, %v1876_v8, 0.0  ;;  %v1135_v15 = vmul.f32 1.442695, %v1128_v14 }
 0x3e7   : > { %1141 = vadd.xlane.f32.xlu1 %v1140_v9 }
 0x3ed   : > { %v1878_v10 = vpop.eup %1877 }
 0x3ee   : > { %v1143_v11 = vsel %vm1112_vm5, %v1878_v10, 0.0 }
 0x3ef   : > { %1144 = vadd.xlane.f32.xlu0 %v1143_v11 }
 0x3f8   : > { %915 = vrot.lane.b32.xlu1 %v2169_v20, %s1917_s17 }
 0x3fd   : > { %v1139_v13 = vpop.xlane.xlu0 %1138 }
 0x3fe   : > { %1879 = vrcp.f32 %v1139_v13 }
 0x3ff   : > { %1881 = vpow2.f32 %v1135_v15 }
 0x405   : > { %913 = vrot.lane.b32.xlu0 %v2169_v20, %s1915_s15 }
 0x40b   : > { %v1880_v16 = vpop.eup %1879 }
 0x40c   : > { %v1153_v17 = vmul.f32 %v1880_v16, %v1874_v62  ;;  %v1882_v19 = vpop.eup %1881 }
 0x40d   : > { %v1146_v21 = vsel %vm1112_vm5, %v1882_v19, 0.0 }
 0x40e   : > { %v1157_v18 = vpack.c.bf16 %v1153_v17, %v1153_v17 }
 0x410   : > { %1767 = vmatmul.mubr.msk.bf16.vlgmr.msra.gmra.mxu1 %vm1112_vm5, %v1157_v18 }
 0x411   : > { %1772 = vmatprep.mubr.msk.bf16.mxu1 %vm1914_vm0, %v1913_v0 }
 0x41c   : > { %1147 = vadd.xlane.f32.xlu1 %v1146_v21 }
 0x42d   : > { %917 = vrot.lane.b32.xlu1 %v2169_v20, %s1916_s16 }
 0x470   : > { %v1142_v22 = vpop.xlane.xlu1 %1141 }
 0x471   : > { %1883 = vrcp.f32 %v1142_v22 }
 0x474   : > { %v916_v28 = vpop.permute.xlu1 %915 }
 0x475   : > { %v1258_v30 = vsel %vm1164_vm2, %v916_v28, 0 }
 0x478   : > { %v1145_v23 = vpop.xlane.xlu0 %1144 }
 0x479   : > { %1885 = vrcp.f32 %v1145_v23 }
 0x47c   : > { %v914_v24 = vpop.permute.xlu0 %913 }
 0x47d   : > { %v1212_v25 = vsel %vm1164_vm2, %v914_v24, 0 }
 0x47e   : > { %v1884_v26 = vpop.eup %1883  ;;  %1771 = vmatpush3.bf16.msra.mxu1 %v1212_v25 }
 0x47f   : > { %1776 = vmatprep.subr.bf16.mxu1 %v1913_v0  ;;  %v1154_v27 = vmul.f32 %v1884_v26, %v1876_v8 }
 0x481   : > { %v1158_v29 = vpack.c.bf16 %v1154_v27, %v1154_v27 }
 0x483   : > { %1773 = vmatmul.mubr.msk.bf16.vlgmr.msra.gmra.mxu1 %vm1112_vm5, %v1158_v29 }
 0x484   : > { %1777 = vmatpush3.bf16.msra.mxu1 %v1258_v30  ;;  %1778 = vmatprep.mubr.msk.bf16.mxu1 %vm1914_vm0, %v1913_v0 }
 0x485   : > { %1782 = vmatprep.subr.bf16.mxu1 %v1913_v0 }
 0x486   : > { %v1886_v20 = vpop.eup %1885 }
 0x487   : > { %v1155_v31 = vmul.f32 %v1886_v20, %v1878_v10 }
 0x489   : > { %v1159_v32 = vpack.c.bf16 %v1155_v31, %v1155_v31 }
 0x48b   : > { %1779 = vmatmul.mubr.msk.bf16.vlgmr.msra.gmra.mxu1 %vm1112_vm5, %v1159_v32 }
 0x48c   : > { %1784 = vmatprep.mubr.msk.bf16.mxu1 %vm1914_vm0, %v1913_v0 }
 0x4a5   : > { %v1148_v33 = vpop.xlane.xlu1 %1147 }
 0x4a6   : > { %1887 = vrcp.f32 %v1148_v33 }
 0x4a9   : > { %v918_v34 = vpop.permute.xlu1 %917 }
 0x4aa   : > { %v1304_v35 = vsel %vm1164_vm2, %v918_v34, 0 }
 0x4ab   : > { %1783 = vmatpush3.bf16.msra.mxu1 %v1304_v35 }
 0x4b3   : > { %v1888_v36 = vpop.eup %1887 }
 0x4b4   : > { %v1156_v37 = vmul.f32 %v1888_v36, %v1882_v19 }
 0x4b6   : > { %v1160_v38 = vpack.c.bf16 %v1156_v37, %v1156_v37 }
 0x4b8   : > { %1785 = vmatmul.mubr.msk.bf16.vlgmr.msra.gmra.mxu1 %vm1112_vm5, %v1160_v38 }
 0x4d0   : > { %v1202_v39 = vpop.f32.mrf.mxu1 }
 0x4d2   : > { %v1768_v40 = vpop.f32.mrf.mxu1 }
 0x4d4   : > { %v1205_v41 = vpop.f32.mrf.mxu1 }
 0x4d6   : > { %v1769_v42 = vpop.f32.mrf.mxu1 }
 0x543   : > { %v1248_v45 = vpop.f32.mrf.mxu1 }
 0x544   : > { %1347 = vrot.lane.b32.xlu1 %v1248_v45, %s1916_s16 }
 0x545   : > { %v1774_v46 = vpop.f32.mrf.mxu1 }
 0x547   : > { %v1251_v48 = vpop.f32.mrf.mxu1 }
 0x549   : > { %v1775_v49 = vpop.f32.mrf.mxu1 }
 0x54b   : > { %v1294_v51 = vpop.f32.mrf.mxu1 }
 0x54c   : > { %1351 = vrot.lane.b32.xlu0 %v1294_v51, %s1917_s17 }
 0x54d   : > { %v1780_v52 = vpop.f32.mrf.mxu1 }
 0x54f   : > { %v1297_v54 = vpop.f32.mrf.mxu1 }
 0x551   : > { %v1781_v55 = vpop.f32.mrf.mxu1 }
 0x578   : > { %v1340_v59 = vpop.f32.mrf.mxu1 }
 0x579   : > { %1355 = vrot.lane.b32.xlu1 %v1340_v59, %s1915_s15 }
 0x57a   : > { %v1786_v60 = vpop.f32.mrf.mxu1 }
 0x57c   : > { %v1343_v61 = vpop.f32.mrf.mxu1 }
 0x57e   : > { %v1787_v62 = vpop.f32.mrf.mxu1 }
 0x5b6   : > { %v1348_v63 = vpop.permute.xlu1 %1347 }
 0x5b7   : > { %v1358_v3 = vsel %vm919_vm1, %v1202_v39, %v1348_v63 }
 0x5be   : > { %v1352_v1 = vpop.permute.xlu0 %1351 }
 0x5bf   : > { %v1360_v4 = vsel %vm1359_vm6, %v1358_v3, %v1352_v1 }
 0x5eb   : > { %v1356_v0 = vpop.permute.xlu1 %1355 }
 0x5ec   : > { %v1362_v5 = vsel %vm1361_vm7, %v1360_v4, %v1356_v0 }
 0x5ed   : > { %v1363_v6 = vpack.c.bf16 %v1362_v5, %v1362_v5 }
 0x5ef   : > { %1805 = vmatmul.mubr.bf16.vlgmr.msra.gmra.mxu0 %v1363_v6 }
 0x6af   : > { %v1469_v8 = vpop.f32.mrf.mxu0 }
 0x6b0   : > { %v1470_v9 = vadd.f32 %v1617_v7, %v1469_v8 }
 0x6b1   : > { %v1806_v10 = vpop.f32.mrf.mxu0 }
 0x6b2   : > { %v1475_v11 = vadd.f32 %v1470_v9, %v2021_v2 }
 0x6b3   : > { %v1472_v12 = vpop.f32.mrf.mxu0 }
 0x6b4   : > { %1476 = vst [vmem:[%s497_s20] sm:$0xff] %v1475_v11 }
 0x6b5   : > { %v1807_v13 = vpop.f32.mrf.mxu0 }
 0x6b6 PF: > { %s23_s27 = sadd.s32 1, %s1911_s27   ;;  %s2277_s25 = smov %s1907_s26 }
 0x6b7   : > { %p20_p5 = scmp.ge.s32.totalorder %s23_s27, 4   ;;  %s2278_s26 = smov %s2280_s28 }
 0x6b9   :  { %22 = sbr.rel (!%p20_p5) target bundleno = 2 (0x2), region = 108 }

// kernel: transformer_forward.10
= control target key start
LH: loop header
LB: loop body
LE: loop exit
PB: predicated region body
PF: predicated region fallthrough
CT: control target
= control target key end

     0   :  { %s1979_s25 = smov 0   ;;  %s1981_s26 = smov 0   ;;  %s2254_s0 = inlined_call_operand.vmem [shape: f32[2,8,128], index: 0, kind: input, shape index: {}, may-alias: {0,1}]   ;;  %s2255_s1 = inlined_call_operand.vmem [shape: f32[2,8,128], index: 1, kind: input, shape index: {}, may-alias: {0,1}]   ;;  %s2256_s2 = inlined_call_operand.vmem [shape: f32[2,1,8], index: 2, kind: input, shape index: {}]   ;;  %s2257_s3 = inlined_call_operand.vmem [shape: f32[1,128], index: 3, kind: input, shape index: {}]   ;;  %s2258_s4 = inlined_call_operand.vmem [shape: f32[1,128], index: 4, kind: input, shape index: {}]   ;;  %s2259_s5 = inlined_call_operand.vmem [shape: bf16[128,128], index: 5, kind: input, shape index: {}]   ;;  %s2260_s6 = inlined_call_operand.vmem [shape: f32[1,128], index: 6, kind: input, shape index: {}]   ;;  %s2261_s7 = inlined_call_operand.vmem [shape: bf16[128,128], index: 7, kind: input, shape index: {}]   ;;  %s2262_s8 = inlined_call_operand.vmem [shape: f32[1,128], index: 8, kind: input, shape index: {}]   ;;  %s2263_s9 = inlined_call_operand.vmem [shape: bf16[128,128], index: 9, kind: input, shape index: {}]   ;;  %s2264_s10 = inlined_call_operand.vmem [shape: f32[1,128], index: 10, kind: input, shape index: {}]   ;;  %s2265_s11 = inlined_call_operand.vmem [shape: bf16[128,128], index: 11, kind: input, shape index: {}]   ;;  %s2266_s12 = inlined_call_operand.vmem [shape: f32[1,128], index: 12, kind: input, shape index: {}]   ;;  %s2267_s13 = inlined_call_operand.vmem [shape: f32[2,8,128], index: 13, kind: output, shape index: {}]  }
   0x1   :  { %s1983_s27 = smov 0  }
   0x2 LB: > { %s35_s28 = sadd.s32 1, %s1898_s26  ;;  %p1567_p0 = scmp.ge.s32.totalorder %s1902_s27, 1  ;;  %s1902_s27 = sphi %s1983_s27, %s23_s27   ;;  %s1898_s26 = sphi %s1981_s26, %s2269_s26   ;;  %s1894_s25 = sphi %s1979_s25, %s2268_s25  }
   0x3   : > { %p37_p1 = scmp.ge.s32.totalorder %s35_s28, 2  ;;  %p422_p2 = scmp.lt.s32.totalorder %s1902_s27, 3 }
   0x5   : > { %s2271_s28 = smov (%p37_p1, %s35_s28), 0  ;;  %p423_p3 = pnand %p1567_p0, %p422_p2 }
   0x6   : > { %p477_p4 = scmp.lt.s32.totalorder (!%p423_p3), %s1894_s25, 1  ;;  %s1907_s16 = smov (!%p423_p3), 32  }
   0x7   : > { %426 = sbr.rel (%p423_p3) target bundleno = 1718 (0x6b6), region = 72  ;;  %s1908_s17 = smov (!%p423_p3), 64  }
   0xc   : > { %v1904_v0 = vmov 0.0   ;;  %s2273_s25 = smov (!%p477_p4, %s1894_s25), 1  ;;  %v1828_v3 = vld [vmem:[%s2261_s7 + $0x38] sm:$0xff]   ;;  %v1830_v5 = vld [vmem:[%s2261_s7 + $0x30] sm:$0xff]   ;;  %v1832_v15 = vld [vmem:[%s2261_s7 + $0x28] sm:$0xff]   ;;  %vm1905_vm0 = vmmov 0  }
   0xd   : > { %1691 = vmatprep.subr.bf16.mxu1 %v1904_v0  ;;  %1671 = vmatprep.subr.bf16.mxu0 %v1904_v0  ;;  %s2002_s29 = sshll.u32 %s2273_s25, 3  ;;  %v1829_v4 = vld [vmem:[%s2259_s5 + $0x38] sm:$0xff]   ;;  %v1831_v14 = vld [vmem:[%s2259_s5 + $0x30] sm:$0xff]   ;;  %v1833_v16 = vld [vmem:[%s2259_s5 + $0x28] sm:$0xff]   ;;  %vm904_vm1 = vcmask 261120   ;;  %vm1155_vm2 = vcmask 1043456   ;;  %s490_s22 = scalar_lea.vmem %s2256_s2, %s2273_s25 }
   0xe   : > { %s487_s15 = scalar_lea.vmem %s2255_s1, %s2002_s29  ;;  %s483_s18 = scalar_lea.vmem %s2254_s0, %s2002_s29  ;;  %1692 = vmatpush3.bf16.msra.mxu1 %v1828_v3  ;;  %1672 = vmatpush3.bf16.msra.mxu0 %v1829_v4  ;;  %v1834_v17 = vld [vmem:[%s2261_s7 + $0x20] sm:$0xff]   ;;  %v1836_v19 = vld [vmem:[%s2261_s7 + $0x18] sm:$0xff]   ;;  %v1838_v21 = vld [vmem:[%s2261_s7 + $0x10] sm:$0xff]   ;;  %vm1103_vm4 = vcmask 64512   ;;  %vm1350_vm5 = vcmask 523264   ;;  %vm1352_vm6 = vcmask 785408  }
   0xf   : > { %v500_v1 = vld [vmem:[%s487_s15] sm:$0xff]  ;;  %1693 = vmatprep.subr.bf16.mxu1 %v1904_v0  ;;  %1673 = vmatprep.subr.bf16.mxu0 %v1904_v0  ;;  %v1837_v20 = vld [vmem:[%s2259_s5 + $0x18] sm:$0xff]   ;;  %v1839_v22 = vld [vmem:[%s2259_s5 + $0x10] sm:$0xff]   ;;  %s1906_s15 = smov 96   ;;  %s497_s20 = scalar_lea.vmem %s2267_s13, %s2002_s29 }
  0x10   : > { %529 = vadd.xlane.f32.xlu0 %v500_v1  ;;  %v2012_v2 = vld [vmem:[%s483_s18] sm:$0xff]  ;;  %1707 = vmatprep.mubr.msk.bf16.mxu1 %vm1905_vm0, %v1904_v0  ;;  %v1840_v23 = vld [vmem:[%s2261_s7 + $0x8] sm:$0xff]   ;;  %v1844_v44 = vld [vmem:[%s2263_s9 + $0x38] sm:$0xff]  }
  0x11   : > { %v1835_v18 = vld [vmem:[%s2259_s5 + $0x20] sm:$0xff]   ;;  %1687 = vmatprep.mubr.msk.bf16.mxu0 %vm1905_vm0, %v1904_v0  ;;  %v1841_v24 = vld [vmem:[%s2259_s5 + $0x8] sm:$0xff]   ;;  %v1845_v46 = vld [vmem:[%s2263_s9 + $0x30] sm:$0xff]  }
  0x12   : > { %1694 = vmatpush3.bf16.msra.mxu1 %v1830_v5  ;;  %1674 = vmatpush3.bf16.msra.mxu0 %v1831_v14  ;;  %v1842_v25 = vld [vmem:[%s2261_s7] sm:$0xff]   ;;  %v1846_v47 = vld [vmem:[%s2263_s9 + $0x28] sm:$0xff]   ;;  %v1848_v49 = vld [vmem:[%s2263_s9 + $0x18] sm:$0xff]  }
  0x13   : > { %1695 = vmatprep.subr.bf16.mxu1 %v1904_v0  ;;  %1675 = vmatprep.subr.bf16.mxu0 %v1904_v0  ;;  %v1843_v26 = vld [vmem:[%s2259_s5] sm:$0xff]   ;;  %v1849_v50 = vld [vmem:[%s2263_s9 + $0x10] sm:$0xff]   ;;  %v1850_v51 = vld [vmem:[%s2263_s9 + $0x8] sm:$0xff]  }
  0x14   : > { %503 = vadd.xlane.f32.xlu0 %v2012_v2  ;;  %v1571_v34 = vld [vmem:[%s2257_s3] ss:$0 sm:$0xff] }
  0x15   : > { %v1572_v36 = vld [vmem:[%s2258_s4] ss:$0 sm:$0xff] }
  0x16   : > { %1696 = vmatpush3.bf16.msra.mxu1 %v1832_v15  ;;  %1676 = vmatpush3.bf16.msra.mxu0 %v1833_v16  ;;  %v1847_v48 = vld [vmem:[%s2263_s9 + $0x20] sm:$0xff]  }
  0x17   : > { %1697 = vmatprep.subr.bf16.mxu1 %v1904_v0  ;;  %1677 = vmatprep.subr.bf16.mxu0 %v1904_v0  ;;  %v1851_v52 = vld [vmem:[%s2263_s9] sm:$0xff]  }
  0x18   : > { %v1582_v53 = vld [vmem:[%s2262_s8] ss:$0 sm:$0xff] }
  0x19   : > { %v1573_v57 = vld [vmem:[%s2260_s6] ss:$0 sm:$0xff] }
  0x1a   : > { %1698 = vmatpush3.bf16.msra.mxu1 %v1834_v17  ;;  %1678 = vmatpush3.bf16.msra.mxu0 %v1835_v18  ;;  %v1591_v15 = vld [vmem:[%s2264_s10] ss:$0 sm:$0xff] }
  0x1b   : > { %1699 = vmatprep.subr.bf16.mxu1 %v1904_v0  ;;  %1679 = vmatprep.subr.bf16.mxu0 %v1904_v0 }
  0x1e   : > { %1700 = vmatpush3.bf16.msra.mxu1 %v1836_v19  ;;  %1680 = vmatpush3.bf16.msra.mxu0 %v1837_v20 }
  0x1f   : > { %1701 = vmatprep.subr.bf16.mxu1 %v1904_v0  ;;  %1681 = vmatprep.subr.bf16.mxu0 %v1904_v0 }
  0x22   : > { %1702 = vmatpush3.bf16.msra.mxu1 %v1838_v21  ;;  %1682 = vmatpush3.bf16.msra.mxu0 %v1839_v22 }
  0x23   : > { %1703 = vmatprep.subr.bf16.mxu1 %v1904_v0  ;;  %1683 = vmatprep.subr.bf16.mxu0 %v1904_v0 }
  0x26   : > { %1704 = vmatpush3.bf16.msra.mxu1 %v1840_v23  ;;  %1684 = vmatpush3.bf16.msra.mxu0 %v1841_v24  ;;  %v1094_v23 = vlaneseq  ;;  %v877_v24 = vld [vmem:[%s490_s22] sm:$0x1] }
  0x27   : > { %1705 = vmatprep.subr.bf16.mxu1 %v1904_v0  ;;  %1685 = vmatprep.subr.bf16.mxu0 %v1904_v0  ;;  %vm878_vm3 = vcmp.eq.f32.partialorder %v877_v24, 0.0 }
  0x2a   : > { %1706 = vmatpush3.bf16.msra.mxu1 %v1842_v25  ;;  %1686 = vmatpush3.bf16.msra.mxu0 %v1843_v26  ;;  %v1095_v25 = vshrl.u32 %v1094_v23, 7 }
  0x2b   : > { %1731 = vmatprep.subr.bf16.mxu1 %v1904_v0  ;;  %1711 = vmatprep.subr.bf16.mxu0 %v1904_v0 }
  0x2c   : > { %v1096_v26 = vsub.s32 0, %v1095_v25 }
  0x99   : > { %v530_v6 = vpop.xlane.xlu0 %529 }
  0x9a   : > { %v531_v7 = vmul.f32 0.0078125, %v530_v6 }
  0x9c   : > { %v532_v8 = vsub.f32 %v500_v1, %v531_v7 }
  0x9d   : > { %v504_v9 = vpop.xlane.xlu0 %503 }
  0x9e   : > { %v506_v10 = vmul.f32 0.0078125, %v504_v9  ;;  %v533_v11 = vmul.f32 %v532_v8, %v532_v8 }
  0xa0   : > { %v507_v12 = vsub.f32 %v2012_v2, %v506_v10  ;;  %534 = vadd.xlane.f32.xlu1 %v533_v11 }
  0xa2   : > { %v508_v13 = vmul.f32 %v507_v12, %v507_v12 }
  0xa4   : > { %509 = vadd.xlane.f32.xlu1 %v508_v13 }
 0x129   : > { %v535_v27 = vpop.xlane.xlu1 %534 }
 0x12a   : > { %v536_v28 = vmul.f32 0.0078125, %v535_v27  ;;  %v879_v27 = vsel %vm878_vm3, -1e+09, %v1904_v0 }
 0x12c   : > { %v537_v29 = vadd.f32 1e-05, %v536_v28  ;;  %v1097_v28 = vrot.slane %v879_v27, %v1096_v26 }
 0x12d   : > { %v510_v30 = vpop.xlane.xlu1 %509 }
 0x12e   : > { %1860 = vrsqrt.f32 %v537_v29  ;;  %v511_v31 = vmul.f32 0.0078125, %v510_v30 }
 0x130   : > { %v512_v32 = vadd.f32 1e-05, %v511_v31 }
 0x132   : > { %1862 = vrsqrt.f32 %v512_v32 }
 0x13b   : > { %v1861_v33 = vpop.eup %1860 }
 0x13c   : > { %v539_v35 = vmul.f32 %v1861_v33, %v532_v8 }
 0x13e   : > { %v540_v37 = vmul.f32 %v1571_v34, %v539_v35 }
 0x13f   : > { %v1863_v38 = vpop.eup %1862 }
 0x140   : > { %v541_v39 = vadd.f32 %v1572_v36, %v540_v37  ;;  %v514_v40 = vmul.f32 %v1863_v38, %v507_v12 }
 0x142   : > { %v654_v41 = vpack.c.bf16 %v541_v39, %v541_v39  ;;  %v521_v42 = vmul.f32 %v1571_v34, %v514_v40 }
 0x144   : > { %1708 = vmatmul.mubr.bf16.vlgmr.msra.gmra.mxu1 %v654_v41  ;;  %v528_v43 = vadd.f32 %v1572_v36, %v521_v42 }
 0x145   : > { %1733 = vmatprep.mubr.msk.bf16.mxu1 %vm1905_vm0, %v1904_v0 }
 0x146   : > { %v542_v45 = vpack.c.bf16 %v528_v43, %v528_v43 }
 0x148   : > { %1688 = vmatmul.mubr.bf16.vlgmr.msra.gmra.mxu0 %v542_v45 }
 0x149   : > { %1712 = vmatpush3.bf16.msra.mxu0 %v1844_v44  ;;  %1727 = vmatprep.mubr.msk.bf16.mxu0 %vm1905_vm0, %v1904_v0 }
 0x14a   : > { %1713 = vmatprep.subr.bf16.mxu0 %v1904_v0 }
 0x14d   : > { %1714 = vmatpush3.bf16.msra.mxu0 %v1845_v46 }
 0x14e   : > { %1715 = vmatprep.subr.bf16.mxu0 %v1904_v0 }
 0x151   : > { %1716 = vmatpush3.bf16.msra.mxu0 %v1846_v47 }
 0x152   : > { %1717 = vmatprep.subr.bf16.mxu0 %v1904_v0 }
 0x155   : > { %1718 = vmatpush3.bf16.msra.mxu0 %v1847_v48 }
 0x156   : > { %1719 = vmatprep.subr.bf16.mxu0 %v1904_v0 }
 0x159   : > { %1720 = vmatpush3.bf16.msra.mxu0 %v1848_v49 }
 0x15a   : > { %1721 = vmatprep.subr.bf16.mxu0 %v1904_v0 }
 0x15d   : > { %1722 = vmatpush3.bf16.msra.mxu0 %v1849_v50 }
 0x15e   : > { %1723 = vmatprep.subr.bf16.mxu0 %v1904_v0 }
 0x161   : > { %1724 = vmatpush3.bf16.msra.mxu0 %v1850_v51 }
 0x162   : > { %1725 = vmatprep.subr.bf16.mxu0 %v1904_v0 }
 0x165   : > { %1726 = vmatpush3.bf16.msra.mxu0 %v1851_v52 }
 0x166   : > { %1779 = vmatprep.subr.bf16.mxu0 %v1904_v0 }
 0x168   : > { %1728 = vmatmul.mubr.bf16.vlgmr.msra.gmra.mxu0 %v654_v41 }
 0x169   : > { %1795 = vmatprep.mubr.msk.bf16.mxu0 %vm1905_vm0, %v1904_v0 }
 0x204   : > { %v760_v54 = vpop.f32.mrf.mxu1 }
 0x205   : > { %v761_v55 = vadd.f32 %v1582_v53, %v760_v54 }
 0x206   : > { %v1709_v56 = vpop.f32.mrf.mxu1 }
 0x207   : > { %v888_v58 = vpack.c.bf16 %v761_v55, %v761_v55 }
 0x208   : > { %v648_v59 = vpop.f32.mrf.mxu0  ;;  %v763_v60 = vpop.f32.mrf.mxu1 }
 0x209   : > { %v649_v61 = vadd.f32 %v1573_v57, %v648_v59  ;;  %890 = vrot.lane.b32.xlu0 %v888_v58, %s1906_s15  ;;  %v909_v62 = vsel %vm904_vm1, %v888_v58, 0 }
 0x20a   : > { %v1689_v63 = vpop.f32.mrf.mxu0  ;;  %v1710_v1 = vpop.f32.mrf.mxu1  ;;  %1732 = vmatpush3.bf16.xpose.msra.mxu1 %v909_v62 }
 0x20b   : > { %v880_v3 = vpack.c.bf16 %v649_v61, %v649_v61  ;;  %1737 = vmatprep.subr.bf16.mxu1 %v1904_v0 }
 0x20c   : > { %v651_v4 = vpop.f32.mrf.mxu0 }
 0x20d   : > { %894 = vrot.lane.b32.xlu0 %v888_v58, %s1907_s16  ;;  %882 = vrot.lane.b32.xlu1 %v880_v3, %s1906_s15 }
 0x20e   : > { %v1690_v5 = vpop.f32.mrf.mxu0 }
 0x211   : > { %892 = vrot.lane.b32.xlu1 %v888_v58, %s1908_s17  ;;  %1734 = vmatmul.mubr.msk.bf16.vlgmr.msra.gmra.mxu1 %vm904_vm1, %v880_v3 }
 0x212   : > { %1739 = vmatprep.mubr.msk.bf16.mxu1 %vm1905_vm0, %v1904_v0 }
 0x215   : > { %884 = vrot.lane.b32.xlu1 %v880_v3, %s1908_s17 }
 0x219   : > { %886 = vrot.lane.b32.xlu1 %v880_v3, %s1907_s16 }
 0x228   : > { %v871_v6 = vpop.f32.mrf.mxu0 }
 0x229   : > { %v872_v18 = vadd.f32 %v1591_v15, %v871_v6 }
 0x22a   : > { %v1729_v7 = vpop.f32.mrf.mxu0 }
 0x22b   : > { %v2160_v20 = vpack.c.bf16 %v872_v18, %v872_v18 }
 0x22c   : > { %v874_v8 = vpop.f32.mrf.mxu0 }
 0x22d   : > { %v1157_v22 = vsel %vm1155_vm2, %v2160_v20, 0 }
 0x22e   : > { %v1730_v9 = vpop.f32.mrf.mxu0 }
 0x27b   : > { %v891_v10 = vpop.permute.xlu0 %890 }
 0x27c   : > { %v955_v11 = vsel %vm904_vm1, %v891_v10, 0 }
 0x27d   : > { %1738 = vmatpush3.bf16.xpose.msra.mxu1 %v955_v11 }
 0x27e   : > { %1743 = vmatprep.subr.bf16.mxu1 %v1904_v0 }
 0x27f   : > { %v883_v12 = vpop.permute.xlu1 %882  ;;  %v895_v16 = vpop.permute.xlu0 %894 }
 0x280   : > { %v1047_v19 = vsel %vm904_vm1, %v895_v16, 0 }
 0x283   : > { %v893_v13 = vpop.permute.xlu1 %892 }
 0x284   : > { %v1001_v14 = vsel %vm904_vm1, %v893_v13, 0  ;;  %1740 = vmatmul.mubr.msk.bf16.vlgmr.msra.gmra.mxu1 %vm904_vm1, %v883_v12 }
 0x285   : > { %1744 = vmatpush3.bf16.xpose.msra.mxu1 %v1001_v14  ;;  %1745 = vmatprep.mubr.msk.bf16.mxu1 %vm1905_vm0, %v1904_v0 }
 0x286   : > { %1749 = vmatprep.subr.bf16.mxu1 %v1904_v0 }
 0x287   : > { %v885_v17 = vpop.permute.xlu1 %884 }
 0x28b   : > { %v887_v21 = vpop.permute.xlu1 %886 }
 0x28c   : > { %1746 = vmatmul.mubr.msk.bf16.vlgmr.msra.gmra.mxu1 %vm904_vm1, %v885_v17 }
 0x28d   : > { %1750 = vmatpush3.bf16.xpose.msra.mxu1 %v1047_v19  ;;  %1751 = vmatprep.mubr.msk.bf16.mxu1 %vm1905_vm0, %v1904_v0 }
 0x28e   : > { %1755 = vmatprep.subr.bf16.mxu1 %v1904_v0 }
 0x294   : > { %1752 = vmatmul.mubr.msk.bf16.vlgmr.msra.gmra.mxu1 %vm904_vm1, %v887_v21 }
 0x295   : > { %1756 = vmatpush3.bf16.msra.mxu1 %v1157_v22  ;;  %1757 = vmatprep.mubr.msk.bf16.mxu1 %vm1905_vm0, %v1904_v0 }
 0x296   : > { %1761 = vmatprep.subr.bf16.mxu1 %v1904_v0 }
 0x2d1   : > { %v945_v29 = vpop.f32.mrf.mxu1 }
 0x2d2   : > { %v1089_v30 = vmul.f32 0.17677669, %v945_v29 }
 0x2d3   : > { %v1735_v31 = vpop.f32.mrf.mxu1 }
 0x2d4   : > { %v1099_v32 = vadd.f32 %v1097_v28, %v1089_v30 }
 0x2d5   : > { %v948_v33 = vpop.f32.mrf.mxu1 }
 0x2d6   : > { %v1104_v34 = vsel %vm1103_vm4, %v1099_v32, -inf }
 0x2d7   : > { %1105 = vmax.xlane.f32.xlu0 %v1104_v34  ;;  %v1736_v35 = vpop.f32.mrf.mxu1 }
 0x344   : > { %v991_v36 = vpop.f32.mrf.mxu1 }
 0x345   : > { %v1090_v37 = vmul.f32 0.17677669, %v991_v36 }
 0x346   : > { %v1741_v38 = vpop.f32.mrf.mxu1 }
 0x347   : > { %v1100_v39 = vadd.f32 %v1097_v28, %v1090_v37 }
 0x348   : > { %v994_v40 = vpop.f32.mrf.mxu1 }
 0x349   : > { %v1107_v41 = vsel %vm1103_vm4, %v1100_v39, -inf }
 0x34a   : > { %1108 = vmax.xlane.f32.xlu1 %v1107_v41  ;;  %v1742_v42 = vpop.f32.mrf.mxu1  ;;  %v1852_v41 = vld [vmem:[%s2265_s11 + $0x38] sm:$0xff]  }
 0x34b   : > { %1780 = vmatpush3.bf16.msra.mxu0 %v1852_v41  ;;  %v1853_v42 = vld [vmem:[%s2265_s11 + $0x30] sm:$0xff]  }
 0x34c   : > { %v1037_v43 = vpop.f32.mrf.mxu1  ;;  %1781 = vmatprep.subr.bf16.mxu0 %v1904_v0 }
 0x34d   : > { %v1091_v44 = vmul.f32 0.17677669, %v1037_v43 }
 0x34e   : > { %v1747_v45 = vpop.f32.mrf.mxu1 }
 0x34f   : > { %v1101_v46 = vadd.f32 %v1097_v28, %v1091_v44  ;;  %1782 = vmatpush3.bf16.msra.mxu0 %v1853_v42  ;;  %v1854_v45 = vld [vmem:[%s2265_s11 + $0x28] sm:$0xff]  }
 0x350   : > { %v1040_v47 = vpop.f32.mrf.mxu1  ;;  %1783 = vmatprep.subr.bf16.mxu0 %v1904_v0 }
 0x351   : > { %v1110_v48 = vsel %vm1103_vm4, %v1101_v46, -inf }
 0x352   : > { %1111 = vmax.xlane.f32.xlu0 %v1110_v48  ;;  %v1748_v49 = vpop.f32.mrf.mxu1  ;;  %v1855_v48 = vld [vmem:[%s2265_s11 + $0x20] sm:$0xff]  }
 0x353   : > { %1784 = vmatpush3.bf16.msra.mxu0 %v1854_v45 }
 0x354   : > { %v1083_v50 = vpop.f32.mrf.mxu1  ;;  %1785 = vmatprep.subr.bf16.mxu0 %v1904_v0 }
 0x355   : > { %v1092_v51 = vmul.f32 0.17677669, %v1083_v50 }
 0x356   : > { %v1753_v52 = vpop.f32.mrf.mxu1 }
 0x357   : > { %v1102_v53 = vadd.f32 %v1097_v28, %v1092_v51  ;;  %1786 = vmatpush3.bf16.msra.mxu0 %v1855_v48  ;;  %v1856_v51 = vld [vmem:[%s2265_s11 + $0x18] sm:$0xff]  }
 0x358   : > { %v1086_v54 = vpop.f32.mrf.mxu1  ;;  %1787 = vmatprep.subr.bf16.mxu0 %v1904_v0 }
 0x359   : > { %v1113_v55 = vsel %vm1103_vm4, %v1102_v53, -inf  ;;  %v1857_v54 = vld [vmem:[%s2265_s11 + $0x10] sm:$0xff]  }
 0x35a   : > { %1114 = vmax.xlane.f32.xlu0 %v1113_v55  ;;  %v1754_v56 = vpop.f32.mrf.mxu1  ;;  %v1858_v55 = vld [vmem:[%s2265_s11 + $0x8] sm:$0xff]  }
 0x35b   : > { %1788 = vmatpush3.bf16.msra.mxu0 %v1856_v51  ;;  %v1859_v56 = vld [vmem:[%s2265_s11] sm:$0xff]  }
 0x35c   : > { %1789 = vmatprep.subr.bf16.mxu0 %v1904_v0 }
 0x35f   : > { %1790 = vmatpush3.bf16.msra.mxu0 %v1857_v54 }
 0x360   : > { %v1106_v57 = vpop.xlane.xlu0 %1105  ;;  %1791 = vmatprep.subr.bf16.mxu0 %v1904_v0 }
 0x361   : > { %v1116_v58 = vsub.f32 %v1099_v32, %v1106_v57 }
 0x363   : > { %v1120_v59 = vmul.f32 1.442695, %v1116_v58  ;;  %1792 = vmatpush3.bf16.msra.mxu0 %v1858_v55 }
 0x364   : > { %1793 = vmatprep.subr.bf16.mxu0 %v1904_v0 }
 0x365   : > { %1864 = vpow2.f32 %v1120_v59 }
 0x367   : > { %1794 = vmatpush3.bf16.msra.mxu0 %v1859_v56 }
 0x372   : > { %v1865_v60 = vpop.eup %1864 }
 0x373   : > { %v1128_v61 = vsel %vm1103_vm4, %v1865_v60, 0.0 }
 0x374   : > { %1129 = vadd.xlane.f32.xlu0 %v1128_v61 }
 0x3d3   : > { %v1109_v62 = vpop.xlane.xlu1 %1108 }
 0x3d4   : > { %v1117_v63 = vsub.f32 %v1100_v39, %v1109_v62 }
 0x3d6   : > { %v1122_v1 = vmul.f32 1.442695, %v1117_v63 }
 0x3d8   : > { %1866 = vpow2.f32 %v1122_v1 }
 0x3db   : > { %v1112_v3 = vpop.xlane.xlu0 %1111 }
 0x3dc   : > { %v1118_v4 = vsub.f32 %v1101_v46, %v1112_v3 }
 0x3de   : > { %v1124_v5 = vmul.f32 1.442695, %v1118_v4 }
 0x3e0   : > { %1868 = vpow2.f32 %v1124_v5  ;;  %v1608_v5 = vld [vmem:[%s2266_s12] ss:$0 sm:$0xff] }
 0x3e3   : > { %v1115_v10 = vpop.xlane.xlu0 %1114 }
 0x3e4   : > { %v1119_v12 = vsub.f32 %v1102_v53, %v1115_v10 }
 0x3e5   : > { %v1867_v6 = vpop.eup %1866 }
 0x3e6   : > { %v1131_v7 = vsel %vm1103_vm4, %v1867_v6, 0.0  ;;  %v1126_v13 = vmul.f32 1.442695, %v1119_v12 }
 0x3e7   : > { %1132 = vadd.xlane.f32.xlu1 %v1131_v7 }
 0x3ed   : > { %v1869_v8 = vpop.eup %1868 }
 0x3ee   : > { %v1134_v9 = vsel %vm1103_vm4, %v1869_v8, 0.0 }
 0x3ef   : > { %1135 = vadd.xlane.f32.xlu0 %v1134_v9 }
 0x3f8   : > { %900 = vrot.lane.b32.xlu1 %v2160_v20, %s1908_s17 }
 0x3fd   : > { %v1130_v11 = vpop.xlane.xlu0 %1129 }
 0x3fe   : > { %1870 = vrcp.f32 %v1130_v11 }
 0x3ff   : > { %1872 = vpow2.f32 %v1126_v13 }
 0x405   : > { %898 = vrot.lane.b32.xlu0 %v2160_v20, %s1906_s15 }
 0x40b   : > { %v1871_v14 = vpop.eup %1870 }
 0x40c   : > { %v1144_v15 = vmul.f32 %v1871_v14, %v1865_v60  ;;  %v1873_v17 = vpop.eup %1872 }
 0x40d   : > { %v1137_v18 = vsel %vm1103_vm4, %v1873_v17, 0.0 }
 0x40e   : > { %v1148_v16 = vpack.c.bf16 %v1144_v15, %v1144_v15 }
 0x410   : > { %1758 = vmatmul.mubr.msk.bf16.vlgmr.msra.gmra.mxu1 %vm1103_vm4, %v1148_v16 }
 0x411   : > { %1763 = vmatprep.mubr.msk.bf16.mxu1 %vm1905_vm0, %v1904_v0 }
 0x41c   : > { %1138 = vadd.xlane.f32.xlu1 %v1137_v18 }
 0x42d   : > { %902 = vrot.lane.b32.xlu1 %v2160_v20, %s1907_s16 }
 0x470   : > { %v1133_v19 = vpop.xlane.xlu1 %1132 }
 0x471   : > { %1874 = vrcp.f32 %v1133_v19 }
 0x474   : > { %v901_v26 = vpop.permute.xlu1 %900 }
 0x475   : > { %v1249_v28 = vsel %vm1155_vm2, %v901_v26, 0 }
 0x478   : > { %v1136_v21 = vpop.xlane.xlu0 %1135 }
 0x479   : > { %1876 = vrcp.f32 %v1136_v21 }
 0x47c   : > { %v899_v22 = vpop.permute.xlu0 %898 }
 0x47d   : > { %v1203_v23 = vsel %vm1155_vm2, %v899_v22, 0 }
 0x47e   : > { %v1875_v24 = vpop.eup %1874  ;;  %1762 = vmatpush3.bf16.msra.mxu1 %v1203_v23 }
 0x47f   : > { %1767 = vmatprep.subr.bf16.mxu1 %v1904_v0  ;;  %v1145_v25 = vmul.f32 %v1875_v24, %v1867_v6 }
 0x481   : > { %v1149_v27 = vpack.c.bf16 %v1145_v25, %v1145_v25 }
 0x483   : > { %1764 = vmatmul.mubr.msk.bf16.vlgmr.msra.gmra.mxu1 %vm1103_vm4, %v1149_v27 }
 0x484   : > { %1768 = vmatpush3.bf16.msra.mxu1 %v1249_v28  ;;  %1769 = vmatprep.mubr.msk.bf16.mxu1 %vm1905_vm0, %v1904_v0 }
 0x485   : > { %1773 = vmatprep.subr.bf16.mxu1 %v1904_v0 }
 0x486   : > { %v1877_v20 = vpop.eup %1876 }
 0x487   : > { %v1146_v29 = vmul.f32 %v1877_v20, %v1869_v8 }
 0x489   : > { %v1150_v30 = vpack.c.bf16 %v1146_v29, %v1146_v29 }
 0x48b   : > { %1770 = vmatmul.mubr.msk.bf16.vlgmr.msra.gmra.mxu1 %vm1103_vm4, %v1150_v30 }
 0x48c   : > { %1775 = vmatprep.mubr.msk.bf16.mxu1 %vm1905_vm0, %v1904_v0 }
 0x4a5   : > { %v1139_v31 = vpop.xlane.xlu1 %1138 }
 0x4a6   : > { %1878 = vrcp.f32 %v1139_v31 }
 0x4a9   : > { %v903_v32 = vpop.permute.xlu1 %902 }
 0x4aa   : > { %v1295_v33 = vsel %vm1155_vm2, %v903_v32, 0 }
 0x4ab   : > { %1774 = vmatpush3.bf16.msra.mxu1 %v1295_v33 }
 0x4b3   : > { %v1879_v34 = vpop.eup %1878 }
 0x4b4   : > { %v1147_v35 = vmul.f32 %v1879_v34, %v1873_v17 }
 0x4b6   : > { %v1151_v36 = vpack.c.bf16 %v1147_v35, %v1147_v35 }
 0x4b8   : > { %1776 = vmatmul.mubr.msk.bf16.vlgmr.msra.gmra.mxu1 %vm1103_vm4, %v1151_v36 }
 0x4d0   : > { %v1193_v37 = vpop.f32.mrf.mxu1 }
 0x4d2   : > { %v1759_v38 = vpop.f32.mrf.mxu1 }
 0x4d4   : > { %v1196_v39 = vpop.f32.mrf.mxu1 }
 0x4d6   : > { %v1760_v40 = vpop.f32.mrf.mxu1 }
 0x543   : > { %v1239_v43 = vpop.f32.mrf.mxu1 }
 0x544   : > { %1338 = vrot.lane.b32.xlu1 %v1239_v43, %s1907_s16 }
 0x545   : > { %v1765_v44 = vpop.f32.mrf.mxu1 }
 0x547   : > { %v1242_v46 = vpop.f32.mrf.mxu1 }
 0x549   : > { %v1766_v47 = vpop.f32.mrf.mxu1 }
 0x54b   : > { %v1285_v49 = vpop.f32.mrf.mxu1 }
 0x54c   : > { %1342 = vrot.lane.b32.xlu0 %v1285_v49, %s1908_s17 }
 0x54d   : > { %v1771_v50 = vpop.f32.mrf.mxu1 }
 0x54f   : > { %v1288_v52 = vpop.f32.mrf.mxu1 }
 0x551   : > { %v1772_v53 = vpop.f32.mrf.mxu1 }
 0x578   : > { %v1331_v57 = vpop.f32.mrf.mxu1 }
 0x579   : > { %1346 = vrot.lane.b32.xlu1 %v1331_v57, %s1906_s15 }
 0x57a   : > { %v1777_v58 = vpop.f32.mrf.mxu1 }
 0x57c   : > { %v1334_v59 = vpop.f32.mrf.mxu1 }
 0x57e   : > { %v1778_v60 = vpop.f32.mrf.mxu1 }
 0x5b6   : > { %v1339_v61 = vpop.permute.xlu1 %1338 }
 0x5b7   : > { %v1349_v63 = vsel %vm904_vm1, %v1193_v37, %v1339_v61 }
 0x5be   : > { %v1343_v62 = vpop.permute.xlu0 %1342 }
 0x5bf   : > { %v1351_v1 = vsel %vm1350_vm5, %v1349_v63, %v1343_v62 }
 0x5eb   : > { %v1347_v0 = vpop.permute.xlu1 %1346 }
 0x5ec   : > { %v1353_v3 = vsel %vm1352_vm6, %v1351_v1, %v1347_v0 }
 0x5ed   : > { %v1354_v4 = vpack.c.bf16 %v1353_v3, %v1353_v3 }
 0x5ef   : > { %1796 = vmatmul.mubr.bf16.vlgmr.msra.gmra.mxu0 %v1354_v4 }
 0x6af   : > { %v1460_v6 = vpop.f32.mrf.mxu0 }
 0x6b0   : > { %v1461_v7 = vadd.f32 %v1608_v5, %v1460_v6 }
 0x6b1   : > { %v1797_v8 = vpop.f32.mrf.mxu0 }
 0x6b2   : > { %v1466_v9 = vadd.f32 %v1461_v7, %v2012_v2 }
 0x6b3   : > { %v1463_v10 = vpop.f32.mrf.mxu0 }
 0x6b4   : > { %1467 = vst [vmem:[%s497_s20] sm:$0xff] %v1466_v9 }
 0x6b5   : > { %v1798_v11 = vpop.f32.mrf.mxu0 }
 0x6b6 PF: > { %s23_s27 = sadd.s32 1, %s1902_s27   ;;  %s2268_s25 = smov %s1898_s26 }
 0x6b7   : > { %p20_p5 = scmp.ge.s32.totalorder %s23_s27, 4   ;;  %s2269_s26 = smov %s2271_s28 }
 0x6b9   :  { %22 = sbr.rel (!%p20_p5) target bundleno = 2 (0x2), region = 108 }

// kernel: transformer_forward.19
= control target key start
LH: loop header
LB: loop body
LE: loop exit
PB: predicated region body
PF: predicated region fallthrough
CT: control target
= control target key end

     0   :  { %s1334_s0 = inlined_call_operand.vmem [shape: f32[16,128], index: 0, kind: input, shape index: {}]   ;;  %s1335_s1 = inlined_call_operand.vmem [shape: f32[1,128], index: 1, kind: input, shape index: {}]   ;;  %s1336_s2 = inlined_call_operand.vmem [shape: f32[1,128], index: 2, kind: input, shape index: {}]   ;;  %s1337_s3 = inlined_call_operand.vmem [shape: bf16[128,512], index: 3, kind: input, shape index: {}]   ;;  %s1338_s4 = inlined_call_operand.vmem [shape: f32[1,512], index: 4, kind: input, shape index: {}]   ;;  %s1339_s5 = inlined_call_operand.vmem [shape: bf16[512,128], index: 5, kind: input, shape index: {}]   ;;  %s1340_s6 = inlined_call_operand.vmem [shape: f32[1,128], index: 6, kind: input, shape index: {}]   ;;  %s1341_s7 = inlined_call_operand.vmem [shape: f32[1,128], index: 7, kind: input, shape index: {}]   ;;  %s1342_s8 = inlined_call_operand.vmem [shape: f32[1,128], index: 8, kind: input, shape index: {}]   ;;  %s1343_s9 = inlined_call_operand.hbm [shape: f32[16,128], index: 9, kind: output, shape index: {}]  }
   0x1   :  { %v1098_v0 = vld [vmem:[%s1334_s0] sm:$0xff]  ;;  %v1103_v1 = vld [vmem:[%s1334_s0 + $0x8] sm:$0xff] }
   0x2   :  { %38 = vadd.xlane.f32.xlu0 %v1098_v0  ;;  %v931_v2 = vld [vmem:[%s1337_s3 + $0xe4] ss:$16 sps:$4 sm:$0xff]   ;;  %v933_v3 = vld [vmem:[%s1337_s3 + $0xec] ss:$16 sps:$4 sm:$0xff]   ;;  %v935_v4 = vld [vmem:[%s1337_s3 + $0xe0] ss:$16 sps:$4 sm:$0xff]  }
   0x3   :  { %v936_v5 = vld [vmem:[%s1337_s3 + $0xe8] ss:$16 sps:$4 sm:$0xff]   ;;  %292 = vmatprep.subr.bf16.mxu0 %v931_v2  ;;  %335 = vmatprep.subr.bf16.mxu1 %v933_v3 }
   0x4   :  { %293 = vmatpush1.bf16.msra.mxu0 %v935_v4  ;;  %336 = vmatpush1.bf16.msra.mxu1 %v936_v5 }
   0x6   :  { %40 = vadd.xlane.f32.xlu0 %v1103_v1 }
   0x7   :  { %14 = vsyncpa [#allocation4], 0  ;;  %v937_v14 = vld [vmem:[%s1337_s3 + $0xc4] ss:$16 sps:$4 sm:$0xff]   ;;  %v939_v15 = vld [vmem:[%s1337_s3 + $0xcc] ss:$16 sps:$4 sm:$0xff]  }
   0x8   :  { %v941_v16 = vld [vmem:[%s1337_s3 + $0xc0] ss:$16 sps:$4 sm:$0xff]   ;;  %v942_v17 = vld [vmem:[%s1337_s3 + $0xc8] ss:$16 sps:$4 sm:$0xff]   ;;  %294 = vmatprep.subr.bf16.mxu0 %v937_v14  ;;  %337 = vmatprep.subr.bf16.mxu1 %v939_v15  ;;  %v943_v18 = vld [vmem:[%s1337_s3 + $0xa4] ss:$16 sps:$4 sm:$0xff]  }
   0x9   :  { %295 = vmatpush1.bf16.msra.mxu0 %v941_v16  ;;  %338 = vmatpush1.bf16.msra.mxu1 %v942_v17  ;;  %v945_v19 = vld [vmem:[%s1337_s3 + $0xac] ss:$16 sps:$4 sm:$0xff]   ;;  %v947_v20 = vld [vmem:[%s1337_s3 + $0xa0] ss:$16 sps:$4 sm:$0xff]   ;;  %v948_v21 = vld [vmem:[%s1337_s3 + $0xa8] ss:$16 sps:$4 sm:$0xff]  }
   0xa   :  { %296 = vmatprep.subr.bf16.mxu0 %v943_v18  ;;  %339 = vmatprep.subr.bf16.mxu1 %v945_v19  ;;  %v949_v22 = vld [vmem:[%s1337_s3 + $0x84] ss:$16 sps:$4 sm:$0xff]   ;;  %v951_v23 = vld [vmem:[%s1337_s3 + $0x8c] ss:$16 sps:$4 sm:$0xff]   ;;  %v953_v24 = vld [vmem:[%s1337_s3 + $0x80] ss:$16 sps:$4 sm:$0xff]  }
   0xb   :  { %v954_v25 = vld [vmem:[%s1337_s3 + $0x88] ss:$16 sps:$4 sm:$0xff]   ;;  %v955_v26 = vld [vmem:[%s1337_s3 + $0x64] ss:$16 sps:$4 sm:$0xff]   ;;  %v957_v27 = vld [vmem:[%s1337_s3 + $0x6c] ss:$16 sps:$4 sm:$0xff]  }
   0xc   :  { %v959_v28 = vld [vmem:[%s1337_s3 + $0x60] ss:$16 sps:$4 sm:$0xff]   ;;  %v960_v29 = vld [vmem:[%s1337_s3 + $0x68] ss:$16 sps:$4 sm:$0xff]   ;;  %v961_v30 = vld [vmem:[%s1337_s3 + $0x44] ss:$16 sps:$4 sm:$0xff]  }
   0xd   :  { %297 = vmatpush1.bf16.msra.mxu0 %v947_v20  ;;  %340 = vmatpush1.bf16.msra.mxu1 %v948_v21  ;;  %v963_v31 = vld [vmem:[%s1337_s3 + $0x4c] ss:$16 sps:$4 sm:$0xff]   ;;  %v965_v32 = vld [vmem:[%s1337_s3 + $0x40] ss:$16 sps:$4 sm:$0xff]   ;;  %v966_v33 = vld [vmem:[%s1337_s3 + $0x48] ss:$16 sps:$4 sm:$0xff]  }
   0xe   :  { %298 = vmatprep.subr.bf16.mxu0 %v949_v22  ;;  %341 = vmatprep.subr.bf16.mxu1 %v951_v23  ;;  %v967_v34 = vld [vmem:[%s1337_s3 + $0x24] ss:$16 sps:$4 sm:$0xff]   ;;  %v969_v35 = vld [vmem:[%s1337_s3 + $0x2c] ss:$16 sps:$4 sm:$0xff]   ;;  %v1041_v36 = vmov 0   ;;  %s1042_s30 = smov [#allocation3]  }
   0xf   :  { %324 = vmatprep.mubr.bf16.mxu0 %v1041_v36  ;;  %367 = vmatprep.mubr.bf16.mxu1 %v1041_v36  ;;  %v971_v37 = vld [vmem:[%s1337_s3 + $0x20] ss:$16 sps:$4 sm:$0xff]   ;;  %v972_v38 = vld [vmem:[%s1337_s3 + $0x28] ss:$16 sps:$4 sm:$0xff]   ;;  %v973_v39 = vld [vmem:[%s1337_s3 + $0x4] ss:$16 sps:$4 sm:$0xff]  }
  0x10   :  { %v975_v40 = vld [vmem:[%s1337_s3 + $0xc] ss:$16 sps:$4 sm:$0xff]   ;;  %v977_v41 = vld [vmem:[%s1337_s3] ss:$16 sps:$4 sm:$0xff]   ;;  %v978_v42 = vld [vmem:[%s1337_s3 + $0x8] ss:$16 sps:$4 sm:$0xff]  }
  0x11   :  { %299 = vmatpush1.bf16.msra.mxu0 %v953_v24  ;;  %342 = vmatpush1.bf16.msra.mxu1 %v954_v25  ;;  %v979_v43 = vld [vmem:[%s1339_s5 + $0x78] sm:$0xff]   ;;  %v814_v53 = vld [vmem:[%s1335_s1] ss:$0 sm:$0xff]  ;;  %v983_v2 = vld [vmem:[%s1339_s5 + $0x70] sm:$0xff]   ;;  %s803_s10 = sshll.u32 %s1042_s30, 4  ;;  %s804_s10 = int_to_ptr.vmem [resolvable:$true] %s803_s10 }
  0x12   :  { %300 = vmatprep.subr.bf16.mxu0 %v955_v26  ;;  %343 = vmatprep.subr.bf16.mxu1 %v957_v27  ;;  %v980_v44 = vld [vmem:[%s1339_s5 + $0xf8] sm:$0xff]   ;;  %v815_v57 = vld [vmem:[%s1336_s2] ss:$0 sm:$0xff]  ;;  %v984_v3 = vld [vmem:[%s1339_s5 + $0xf0] sm:$0xff]   ;;  %s1019_s11 = scalar_lea.vmem %s804_s10, 256  ;;  %p1024_p1 = scmp.lt.s32.totalorder %s804_s10, %s804_s10 }
  0x13   :  { %v981_v61 = vld [vmem:[%s1339_s5 + $0x38] sm:$0xff]   ;;  %v985_v4 = vld [vmem:[%s1339_s5 + $0x30] sm:$0xff]   ;;  %v1003_v22 = vld [vmem:[%s1339_s5 + $0x48] sm:$0xff]   ;;  %p1020_p0 = scmp.ne.s32.totalorder %s804_s10, %s1019_s11  ;;  %p1025_p2 = scmp.lt.s32.totalorder %s1019_s11, %s1019_s11 }
  0x14   :  { %v982_v62 = vld [vmem:[%s1339_s5 + $0xb8] sm:$0xff]   ;;  %v986_v5 = vld [vmem:[%s1339_s5 + $0xb0] sm:$0xff]   ;;  %v1004_v23 = vld [vmem:[%s1339_s5 + $0xc8] sm:$0xff]  }
  0x15   :  { %301 = vmatpush1.bf16.msra.mxu0 %v959_v28  ;;  %344 = vmatpush1.bf16.msra.mxu1 %v960_v29  ;;  %v995_v14 = vld [vmem:[%s1339_s5 + $0x58] sm:$0xff]   ;;  %v999_v18 = vld [vmem:[%s1339_s5 + $0x50] sm:$0xff]   ;;  %v1005_v24 = vld [vmem:[%s1339_s5 + $0x8] sm:$0xff]   ;;  %p1026_p3 = por %p1025_p2, %p1024_p1 }
  0x16   :  { %302 = vmatprep.subr.bf16.mxu0 %v961_v30  ;;  %345 = vmatprep.subr.bf16.mxu1 %v963_v31  ;;  %v996_v15 = vld [vmem:[%s1339_s5 + $0xd8] sm:$0xff]   ;;  %v1000_v19 = vld [vmem:[%s1339_s5 + $0xd0] sm:$0xff]   ;;  %v1006_v25 = vld [vmem:[%s1339_s5 + $0x88] sm:$0xff]   ;;  %v112_v30 = vlaneseq }
  0x17   :  { %v997_v16 = vld [vmem:[%s1339_s5 + $0x18] sm:$0xff]   ;;  %v1001_v20 = vld [vmem:[%s1339_s5 + $0x10] sm:$0xff]   ;;  %v1007_v26 = vld [vmem:[%s1339_s5 + $0x40] sm:$0xff]   ;;  %p1027_p4 = pnand %p1026_p3, %p1020_p0 }
  0x18   :  { %v998_v17 = vld [vmem:[%s1339_s5 + $0x98] sm:$0xff]   ;;  %v1002_v21 = vld [vmem:[%s1339_s5 + $0x90] sm:$0xff]   ;;  %v1008_v27 = vld [vmem:[%s1339_s5 + $0xc0] sm:$0xff]   ;;  %v113_v31 = vshrl.u32 %v112_v30, 7 }
  0x19   :  { %303 = vmatpush1.bf16.msra.mxu0 %v965_v32  ;;  %346 = vmatpush1.bf16.msra.mxu1 %v966_v33  ;;  %v1009_v28 = vld [vmem:[%s1339_s5] sm:$0xff]  }
  0x1a   :  { %304 = vmatprep.subr.bf16.mxu0 %v967_v34  ;;  %347 = vmatprep.subr.bf16.mxu1 %v969_v35  ;;  %v1010_v29 = vld [vmem:[%s1339_s5 + $0x80] sm:$0xff]   ;;  %v118_v32 = vsub.s32 1, %v113_v31  ;;  %v126_v33 = vsub.s32 3, %v113_v31  ;;  %v114_v34 = vsub.s32 0, %v113_v31  ;;  %v122_v35 = vsub.s32 2, %v113_v31 }
  0x1b   :  { %v110_v36 = vld [vmem:[%s1338_s4] sm:$0xf] }
  0x1d   :  { %305 = vmatpush1.bf16.msra.mxu0 %v971_v37  ;;  %348 = vmatpush1.bf16.msra.mxu1 %v972_v38 }
  0x1e   :  { %306 = vmatprep.subr.bf16.mxu0 %v973_v39  ;;  %349 = vmatprep.subr.bf16.mxu1 %v975_v40  ;;  %v119_v39 = vrot.slane %v110_v36, %v118_v32  ;;  %v127_v40 = vrot.slane %v110_v36, %v126_v33 }
  0x21   :  { %307 = vmatpush1.bf16.msra.mxu0 %v977_v41  ;;  %350 = vmatpush1.bf16.msra.mxu1 %v978_v42  ;;  %v115_v41 = vrot.slane %v110_v36, %v114_v34  ;;  %v123_v42 = vrot.slane %v110_v36, %v122_v35 }
  0x22   :  { %883 = vmatprep.subr.bf16.mxu0 %v979_v43  ;;  %905 = vmatprep.subr.bf16.mxu1 %v980_v44 }
  0x8b   :  { %v39_v6 = vpop.xlane.xlu0 %38 }
  0x8c   :  { %v43_v7 = vmul.f32 0.0078125, %v39_v6  ;;  %v987_v6 = vld [vmem:[%s1339_s5 + $0x68] sm:$0xff]  }
  0x8e   :  { %v1120_v8 = vsub.f32 %v1098_v0, %v43_v7  ;;  %v988_v7 = vld [vmem:[%s1339_s5 + $0xe8] sm:$0xff]  }
  0x8f   :  { %v41_v9 = vpop.xlane.xlu0 %40 }
  0x90   :  { %v44_v10 = vmul.f32 0.0078125, %v41_v9  ;;  %v47_v11 = vmul.f32 %v1120_v8, %v1120_v8  ;;  %v990_v9 = vld [vmem:[%s1339_s5 + $0xa8] sm:$0xff]  }
  0x92   :  { %v1125_v12 = vsub.f32 %v1103_v1, %v44_v10  ;;  %49 = vadd.xlane.f32.xlu1 %v47_v11  ;;  %v991_v10 = vld [vmem:[%s1339_s5 + $0x60] sm:$0xff]  }
  0x93   :  { %v992_v11 = vld [vmem:[%s1339_s5 + $0xe0] sm:$0xff]  }
  0x94   :  { %v48_v13 = vmul.f32 %v1125_v12, %v1125_v12 }
  0x96   :  { %51 = vadd.xlane.f32.xlu1 %v48_v13  ;;  %v994_v13 = vld [vmem:[%s1339_s5 + $0xa0] sm:$0xff]  }
 0x11b   :  { %v50_v45 = vpop.xlane.xlu1 %49 }
 0x11c   :  { %v53_v46 = vmul.f32 0.0078125, %v50_v45 }
 0x11e   :  { %v55_v47 = vadd.f32 1e-05, %v53_v46 }
 0x11f   :  { %v52_v48 = vpop.xlane.xlu1 %51 }
 0x120   :  { %1011 = vrsqrt.f32 %v55_v47  ;;  %v54_v49 = vmul.f32 0.0078125, %v52_v48 }
 0x122   :  { %v56_v50 = vadd.f32 1e-05, %v54_v49 }
 0x124   :  { %1013 = vrsqrt.f32 %v56_v50 }
 0x12d   :  { %v1012_v51 = vpop.eup %1011 }
 0x12e   :  { %v59_v52 = vmul.f32 %v1012_v51, %v1120_v8  ;;  %v989_v8 = vld [vmem:[%s1339_s5 + $0x28] sm:$0xff]  }
 0x130   :  { %v67_v56 = vmul.f32 %v814_v53, %v59_v52 }
 0x131   :  { %v1014_v54 = vpop.eup %1013 }
 0x132   :  { %v60_v55 = vmul.f32 %v1014_v54, %v1125_v12  ;;  %v75_v59 = vadd.f32 %v815_v57, %v67_v56  ;;  %v993_v12 = vld [vmem:[%s1339_s5 + $0x20] sm:$0xff]  }
 0x134   :  { %v68_v58 = vmul.f32 %v814_v53, %v60_v55 }
 0x136   :  { %v76_v60 = vadd.f32 %v815_v57, %v68_v58 }
 0x138   :  { %v77_v63 = vpack.c.bf16 %v76_v60, %v75_v59 }
 0x13a   :  { %325 = vmatmul.mubr.bf16.vlgmr.msra.gmra.mxu0 %v77_v63  ;;  %368 = vmatmul.mubr.bf16.vlgmr.msra.gmra.mxu1 %v77_v63 }
 0x13b   :  { %884 = vmatpush3.bf16.msra.mxu0 %v981_v61  ;;  %906 = vmatpush3.bf16.msra.mxu1 %v982_v62 }
 0x13c   :  { %885 = vmatprep.subr.bf16.mxu0 %v983_v2  ;;  %907 = vmatprep.subr.bf16.mxu1 %v984_v3 }
 0x13f   :  { %886 = vmatpush3.bf16.msra.mxu0 %v985_v4  ;;  %908 = vmatpush3.bf16.msra.mxu1 %v986_v5 }
 0x140   :  { %887 = vmatprep.subr.bf16.mxu0 %v987_v6  ;;  %909 = vmatprep.subr.bf16.mxu1 %v988_v7 }
 0x143   :  { %888 = vmatpush3.bf16.msra.mxu0 %v989_v8  ;;  %910 = vmatpush3.bf16.msra.mxu1 %v990_v9 }
 0x144   :  { %889 = vmatprep.subr.bf16.mxu0 %v991_v10  ;;  %911 = vmatprep.subr.bf16.mxu1 %v992_v11 }
 0x147   :  { %890 = vmatpush3.bf16.msra.mxu0 %v993_v12  ;;  %912 = vmatpush3.bf16.msra.mxu1 %v994_v13 }
 0x148   :  { %891 = vmatprep.subr.bf16.mxu0 %v995_v14  ;;  %913 = vmatprep.subr.bf16.mxu1 %v996_v15 }
 0x14b   :  { %892 = vmatpush3.bf16.msra.mxu0 %v997_v16  ;;  %914 = vmatpush3.bf16.msra.mxu1 %v998_v17 }
 0x14c   :  { %893 = vmatprep.subr.bf16.mxu0 %v999_v18  ;;  %915 = vmatprep.subr.bf16.mxu1 %v1000_v19  ;;  %v880_v18 = vld [vmem:[%s1340_s6] ss:$0 sm:$0xff] }
 0x14f   :  { %894 = vmatpush3.bf16.msra.mxu0 %v1001_v20  ;;  %916 = vmatpush3.bf16.msra.mxu1 %v1002_v21 }
 0x150   :  { %895 = vmatprep.subr.bf16.mxu0 %v1003_v22  ;;  %917 = vmatprep.subr.bf16.mxu1 %v1004_v23 }
 0x153   :  { %896 = vmatpush3.bf16.msra.mxu0 %v1005_v24  ;;  %918 = vmatpush3.bf16.msra.mxu1 %v1006_v25 }
 0x154   :  { %897 = vmatprep.subr.bf16.mxu0 %v1007_v26  ;;  %919 = vmatprep.subr.bf16.mxu1 %v1008_v27 }
 0x157   :  { %898 = vmatpush3.bf16.msra.mxu0 %v1009_v28  ;;  %920 = vmatpush3.bf16.msra.mxu1 %v1010_v29 }
 0x1fa   :  { %v326_v37 = vpop.f32.mrf.mxu0  ;;  %v369_v38 = vpop.f32.mrf.mxu1 }
 0x1fb   :  { %v327_v51 = vadd.f32 %v326_v37, %v115_v41  ;;  %v370_v52 = vadd.f32 %v369_v38, %v123_v42 }
 0x1fc   :  { %v328_v43 = vpop.f32.mrf.mxu0  ;;  %v371_v44 = vpop.f32.mrf.mxu1 }
 0x1fd   :  { %v329_v47 = vadd.f32 %v328_v43, %v119_v39  ;;  %v372_v48 = vadd.f32 %v371_v44, %v127_v40  ;;  %v378_v63 = vmax.f32 %v327_v51, 0.0  ;;  %v380_v2 = vmax.f32 %v370_v52, 0.0 }
 0x1fe   :  { %v330_v45 = vpop.f32.mrf.mxu0  ;;  %v373_v46 = vpop.f32.mrf.mxu1 }
 0x1ff   :  { %v331_v49 = vadd.f32 %v330_v45, %v115_v41  ;;  %v374_v50 = vadd.f32 %v373_v46, %v123_v42  ;;  %v379_v59 = vmax.f32 %v329_v47, 0.0  ;;  %v381_v60 = vmax.f32 %v372_v48, 0.0  ;;  %v882_v41 = vld [vmem:[%s1342_s8] ss:$0 sm:$0xff] }
 0x200   :  { %v332_v53 = vpop.f32.mrf.mxu0  ;;  %v375_v54 = vpop.f32.mrf.mxu1 }
 0x201   :  { %v333_v55 = vadd.f32 %v332_v53, %v119_v39  ;;  %v376_v56 = vadd.f32 %v375_v54, %v127_v40  ;;  %v382_v57 = vmax.f32 %v331_v49, 0.0  ;;  %v384_v58 = vmax.f32 %v374_v50, 0.0  ;;  %v881_v39 = vld [vmem:[%s1341_s7] ss:$0 sm:$0xff] }
 0x203   :  { %v383_v61 = vmax.f32 %v333_v55, 0.0  ;;  %v385_v62 = vmax.f32 %v376_v56, 0.0  ;;  %v386_v5 = vpack.c.bf16 %v382_v57, %v378_v63  ;;  %v388_v6 = vpack.c.bf16 %v384_v58, %v380_v2 }
 0x205   :  { %v387_v3 = vpack.c.bf16 %v383_v61, %v379_v59  ;;  %v389_v4 = vpack.c.bf16 %v385_v62, %v381_v60 }
 0x207   :  { %678 = vmatprep.mubr.bf16.mxu0 %v387_v3  ;;  %719 = vmatprep.mubr.bf16.mxu1 %v389_v4 }
 0x208   :  { %679 = vmatmul.mubr.bf16.vlgmr.msra.gmra.mxu0 %v386_v5  ;;  %720 = vmatmul.mubr.bf16.vlgmr.msra.gmra.mxu1 %v388_v6 }
 0x2c8   :  { %v899_v7 = vpop.f32.mrf.mxu0  ;;  %v921_v8 = vpop.f32.mrf.mxu1 }
 0x2ca   :  { %v900_v9 = vpop.f32.mrf.mxu0  ;;  %v922_v10 = vpop.f32.mrf.mxu1 }
 0x2cb   :  { %v901_v11 = vadd.f32 %v900_v9, %v899_v7  ;;  %v923_v12 = vadd.f32 %v922_v10, %v921_v8 }
 0x2cc   :  { %v902_v13 = vpop.f32.mrf.mxu0  ;;  %v924_v14 = vpop.f32.mrf.mxu1 }
 0x2cd   :  { %v722_v15 = vadd.f32 %v923_v12, %v901_v11 }
 0x2ce   :  { %v903_v16 = vpop.f32.mrf.mxu0  ;;  %v925_v17 = vpop.f32.mrf.mxu1 }
 0x2cf   :  { %v904_v19 = vadd.f32 %v903_v16, %v902_v13  ;;  %v926_v20 = vadd.f32 %v925_v17, %v924_v14  ;;  %v745_v21 = vadd.f32 %v722_v15, %v1098_v0 }
 0x2d1   :  { %v725_v22 = vadd.f32 %v926_v20, %v904_v19  ;;  %v754_v23 = vadd.f32 %v880_v18, %v745_v21 }
 0x2d3   :  { %758 = vadd.xlane.f32.xlu0 %v754_v23  ;;  %v746_v24 = vadd.f32 %v725_v22, %v1103_v1 }
 0x2d5   :  { %v755_v25 = vadd.f32 %v880_v18, %v746_v24 }
 0x2d7   :  { %760 = vadd.xlane.f32.xlu1 %v755_v25 }
 0x35c   :  { %v759_v26 = vpop.xlane.xlu0 %758 }
 0x35d   :  { %v762_v27 = vmul.f32 0.0078125, %v759_v26 }
 0x35f   :  { %v764_v28 = vsub.f32 %v754_v23, %v762_v27 }
 0x360   :  { %v761_v29 = vpop.xlane.xlu1 %760 }
 0x361   :  { %v763_v30 = vmul.f32 0.0078125, %v761_v29  ;;  %v766_v31 = vmul.f32 %v764_v28, %v764_v28 }
 0x363   :  { %v765_v32 = vsub.f32 %v755_v25, %v763_v30  ;;  %768 = vadd.xlane.f32.xlu0 %v766_v31 }
 0x365   :  { %v767_v33 = vmul.f32 %v765_v32, %v765_v32 }
 0x367   :  { %770 = vadd.xlane.f32.xlu1 %v767_v33 }
 0x3ec   :  { %v769_v34 = vpop.xlane.xlu0 %768 }
 0x3ed   :  { %v772_v35 = vmul.f32 0.0078125, %v769_v34 }
 0x3ef   :  { %v774_v0 = vadd.f32 1e-05, %v772_v35 }
 0x3f0   :  { %v771_v36 = vpop.xlane.xlu1 %770 }
 0x3f1   :  { %1015 = vrsqrt.f32 %v774_v0  ;;  %v773_v37 = vmul.f32 0.0078125, %v771_v36 }
 0x3f3   :  { %v775_v38 = vadd.f32 1e-05, %v773_v37 }
 0x3f5   :  { %1017 = vrsqrt.f32 %v775_v38 }
 0x3fe   :  { %v1016_v1 = vpop.eup %1015 }
 0x3ff   :  { %v778_v40 = vmul.f32 %v1016_v1, %v764_v28 }
 0x401   :  { %v786_v42 = vmul.f32 %v881_v39, %v778_v40 }
 0x402   :  { %v1018_v43 = vpop.eup %1017 }
 0x403   :  { %v779_v44 = vmul.f32 %v1018_v43, %v765_v32  ;;  %v794_v45 = vadd.f32 %v882_v41, %v786_v42 }
 0x405   :  { %v787_v46 = vmul.f32 %v881_v39, %v779_v44  ;;  %796 = vst [vmem:[#allocation3] sm:$0xff] %v794_v45 }
 0x407   :  { %v795_v47 = vadd.f32 %v882_v41, %v787_v46 }
 0x409   :  { %797 = vst [vmem:[#allocation3 + $0x8] sm:$0xff] %v795_v47 }
 0x40a   :  { %1030 = shalt.err (!%p1027_p4)
}
 0x40b   :  { %s1043_s7 = smov 128   ;;  %s1044_s8 = smov 8  }
 0x40c   :  { %809 = dma.vmem_to_hbm [thread:$0]  %s804_s10, 256, %s1343_s9, [#allocation4], %s1043_s7, %s1043_s7, %s1044_s8  }
 0x40d   :  { %1039 = dma.done.wait [#allocation4], 256  }
 0x40e   :  { %1040 = vsyncadd [#allocation4], 4294967040 }
 0x40f   :  { %813 = vsyncpa [#allocation4], 1 }

// kernel: transformer_forward.15
= control target key start
LH: loop header
LB: loop body
LE: loop exit
PB: predicated region body
PF: predicated region fallthrough
CT: control target
= control target key end

     0   :  { %s1964_s25 = smov 0   ;;  %s1966_s26 = smov 0   ;;  %s2237_s0 = inlined_call_operand.vmem [shape: f32[2,8,128], index: 0, kind: input, shape index: {}]   ;;  %s2238_s1 = inlined_call_operand.vmem [shape: f32[2,8,128], index: 1, kind: input, shape index: {}]   ;;  %s2239_s2 = inlined_call_operand.vmem [shape: f32[2,1,8], index: 2, kind: input, shape index: {}]   ;;  %s2240_s3 = inlined_call_operand.vmem [shape: f32[1,128], index: 3, kind: input, shape index: {}]   ;;  %s2241_s4 = inlined_call_operand.vmem [shape: f32[1,128], index: 4, kind: input, shape index: {}]   ;;  %s2242_s5 = inlined_call_operand.vmem [shape: bf16[128,128], index: 5, kind: input, shape index: {}]   ;;  %s2243_s6 = inlined_call_operand.vmem [shape: f32[1,128], index: 6, kind: input, shape index: {}]   ;;  %s2244_s7 = inlined_call_operand.vmem [shape: bf16[128,128], index: 7, kind: input, shape index: {}]   ;;  %s2245_s8 = inlined_call_operand.vmem [shape: f32[1,128], index: 8, kind: input, shape index: {}]   ;;  %s2246_s9 = inlined_call_operand.vmem [shape: bf16[128,128], index: 9, kind: input, shape index: {}]   ;;  %s2247_s10 = inlined_call_operand.vmem [shape: f32[1,128], index: 10, kind: input, shape index: {}]   ;;  %s2248_s11 = inlined_call_operand.vmem [shape: bf16[128,128], index: 11, kind: input, shape index: {}]   ;;  %s2249_s12 = inlined_call_operand.vmem [shape: f32[1,128], index: 12, kind: input, shape index: {}]   ;;  %s2250_s13 = inlined_call_operand.vmem [shape: f32[2,8,128], index: 13, kind: output, shape index: {}]  }
   0x1   :  { %s1968_s27 = smov 0  }
   0x2 LB: > { %s35_s28 = sadd.s32 1, %s1883_s26  ;;  %p1554_p0 = scmp.ge.s32.totalorder %s1887_s27, 1  ;;  %s1887_s27 = sphi %s1968_s27, %s23_s27   ;;  %s1883_s26 = sphi %s1966_s26, %s2252_s26   ;;  %s1879_s25 = sphi %s1964_s25, %s2251_s25  }
   0x3   : > { %p37_p1 = scmp.ge.s32.totalorder %s35_s28, 2  ;;  %p422_p2 = scmp.lt.s32.totalorder %s1887_s27, 3 }
   0x5   : > { %s2254_s28 = smov (%p37_p1, %s35_s28), 0  ;;  %p423_p3 = pnand %p1554_p0, %p422_p2 }
   0x6   : > { %p477_p4 = scmp.lt.s32.totalorder (!%p423_p3), %s1879_s25, 1  ;;  %s1891_s21 = smov (!%p423_p3), 96  }
   0x7   : > { %426 = sbr.rel (%p423_p3) target bundleno = 1710 (0x6ae), region = 72  ;;  %s1892_s22 = smov (!%p423_p3), 64  }
   0x8   : > { %s1893_s30 = smov (!%p423_p3), 32  }
   0xc   : > { %v1889_v0 = vmov 0.0   ;;  %s2256_s25 = smov (!%p477_p4, %s1879_s25), 1  ;;  %v1815_v2 = vld [vmem:[%s2244_s7 + $0x38] sm:$0xff]   ;;  %v1816_v4 = vld [vmem:[%s2244_s7 + $0x30] sm:$0xff]   ;;  %v1817_v6 = vld [vmem:[%s2244_s7 + $0x28] sm:$0xff]   ;;  %vm1890_vm0 = vmmov 0  }
   0xd   : > { %1678 = vmatprep.subr.bf16.mxu1 %v1889_v0  ;;  %1658 = vmatprep.subr.bf16.mxu0 %v1889_v0  ;;  %s1987_s29 = sshll.u32 %s2256_s25, 3  ;;  %v1819_v3 = vld [vmem:[%s2242_s5 + $0x38] sm:$0xff]   ;;  %v1821_v5 = vld [vmem:[%s2242_s5 + $0x30] sm:$0xff]   ;;  %v1818_v7 = vld [vmem:[%s2244_s7 + $0x20] sm:$0xff]   ;;  %vm891_vm1 = vcmask 261120   ;;  %s490_s14 = scalar_lea.vmem %s2239_s2, %s2256_s25  ;;  %vm1090_vm3 = vcmask 64512  }
   0xe   : > { %s483_s15 = scalar_lea.vmem %s2237_s0, %s1987_s29  ;;  %1679 = vmatpush3.bf16.msra.mxu1 %v1815_v2  ;;  %1659 = vmatpush3.bf16.msra.mxu0 %v1819_v3  ;;  %v1820_v8 = vld [vmem:[%s2244_s7 + $0x18] sm:$0xff]   ;;  %v1822_v13 = vld [vmem:[%s2244_s7 + $0x10] sm:$0xff]   ;;  %v1823_v14 = vld [vmem:[%s2242_s5 + $0x28] sm:$0xff]   ;;  %s487_s16 = scalar_lea.vmem %s2238_s1, %s1987_s29  ;;  %vm1142_vm4 = vcmask 1043456   ;;  %vm1337_vm5 = vcmask 523264   ;;  %vm1339_vm6 = vcmask 785408  }
   0xf   : > { %v1993_v1 = vld [vmem:[%s483_s15] sm:$0xff]  ;;  %1680 = vmatprep.subr.bf16.mxu1 %v1889_v0  ;;  %1660 = vmatprep.subr.bf16.mxu0 %v1889_v0  ;;  %v1824_v15 = vld [vmem:[%s2244_s7 + $0x8] sm:$0xff]   ;;  %v1827_v19 = vld [vmem:[%s2242_s5 + $0x18] sm:$0xff]  }
  0x10   : > { %503 = vadd.xlane.f32.xlu0 %v1993_v1  ;;  %v1825_v16 = vld [vmem:[%s2242_s5 + $0x20] sm:$0xff]   ;;  %1694 = vmatprep.mubr.msk.bf16.mxu1 %vm1890_vm0, %v1889_v0  ;;  %v1828_v21 = vld [vmem:[%s2242_s5 + $0x10] sm:$0xff]   ;;  %v1829_v22 = vld [vmem:[%s2242_s5 + $0x8] sm:$0xff]  }
  0x11   : > { %v1826_v17 = vld [vmem:[%s2244_s7] sm:$0xff]   ;;  %1674 = vmatprep.mubr.msk.bf16.mxu0 %vm1890_vm0, %v1889_v0  ;;  %v1831_v51 = vld [vmem:[%s2246_s9 + $0x38] sm:$0xff]   ;;  %v1832_v52 = vld [vmem:[%s2246_s9 + $0x30] sm:$0xff]  }
  0x12   : > { %1681 = vmatpush3.bf16.msra.mxu1 %v1816_v4  ;;  %1661 = vmatpush3.bf16.msra.mxu0 %v1821_v5  ;;  %v500_v18 = vld [vmem:[%s487_s16] sm:$0xff]  ;;  %v1833_v53 = vld [vmem:[%s2246_s9 + $0x28] sm:$0xff]   ;;  %v1835_v55 = vld [vmem:[%s2246_s9 + $0x18] sm:$0xff]   ;;  %v1081_v4 = vlaneseq }
  0x13   : > { %1682 = vmatprep.subr.bf16.mxu1 %v1889_v0  ;;  %1662 = vmatprep.subr.bf16.mxu0 %v1889_v0  ;;  %v2055_v20 = vpack.c.bf16 %v500_v18, %v500_v18  ;;  %v1830_v23 = vld [vmem:[%s2242_s5] sm:$0xff]   ;;  %v1836_v56 = vld [vmem:[%s2246_s9 + $0x10] sm:$0xff]   ;;  %v1837_v57 = vld [vmem:[%s2246_s9 + $0x8] sm:$0xff]  }
  0x14   : > { %v1558_v28 = vld [vmem:[%s2240_s3] ss:$0 sm:$0xff] }
  0x15   : > { %v1559_v30 = vld [vmem:[%s2241_s4] ss:$0 sm:$0xff] }
  0x16   : > { %1683 = vmatpush3.bf16.msra.mxu1 %v1817_v6  ;;  %1663 = vmatpush3.bf16.msra.mxu0 %v1823_v14  ;;  %v1569_v34 = vld [vmem:[%s2245_s8] ss:$0 sm:$0xff]  ;;  %v1082_v6 = vshrl.u32 %v1081_v4, 7 }
  0x17   : > { %1684 = vmatprep.subr.bf16.mxu1 %v1889_v0  ;;  %1664 = vmatprep.subr.bf16.mxu0 %v1889_v0  ;;  %v1560_v42 = vld [vmem:[%s2243_s6] ss:$0 sm:$0xff] }
  0x18   : > { %v1834_v54 = vld [vmem:[%s2246_s9 + $0x20] sm:$0xff]  }
  0x19   : > { %v1838_v58 = vld [vmem:[%s2246_s9] sm:$0xff]  }
  0x1a   : > { %1685 = vmatpush3.bf16.msra.mxu1 %v1818_v7  ;;  %1665 = vmatpush3.bf16.msra.mxu0 %v1825_v16  ;;  %v864_v5 = vld [vmem:[%s490_s14] sm:$0x1]  ;;  %v1083_v7 = vsub.s32 0, %v1082_v6  ;;  %s497_s14 = scalar_lea.vmem %s2250_s13, %s1987_s29 }
  0x1b   : > { %1686 = vmatprep.subr.bf16.mxu1 %v1889_v0  ;;  %1666 = vmatprep.subr.bf16.mxu0 %v1889_v0  ;;  %vm865_vm2 = vcmp.eq.f32.partialorder %v864_v5, 0.0 }
  0x1e   : > { %1687 = vmatpush3.bf16.msra.mxu1 %v1820_v8  ;;  %1667 = vmatpush3.bf16.msra.mxu0 %v1827_v19  ;;  %v866_v8 = vsel %vm865_vm2, -1e+09, %v1889_v0 }
  0x1f   : > { %1688 = vmatprep.subr.bf16.mxu1 %v1889_v0  ;;  %1668 = vmatprep.subr.bf16.mxu0 %v1889_v0 }
  0x22   : > { %1689 = vmatpush3.bf16.msra.mxu1 %v1822_v13  ;;  %1669 = vmatpush3.bf16.msra.mxu0 %v1828_v21 }
  0x23   : > { %1690 = vmatprep.subr.bf16.mxu1 %v1889_v0  ;;  %1670 = vmatprep.subr.bf16.mxu0 %v1889_v0 }
  0x26   : > { %1691 = vmatpush3.bf16.msra.mxu1 %v1824_v15  ;;  %1671 = vmatpush3.bf16.msra.mxu0 %v1829_v22 }
  0x27   : > { %1692 = vmatprep.subr.bf16.mxu1 %v1889_v0  ;;  %1672 = vmatprep.subr.bf16.mxu0 %v1889_v0 }
  0x2a   : > { %1693 = vmatpush3.bf16.msra.mxu1 %v1826_v17  ;;  %1673 = vmatpush3.bf16.msra.mxu0 %v1830_v23 }
  0x2b   : > { %1718 = vmatprep.subr.bf16.mxu1 %v1889_v0  ;;  %1698 = vmatprep.subr.bf16.mxu0 %v1889_v0 }
  0x2d   : > { %1695 = vmatmul.mubr.bf16.vlgmr.msra.gmra.mxu1 %v2055_v20 }
  0x2e   : > { %1720 = vmatprep.mubr.msk.bf16.mxu1 %vm1890_vm0, %v1889_v0 }
  0x99   : > { %v504_v9 = vpop.xlane.xlu0 %503 }
  0x9a   : > { %v506_v10 = vmul.f32 0.0078125, %v504_v9  ;;  %v1084_v9 = vrot.slane %v866_v8, %v1083_v7 }
  0x9c   : > { %v507_v11 = vsub.f32 %v1993_v1, %v506_v10 }
  0x9e   : > { %v508_v12 = vmul.f32 %v507_v11, %v507_v11 }
  0xa0   : > { %509 = vadd.xlane.f32.xlu0 %v508_v12 }
  0xed   : > { %v747_v35 = vpop.f32.mrf.mxu1 }
  0xee   : > { %v748_v36 = vadd.f32 %v1569_v34, %v747_v35 }
  0xef   : > { %v1696_v37 = vpop.f32.mrf.mxu1 }
  0xf0   : > { %v875_v38 = vpack.c.bf16 %v748_v36, %v748_v36 }
  0xf1   : > { %v750_v39 = vpop.f32.mrf.mxu1 }
  0xf2   : > { %877 = vrot.lane.b32.xlu1 %v875_v38, %s1891_s21  ;;  %879 = vrot.lane.b32.xlu0 %v875_v38, %s1892_s22  ;;  %v896_v40 = vsel %vm891_vm1, %v875_v38, 0 }
  0xf3   : > { %v1697_v41 = vpop.f32.mrf.mxu1  ;;  %1719 = vmatpush3.bf16.xpose.msra.mxu1 %v896_v40 }
  0xf4   : > { %1724 = vmatprep.subr.bf16.mxu1 %v1889_v0 }
 0x129   : > { %v510_v24 = vpop.xlane.xlu0 %509 }
 0x12a   : > { %v511_v25 = vmul.f32 0.0078125, %v510_v24 }
 0x12c   : > { %v512_v26 = vadd.f32 1e-05, %v511_v25 }
 0x12e   : > { %1847 = vrsqrt.f32 %v512_v26 }
 0x13b   : > { %v1848_v27 = vpop.eup %1847 }
 0x13c   : > { %v514_v29 = vmul.f32 %v1848_v27, %v507_v11 }
 0x13e   : > { %v521_v31 = vmul.f32 %v1558_v28, %v514_v29 }
 0x140   : > { %v528_v32 = vadd.f32 %v1559_v30, %v521_v31 }
 0x142   : > { %v529_v33 = vpack.c.bf16 %v528_v32, %v528_v32 }
 0x144   : > { %1675 = vmatmul.mubr.bf16.vlgmr.msra.gmra.mxu0 %v529_v33 }
 0x145   : > { %1714 = vmatprep.mubr.msk.bf16.mxu0 %vm1890_vm0, %v1889_v0  ;;  %1699 = vmatpush3.bf16.msra.mxu0 %v1831_v51 }
 0x146   : > { %1700 = vmatprep.subr.bf16.mxu0 %v1889_v0 }
 0x149   : > { %1701 = vmatpush3.bf16.msra.mxu0 %v1832_v52 }
 0x14a   : > { %1702 = vmatprep.subr.bf16.mxu0 %v1889_v0 }
 0x14d   : > { %1703 = vmatpush3.bf16.msra.mxu0 %v1833_v53 }
 0x14e   : > { %1704 = vmatprep.subr.bf16.mxu0 %v1889_v0 }
 0x151   : > { %1705 = vmatpush3.bf16.msra.mxu0 %v1834_v54 }
 0x152   : > { %1706 = vmatprep.subr.bf16.mxu0 %v1889_v0 }
 0x155   : > { %1707 = vmatpush3.bf16.msra.mxu0 %v1835_v55 }
 0x156   : > { %1708 = vmatprep.subr.bf16.mxu0 %v1889_v0 }
 0x159   : > { %1709 = vmatpush3.bf16.msra.mxu0 %v1836_v56 }
 0x15a   : > { %1710 = vmatprep.subr.bf16.mxu0 %v1889_v0 }
 0x15d   : > { %1711 = vmatpush3.bf16.msra.mxu0 %v1837_v57 }
 0x15e   : > { %1712 = vmatprep.subr.bf16.mxu0 %v1889_v0 }
 0x161   : > { %1713 = vmatpush3.bf16.msra.mxu0 %v1838_v58 }
 0x162   : > { %1766 = vmatprep.subr.bf16.mxu0 %v1889_v0 }
 0x164   : > { %v878_v44 = vpop.permute.xlu1 %877  ;;  %1715 = vmatmul.mubr.bf16.vlgmr.msra.gmra.mxu0 %v2055_v20  ;;  %v880_v59 = vpop.permute.xlu0 %879 }
 0x165   : > { %v942_v48 = vsel %vm891_vm1, %v878_v44, 0  ;;  %1782 = vmatprep.mubr.msk.bf16.mxu0 %vm1890_vm0, %v1889_v0  ;;  %v988_v61 = vsel %vm891_vm1, %v880_v59, 0  ;;  %v1578_v44 = vld [vmem:[%s2247_s10] ss:$0 sm:$0xff] }
 0x204   : > { %v635_v43 = vpop.f32.mrf.mxu0 }
 0x205   : > { %v636_v45 = vadd.f32 %v1560_v42, %v635_v43 }
 0x206   : > { %v1676_v46 = vpop.f32.mrf.mxu0 }
 0x207   : > { %v867_v47 = vpack.c.bf16 %v636_v45, %v636_v45 }
 0x208   : > { %v638_v49 = vpop.f32.mrf.mxu0 }
 0x209   : > { %869 = vrot.lane.b32.xlu1 %v867_v47, %s1891_s21  ;;  %1721 = vmatmul.mubr.msk.bf16.vlgmr.msra.gmra.mxu1 %vm891_vm1, %v867_v47 }
 0x20a   : > { %v1677_v50 = vpop.f32.mrf.mxu0  ;;  %1725 = vmatpush3.bf16.xpose.msra.mxu1 %v942_v48  ;;  %1726 = vmatprep.mubr.msk.bf16.mxu1 %vm1890_vm0, %v1889_v0 }
 0x20b   : > { %1730 = vmatprep.subr.bf16.mxu1 %v1889_v0 }
 0x20d   : > { %871 = vrot.lane.b32.xlu1 %v867_v47, %s1892_s22 }
 0x211   : > { %881 = vrot.lane.b32.xlu1 %v875_v38, %s1893_s30 }
 0x215   : > { %873 = vrot.lane.b32.xlu1 %v867_v47, %s1893_s30 }
 0x224   : > { %v858_v41 = vpop.f32.mrf.mxu0 }
 0x225   : > { %v859_v46 = vadd.f32 %v1578_v44, %v858_v41  ;;  %v1845_v44 = vld [vmem:[%s2248_s11 + $0x8] sm:$0xff]  }
 0x226   : > { %v1716_v42 = vpop.f32.mrf.mxu0 }
 0x227   : > { %v883_v49 = vpack.c.bf16 %v859_v46, %v859_v46 }
 0x228   : > { %v861_v43 = vpop.f32.mrf.mxu0 }
 0x229   : > { %v1144_v50 = vsel %vm1142_vm4, %v883_v49, 0  ;;  %v1844_v43 = vld [vmem:[%s2248_s11 + $0x10] sm:$0xff]  }
 0x22a   : > { %v1717_v45 = vpop.f32.mrf.mxu0 }
 0x22b   : > { %v1846_v45 = vld [vmem:[%s2248_s11] sm:$0xff]  }
 0x27b   : > { %v870_v60 = vpop.permute.xlu1 %869 }
 0x27c   : > { %1727 = vmatmul.mubr.msk.bf16.vlgmr.msra.gmra.mxu1 %vm891_vm1, %v870_v60 }
 0x27d   : > { %1731 = vmatpush3.bf16.xpose.msra.mxu1 %v988_v61  ;;  %1732 = vmatprep.mubr.msk.bf16.mxu1 %vm1890_vm0, %v1889_v0 }
 0x27e   : > { %1736 = vmatprep.subr.bf16.mxu1 %v1889_v0 }
 0x27f   : > { %v872_v62 = vpop.permute.xlu1 %871 }
 0x283   : > { %v882_v63 = vpop.permute.xlu1 %881 }
 0x284   : > { %v1034_v2 = vsel %vm891_vm1, %v882_v63, 0  ;;  %1733 = vmatmul.mubr.msk.bf16.vlgmr.msra.gmra.mxu1 %vm891_vm1, %v872_v62 }
 0x285   : > { %1737 = vmatpush3.bf16.xpose.msra.mxu1 %v1034_v2  ;;  %1738 = vmatprep.mubr.msk.bf16.mxu1 %vm1890_vm0, %v1889_v0 }
 0x286   : > { %1742 = vmatprep.subr.bf16.mxu1 %v1889_v0 }
 0x287   : > { %v874_v3 = vpop.permute.xlu1 %873 }
 0x28c   : > { %1739 = vmatmul.mubr.msk.bf16.vlgmr.msra.gmra.mxu1 %vm891_vm1, %v874_v3 }
 0x28d   : > { %1744 = vmatprep.mubr.msk.bf16.mxu1 %vm1890_vm0, %v1889_v0  ;;  %1743 = vmatpush3.bf16.msra.mxu1 %v1144_v50 }
 0x28e   : > { %1748 = vmatprep.subr.bf16.mxu1 %v1889_v0 }
 0x2c9   : > { %v932_v10 = vpop.f32.mrf.mxu1 }
 0x2ca   : > { %v1076_v11 = vmul.f32 0.17677669, %v932_v10 }
 0x2cb   : > { %v1722_v12 = vpop.f32.mrf.mxu1 }
 0x2cc   : > { %v1086_v13 = vadd.f32 %v1084_v9, %v1076_v11 }
 0x2cd   : > { %v935_v14 = vpop.f32.mrf.mxu1 }
 0x2ce   : > { %v1091_v15 = vsel %vm1090_vm3, %v1086_v13, -inf }
 0x2cf   : > { %1092 = vmax.xlane.f32.xlu1 %v1091_v15  ;;  %v1723_v16 = vpop.f32.mrf.mxu1 }
 0x33c   : > { %v978_v17 = vpop.f32.mrf.mxu1 }
 0x33d   : > { %v1077_v18 = vmul.f32 0.17677669, %v978_v17 }
 0x33e   : > { %v1728_v19 = vpop.f32.mrf.mxu1 }
 0x33f   : > { %v1087_v20 = vadd.f32 %v1084_v9, %v1077_v18 }
 0x340   : > { %v981_v21 = vpop.f32.mrf.mxu1 }
 0x341   : > { %v1094_v22 = vsel %vm1090_vm3, %v1087_v20, -inf }
 0x342   : > { %1095 = vmax.xlane.f32.xlu0 %v1094_v22  ;;  %v1729_v23 = vpop.f32.mrf.mxu1 }
 0x344   : > { %v1024_v24 = vpop.f32.mrf.mxu1 }
 0x345   : > { %v1078_v25 = vmul.f32 0.17677669, %v1024_v24 }
 0x346   : > { %v1734_v26 = vpop.f32.mrf.mxu1 }
 0x347   : > { %v1088_v27 = vadd.f32 %v1084_v9, %v1078_v25 }
 0x348   : > { %v1027_v28 = vpop.f32.mrf.mxu1 }
 0x349   : > { %v1097_v29 = vsel %vm1090_vm3, %v1088_v27, -inf }
 0x34a   : > { %1098 = vmax.xlane.f32.xlu1 %v1097_v29  ;;  %v1735_v30 = vpop.f32.mrf.mxu1 }
 0x34b   : > { %v1839_v30 = vld [vmem:[%s2248_s11 + $0x38] sm:$0xff]  }
 0x34c   : > { %v1070_v31 = vpop.f32.mrf.mxu1  ;;  %1767 = vmatpush3.bf16.msra.mxu0 %v1839_v30 }
 0x34d   : > { %v1079_v32 = vmul.f32 0.17677669, %v1070_v31  ;;  %v1840_v31 = vld [vmem:[%s2248_s11 + $0x30] sm:$0xff]   ;;  %1768 = vmatprep.subr.bf16.mxu0 %v1889_v0 }
 0x34e   : > { %v1740_v33 = vpop.f32.mrf.mxu1 }
 0x34f   : > { %v1089_v34 = vadd.f32 %v1084_v9, %v1079_v32 }
 0x350   : > { %v1073_v35 = vpop.f32.mrf.mxu1  ;;  %1769 = vmatpush3.bf16.msra.mxu0 %v1840_v31 }
 0x351   : > { %v1100_v36 = vsel %vm1090_vm3, %v1089_v34, -inf  ;;  %1770 = vmatprep.subr.bf16.mxu0 %v1889_v0 }
 0x352   : > { %1101 = vmax.xlane.f32.xlu1 %v1100_v36  ;;  %v1741_v37 = vpop.f32.mrf.mxu1 }
 0x353   : > { %v1842_v37 = vld [vmem:[%s2248_s11 + $0x20] sm:$0xff]  }
 0x358   : > { %v1093_v38 = vpop.xlane.xlu1 %1092 }
 0x359   : > { %v1103_v39 = vsub.f32 %v1086_v13, %v1093_v38 }
 0x35b   : > { %v1107_v40 = vmul.f32 1.442695, %v1103_v39 }
 0x35d   : > { %1849 = vpow2.f32 %v1107_v40  ;;  %v1843_v40 = vld [vmem:[%s2248_s11 + $0x18] sm:$0xff]  }
 0x36a   : > { %v1850_v47 = vpop.eup %1849 }
 0x36b   : > { %v1115_v48 = vsel %vm1090_vm3, %v1850_v47, 0.0 }
 0x36c   : > { %1116 = vadd.xlane.f32.xlu0 %v1115_v48 }
 0x3cb   : > { %v1096_v51 = vpop.xlane.xlu0 %1095 }
 0x3cc   : > { %v1104_v52 = vsub.f32 %v1087_v20, %v1096_v51 }
 0x3ce   : > { %v1109_v53 = vmul.f32 1.442695, %v1104_v52 }
 0x3d0   : > { %1851 = vpow2.f32 %v1109_v53 }
 0x3d3   : > { %v1099_v54 = vpop.xlane.xlu1 %1098 }
 0x3d4   : > { %v1105_v55 = vsub.f32 %v1088_v27, %v1099_v54 }
 0x3d6   : > { %v1111_v56 = vmul.f32 1.442695, %v1105_v55 }
 0x3d8   : > { %1853 = vpow2.f32 %v1111_v56  ;;  %v1595_v56 = vld [vmem:[%s2249_s12] ss:$0 sm:$0xff] }
 0x3db   : > { %v1102_v62 = vpop.xlane.xlu1 %1101 }
 0x3dc   : > { %v1106_v63 = vsub.f32 %v1089_v34, %v1102_v62  ;;  %v1841_v34 = vld [vmem:[%s2248_s11 + $0x28] sm:$0xff]  }
 0x3dd   : > { %v1852_v57 = vpop.eup %1851  ;;  %1771 = vmatpush3.bf16.msra.mxu0 %v1841_v34 }
 0x3de   : > { %v1118_v58 = vsel %vm1090_vm3, %v1852_v57, 0.0  ;;  %v1113_v2 = vmul.f32 1.442695, %v1106_v63  ;;  %1772 = vmatprep.subr.bf16.mxu0 %v1889_v0 }
 0x3df   : > { %1119 = vadd.xlane.f32.xlu1 %v1118_v58 }
 0x3e1   : > { %1773 = vmatpush3.bf16.msra.mxu0 %v1842_v37 }
 0x3e2   : > { %1774 = vmatprep.subr.bf16.mxu0 %v1889_v0 }
 0x3e5   : > { %v1854_v59 = vpop.eup %1853  ;;  %1775 = vmatpush3.bf16.msra.mxu0 %v1843_v40 }
 0x3e6   : > { %v1121_v60 = vsel %vm1090_vm3, %v1854_v59, 0.0  ;;  %1776 = vmatprep.subr.bf16.mxu0 %v1889_v0 }
 0x3e7   : > { %1122 = vadd.xlane.f32.xlu0 %v1121_v60 }
 0x3e9   : > { %1777 = vmatpush3.bf16.msra.mxu0 %v1844_v43 }
 0x3ea   : > { %1778 = vmatprep.subr.bf16.mxu0 %v1889_v0 }
 0x3ed   : > { %1779 = vmatpush3.bf16.msra.mxu0 %v1845_v44 }
 0x3ee   : > { %1780 = vmatprep.subr.bf16.mxu0 %v1889_v0 }
 0x3f0   : > { %887 = vrot.lane.b32.xlu1 %v883_v49, %s1892_s22 }
 0x3f1   : > { %1781 = vmatpush3.bf16.msra.mxu0 %v1846_v45 }
 0x3f5   : > { %v1117_v61 = vpop.xlane.xlu0 %1116 }
 0x3f6   : > { %1855 = vrcp.f32 %v1117_v61 }
 0x3f7   : > { %1857 = vpow2.f32 %v1113_v2 }
 0x3fd   : > { %885 = vrot.lane.b32.xlu0 %v883_v49, %s1891_s21 }
 0x403   : > { %v1856_v3 = vpop.eup %1855 }
 0x404   : > { %v1131_v4 = vmul.f32 %v1856_v3, %v1850_v47  ;;  %v1858_v6 = vpop.eup %1857 }
 0x405   : > { %v1124_v7 = vsel %vm1090_vm3, %v1858_v6, 0.0 }
 0x406   : > { %v1135_v5 = vpack.c.bf16 %v1131_v4, %v1131_v4 }
 0x408   : > { %1745 = vmatmul.mubr.msk.bf16.vlgmr.msra.gmra.mxu1 %vm1090_vm3, %v1135_v5 }
 0x409   : > { %1750 = vmatprep.mubr.msk.bf16.mxu1 %vm1890_vm0, %v1889_v0 }
 0x414   : > { %1125 = vadd.xlane.f32.xlu1 %v1124_v7 }
 0x425   : > { %889 = vrot.lane.b32.xlu1 %v883_v49, %s1893_s30 }
 0x468   : > { %v1120_v8 = vpop.xlane.xlu1 %1119 }
 0x469   : > { %1859 = vrcp.f32 %v1120_v8 }
 0x46c   : > { %v888_v14 = vpop.permute.xlu1 %887 }
 0x46d   : > { %v1236_v16 = vsel %vm1142_vm4, %v888_v14, 0 }
 0x470   : > { %v1123_v9 = vpop.xlane.xlu0 %1122 }
 0x471   : > { %1861 = vrcp.f32 %v1123_v9 }
 0x474   : > { %v886_v10 = vpop.permute.xlu0 %885 }
 0x475   : > { %v1190_v11 = vsel %vm1142_vm4, %v886_v10, 0 }
 0x476   : > { %v1860_v12 = vpop.eup %1859  ;;  %1749 = vmatpush3.bf16.msra.mxu1 %v1190_v11 }
 0x477   : > { %1754 = vmatprep.subr.bf16.mxu1 %v1889_v0  ;;  %v1132_v13 = vmul.f32 %v1860_v12, %v1852_v57 }
 0x479   : > { %v1136_v15 = vpack.c.bf16 %v1132_v13, %v1132_v13 }
 0x47b   : > { %1751 = vmatmul.mubr.msk.bf16.vlgmr.msra.gmra.mxu1 %vm1090_vm3, %v1136_v15 }
 0x47c   : > { %1755 = vmatpush3.bf16.msra.mxu1 %v1236_v16  ;;  %1756 = vmatprep.mubr.msk.bf16.mxu1 %vm1890_vm0, %v1889_v0 }
 0x47d   : > { %1760 = vmatprep.subr.bf16.mxu1 %v1889_v0 }
 0x47e   : > { %v1862_v17 = vpop.eup %1861 }
 0x47f   : > { %v1133_v18 = vmul.f32 %v1862_v17, %v1854_v59 }
 0x481   : > { %v1137_v19 = vpack.c.bf16 %v1133_v18, %v1133_v18 }
 0x483   : > { %1757 = vmatmul.mubr.msk.bf16.vlgmr.msra.gmra.mxu1 %vm1090_vm3, %v1137_v19 }
 0x484   : > { %1762 = vmatprep.mubr.msk.bf16.mxu1 %vm1890_vm0, %v1889_v0 }
 0x49d   : > { %v1126_v20 = vpop.xlane.xlu1 %1125 }
 0x49e   : > { %1863 = vrcp.f32 %v1126_v20 }
 0x4a1   : > { %v890_v21 = vpop.permute.xlu1 %889 }
 0x4a2   : > { %v1282_v22 = vsel %vm1142_vm4, %v890_v21, 0 }
 0x4a3   : > { %1761 = vmatpush3.bf16.msra.mxu1 %v1282_v22 }
 0x4ab   : > { %v1864_v23 = vpop.eup %1863 }
 0x4ac   : > { %v1134_v24 = vmul.f32 %v1864_v23, %v1858_v6 }
 0x4ae   : > { %v1138_v25 = vpack.c.bf16 %v1134_v24, %v1134_v24 }
 0x4b0   : > { %1763 = vmatmul.mubr.msk.bf16.vlgmr.msra.gmra.mxu1 %vm1090_vm3, %v1138_v25 }
 0x4c8   : > { %v1180_v26 = vpop.f32.mrf.mxu1 }
 0x4ca   : > { %v1746_v27 = vpop.f32.mrf.mxu1 }
 0x4cc   : > { %v1183_v28 = vpop.f32.mrf.mxu1 }
 0x4ce   : > { %v1747_v29 = vpop.f32.mrf.mxu1 }
 0x53b   : > { %v1226_v32 = vpop.f32.mrf.mxu1 }
 0x53c   : > { %1325 = vrot.lane.b32.xlu0 %v1226_v32, %s1893_s30 }
 0x53d   : > { %v1752_v33 = vpop.f32.mrf.mxu1 }
 0x53f   : > { %v1229_v35 = vpop.f32.mrf.mxu1 }
 0x541   : > { %v1753_v36 = vpop.f32.mrf.mxu1 }
 0x543   : > { %v1272_v38 = vpop.f32.mrf.mxu1 }
 0x544   : > { %1329 = vrot.lane.b32.xlu1 %v1272_v38, %s1892_s22 }
 0x545   : > { %v1758_v39 = vpop.f32.mrf.mxu1 }
 0x547   : > { %v1275_v41 = vpop.f32.mrf.mxu1 }
 0x549   : > { %v1759_v42 = vpop.f32.mrf.mxu1 }
 0x570   : > { %v1318_v46 = vpop.f32.mrf.mxu1 }
 0x571   : > { %1333 = vrot.lane.b32.xlu0 %v1318_v46, %s1891_s21 }
 0x572   : > { %v1764_v47 = vpop.f32.mrf.mxu1 }
 0x574   : > { %v1321_v48 = vpop.f32.mrf.mxu1 }
 0x576   : > { %v1765_v49 = vpop.f32.mrf.mxu1 }
 0x5ae   : > { %v1326_v50 = vpop.permute.xlu0 %1325 }
 0x5af   : > { %v1336_v52 = vsel %vm891_vm1, %v1180_v26, %v1326_v50 }
 0x5b6   : > { %v1330_v51 = vpop.permute.xlu1 %1329 }
 0x5b7   : > { %v1338_v53 = vsel %vm1337_vm5, %v1336_v52, %v1330_v51 }
 0x5e3   : > { %v1334_v0 = vpop.permute.xlu0 %1333 }
 0x5e4   : > { %v1340_v54 = vsel %vm1339_vm6, %v1338_v53, %v1334_v0 }
 0x5e5   : > { %v1341_v55 = vpack.c.bf16 %v1340_v54, %v1340_v54 }
 0x5e7   : > { %1783 = vmatmul.mubr.bf16.vlgmr.msra.gmra.mxu0 %v1341_v55 }
 0x6a7   : > { %v1447_v57 = vpop.f32.mrf.mxu0 }
 0x6a8   : > { %v1448_v58 = vadd.f32 %v1595_v56, %v1447_v57 }
 0x6a9   : > { %v1784_v59 = vpop.f32.mrf.mxu0 }
 0x6aa   : > { %v1453_v60 = vadd.f32 %v1448_v58, %v1993_v1 }
 0x6ab   : > { %v1450_v61 = vpop.f32.mrf.mxu0 }
 0x6ac   : > { %1454 = vst [vmem:[%s497_s14] sm:$0xff] %v1453_v60 }
 0x6ad   : > { %v1785_v62 = vpop.f32.mrf.mxu0 }
 0x6ae PF: > { %s23_s27 = sadd.s32 1, %s1887_s27   ;;  %s2251_s25 = smov %s1883_s26 }
 0x6af   : > { %p20_p5 = scmp.ge.s32.totalorder %s23_s27, 4   ;;  %s2252_s26 = smov %s2254_s28 }
 0x6b1   :  { %22 = sbr.rel (!%p20_p5) target bundleno = 2 (0x2), region = 108 }

</bundles_post_ra>
